<compile_context>
chip_gen: v5e
topology: v5e:2x2
jax: 0.10.0
libtpu: 0.0.40
codegen_flags: <defaults>
</compile_context>

<pallas_src>
import functools
import math

import jax
import jax.numpy as jnp
from jax.experimental import pallas as pl
from jax.experimental.pallas import tpu as pltpu


def _erf(z, approx):
    """Abramowitz & Stegun 7.1.26 erf approximation (|error| < 1.5e-7).

    Uses only exp / mul / add / select (clean Mosaic lowering).  With approx=True the
    internal divide runs on the EUP reciprocal (~1e-3 rel error, free slot)."""
    a1, a2, a3, a4, a5 = 0.254829592, -0.284496736, 1.421413741, -1.453152027, 1.061405429
    p = 0.3275911
    sign = jnp.where(z >= 0.0, 1.0, -1.0)
    az = jnp.abs(z)
    denom = 1.0 + p * az
    t = pl.reciprocal(denom, approx=True) if approx else 1.0 / denom
    poly = ((((a5 * t + a4) * t + a3) * t + a2) * t + a1) * t
    return sign * (1.0 - poly * jnp.exp(-az * az))


def _gelu_exact(x, approx):
    return 0.5 * x * (1.0 + _erf(x * (1.0 / math.sqrt(2.0)), approx))


def _layernorm(x, gamma, beta, eps):
    mu = jnp.mean(x, axis=-1, keepdims=True)
    xc = x - mu
    var = jnp.mean(xc * xc, axis=-1, keepdims=True)
    return xc * jax.lax.rsqrt(var + eps) * gamma + beta


def _block_cls_kernel(cls_ref, x_ref, vec_ref, bfc1_ref, wq_ref, wkv_ref, wp_ref,
                      wfc1_ref, wfc2_ref, seg_ref, segt_ref, mask_ref, o_ref,
                      *, scale, eps, compute_dtype, approx, apply_mask):
    f32 = jnp.float32
    cdt = compute_dtype

    cls_in = cls_ref[...].astype(f32)                       # (Bt, C)  residual source
    xv = x_ref[...].astype(f32)                             # (Bt, Ns, C)
    bt, ns, dim = xv.shape

    # packed (6, C) f32 vectors: g1 | b1 | bp | g2 | b2 | b_fc2
    g1, b1 = vec_ref[0:1, :], vec_ref[1:2, :]
    bp, g2 = vec_ref[2:3, :], vec_ref[3:4, :]
    b2, bfc2 = vec_ref[4:5, :], vec_ref[5:6, :]

    # ---- LayerNorm1 over the logical concat [cls ; x] (f32) --------------------------
    hc_cls = _layernorm(cls_in, g1, b1, eps).astype(cdt)    # (Bt, C)
    hc_x = _layernorm(xv, g1, b1, eps).astype(cdt)          # (Bt, Ns, C)

    # ---- projections: q for the CLS rows, fused k|v for CLS + spatial tokens ---------
    q = jnp.dot(hc_cls, wq_ref[...], preferred_element_type=f32) * scale        # (Bt, C)
    kv_cls = jnp.dot(hc_cls, wkv_ref[...], preferred_element_type=cdt)          # (Bt, 2C)
    kv_x = jnp.dot(hc_x.reshape(bt * ns, dim), wkv_ref[...],
                   preferred_element_type=cdt).reshape(bt, ns, 2 * dim)         # (Bt, Ns, 2C)
    k_cls, v_cls = kv_cls[:, :dim], kv_cls[:, dim:]          # (Bt, C) in compute dtype
    k_x, v_x = kv_x[:, :, :dim], kv_x[:, :, dim:]            # (Bt, Ns, C) in compute dtype

    # ---- per-head scores via one-hot head-segment matmuls (no per-head loop) ---------
    # seg[c, h] = 1 iff channel c belongs to head h (precomputed on host).
    nh = seg_ref.shape[1]
    s_cls = jnp.dot(q * k_cls, seg_ref[...], preferred_element_type=f32)        # (Bt, H)
    qk = q[:, None, :] * k_x                                                    # (Bt, Ns, C) f32
    s_x = jnp.dot(qk.reshape(bt * ns, dim), seg_ref[...],
                  preferred_element_type=f32).reshape(bt, ns, nh)               # (Bt, Ns, H)

    # ---- softmax over the N = 1 + Ns tokens (f32) ------------------------------------
    m = jnp.maximum(s_cls, jnp.max(s_x, axis=1))                                # (Bt, H)
    p_cls = jnp.exp(s_cls - m)
    p_x = jnp.exp(s_x - m[:, None, :])
    if apply_mask:
        p_x = p_x * mask_ref[...]       # zero the sublane-pad tokens (exact)
    inv = pl.reciprocal(p_cls + jnp.sum(p_x, axis=1), approx=approx)            # (Bt, H)
    p_cls = p_cls * inv
    p_x = p_x * inv[:, None, :]

    # ---- context: ctx[b, c] = sum_n p[b, n, head(c)] * v[b, n, c] ---------------------
    ctx = jnp.dot(p_cls, segt_ref[...], preferred_element_type=f32) * v_cls     # (Bt, C)
    px_full = jnp.dot(p_x.reshape(bt * ns, nh), segt_ref[...],
                      preferred_element_type=f32).reshape(bt, ns, dim)
    ctx = ctx + jnp.sum(px_full * v_x, axis=1)                                  # (Bt, C) f32

    # ---- output projection + residual with the original (un-normed) cls_token --------
    attn_out = jnp.dot(ctx.astype(cdt), wp_ref[...], preferred_element_type=f32) + bp
    cls1 = cls_in + attn_out

    # ---- LayerNorm2 + MLP (fc1 -> exact GELU -> fc2) + residual ------------------------
    h2 = _layernorm(cls1, g2, b2, eps)
    m1 = jnp.dot(h2.astype(cdt), wfc1_ref[...], preferred_element_type=f32) + bfc1_ref[...]
    m1 = _gelu_exact(m1, approx)
    m2 = jnp.dot(m1.astype(cdt), wfc2_ref[...], preferred_element_type=f32) + bfc2

    o_ref[...] = (cls1 + m2).astype(o_ref.dtype)


def block_cls_forward(x, cls_token, params, *, num_heads, eps=1e-5, block_b=None,
                      compute_dtype=jnp.bfloat16, single_buffer_weights=True,
                      vmem_budget_bytes=40 * 1024 * 1024):
    """Pallas TPU forward of BlockCls.  x: (B, N_spatial, C), cls_token: (B, 1, C)."""
    B, n_spatial, C = x.shape
    assert cls_token.shape == (B, 1, C)
    assert C % num_heads == 0
    head_dim = C // num_heads
    scale = head_dim ** -0.5
    cdt = jnp.dtype(compute_dtype)
    out_dtype = x.dtype

    # ---- token-dim sublane alignment ---------------------------------------------------
    # Pad spatial tokens to a multiple of 8 so the in-kernel (bt, Ns, C) <-> (bt*Ns, C)
    # reshapes are layout no-ops.  Callers with sublane-aligned token counts skip this
    # one-time pad; padded tokens are masked out of the softmax inside the kernel.
    ns_pad = ((n_spatial + 7) // 8) * 8
    x_p = x if ns_pad == n_spatial else jnp.pad(x, ((0, 0), (0, ns_pad - n_spatial), (0, 0)))
    cls2d = cls_token.reshape(B, C)

    # ---- parameter packing --------------------------------------------------------------
    w_q = params["wq"].astype(cdt)
    w_kv = jnp.concatenate([params["wk"], params["wv"]], axis=1).astype(cdt)     # (C, 2C)
    w_p = params["wp"].astype(cdt)
    w_fc1 = params["w_fc1"].astype(cdt)
    w_fc2 = params["w_fc2"].astype(cdt)
    hidden = w_fc1.shape[1]

    row = lambda a: jnp.asarray(a, jnp.float32).reshape(1, -1)
    vecs = jnp.concatenate([row(params["g1"]), row(params["b1"]), row(params["bp"]),
                            row(params["g2"]), row(params["b2"]), row(params["b_fc2"])],
                           axis=0)                                               # (6, C)
    b_fc1 = row(params["b_fc1"])                                                 # (1, hidden)

    # One-hot head-segment matrices, hoisted out of the kernel (tiny constant inputs).
    head_of_chan = jnp.arange(C, dtype=jnp.int32) // head_dim
    seg = (head_of_chan[:, None] ==
           jnp.arange(num_heads, dtype=jnp.int32)[None, :]).astype(jnp.float32)  # (C, H)
    seg_t = seg.T                                                                # (H, C)
    tok_mask = ((jnp.arange(ns_pad) < n_spatial).astype(jnp.float32)[:, None]
                * jnp.ones((1, num_heads), jnp.float32))                         # (Ns_pad, H)

    # ---- batch blocking -----------------------------------------------------------------
    if block_b is None:
        if B <= 8:
            block_b = B
        else:
            target = min(256, B)          # fill MXU rows (128 on v5e, 256 on v6e/v7x)
            if target >= B and B >= 16:
                target = B // 2           # keep >= 2 grid steps so ("parallel",) batch
                                          # slabs shard across both v7x TensorCores
            block_b = max(8, (target // 8) * 8)
    elif block_b != B and block_b % 8 != 0:
        block_b = max(8, (block_b // 8) * 8)

    cdt_size = cdt.itemsize
    in_size = jnp.dtype(x.dtype).itemsize
    out_size = jnp.dtype(out_dtype).itemsize

    def vmem_bytes(bb):
        nbuf_w = 1 if single_buffer_weights else 2
        w = ((4 * C * C + 2 * C * hidden) * cdt_size
             + (6 * C + hidden + 2 * C * num_heads + ns_pad * num_heads) * 4) * nbuf_w
        io = 2 * bb * (ns_pad + 1) * C * in_size + 2 * bb * C * out_size
        interm = bb * ns_pad * C * (4 * 4 + 4 * cdt_size) + bb * (2 * hidden + 10 * C) * 4
        return w + io + interm

    # Shrink block_b until the estimated footprint fits the per-generation budget
    # (default 40 MiB: safe under v7x's 64 MiB/TC; raise on v5e/v6e's 128 MiB).
    while block_b > 8 and vmem_bytes(block_b) > vmem_budget_bytes:
        block_b = max(8, ((block_b // 2) // 8) * 8)

    grid = (pl.cdiv(B, block_b),)
    vmem_limit = int(min(max(vmem_bytes(block_b) * 5 // 4, 32 * 1024 * 1024),
                         56 * 1024 * 1024))

    kernel = functools.partial(
        _block_cls_kernel, scale=scale, eps=eps, compute_dtype=cdt,
        approx=(cdt != jnp.float32), apply_mask=(ns_pad != n_spatial))

    def run(single_buf):
        if single_buf:
            # Grid-invariant operands: single-buffered (constant index_map => DMA'd once).
            const = lambda shape: pl.BlockSpec(shape, lambda b: (0,) * len(shape),
                                               pipeline_mode=pl.Buffered(1))
        else:
            const = lambda shape: pl.BlockSpec(shape, lambda b: (0,) * len(shape))
        return pl.pallas_call(
            kernel,
            out_shape=jax.ShapeDtypeStruct((B, C), out_dtype),
            grid=grid,
            in_specs=[
                pl.BlockSpec((block_b, C), lambda b: (b, 0)),             # cls tokens
                pl.BlockSpec((block_b, ns_pad, C), lambda b: (b, 0, 0)),  # spatial tokens
                const((6, C)),                                            # g1|b1|bp|g2|b2|b_fc2
                const((1, hidden)),                                       # fc1 bias
                const((C, C)),                                            # wq
                const((C, 2 * C)),                                        # fused wk|wv
                const((C, C)),                                            # wp
                const((C, hidden)),                                       # fc1 weight
                const((hidden, C)),                                       # fc2 weight
                const((C, num_heads)),                                    # seg
                const((num_heads, C)),                                    # seg_t
                const((ns_pad, num_heads)),                               # token pad mask
            ],
            out_specs=pl.BlockSpec((block_b, C), lambda b: (b, 0)),       # lane-dense slab
            compiler_params=pltpu.CompilerParams(
                dimension_semantics=("parallel",),
                vmem_limit_bytes=vmem_limit),
        )(cls2d, x_p, vecs, b_fc1, w_q, w_kv, w_p, w_fc1, w_fc2, seg, seg_t, tok_mask)

    if single_buffer_weights:
        try:
            out2d = run(True)
        except Exception:
            # pl.Buffered(1) not supported on this jax/libtpu build: fall back to the
            # default double-buffered weights (identical results, ~2x weight VMEM).
            out2d = run(False)
    else:
        out2d = run(False)

    return out2d.reshape(B, 1, C)


def block_cls_ref(x, cls_token, params, *, num_heads, eps=1e-5):
    """Pure-JAX reference mirroring the PyTorch BlockCls.forward (eval mode)."""
    B, _, C = x.shape
    head_dim = C // num_heads
    scale = head_dim ** -0.5
    u = jnp.concatenate([cls_token, x], axis=1)
    N = u.shape[1]

    def ln(t, g, b):
        mu = t.mean(axis=-1, keepdims=True)
        var = ((t - mu) ** 2).mean(axis=-1, keepdims=True)
        return (t - mu) / jnp.sqrt(var + eps) * g.reshape(-1) + b.reshape(-1)

    h = ln(u, params["g1"], params["b1"])
    q = (h[:, 0] @ params["wq"]).reshape(B, 1, num_heads, head_dim).transpose(0, 2, 1, 3)
    k = (h @ params["wk"]).reshape(B, N, num_heads, head_dim).transpose(0, 2, 1, 3)
    v = (h @ params["wv"]).reshape(B, N, num_heads, head_dim).transpose(0, 2, 1, 3)
    attn = jax.nn.softmax(jnp.einsum("bhqd,bhkd->bhqk", q * scale, k), axis=-1)
    x_cls = jnp.einsum("bhqk,bhkd->bhqd", attn, v).transpose(0, 2, 1, 3).reshape(B, 1, C)
    x_cls = x_cls @ params["wp"] + params["bp"].reshape(-1)
    cls1 = cls_token + x_cls

    h2 = ln(cls1, params["g2"], params["b2"])
    m = jax.nn.gelu(h2 @ params["w_fc1"] + params["b_fc1"].reshape(-1), approximate=False)
    m = m @ params["w_fc2"] + params["b_fc2"].reshape(-1)
    return cls1 + m


if __name__ == "__main__":
    # Small shapes consistent with the module: dim divisible by num_heads,
    # N = 1 (CLS) + 7 spatial tokens (exercises the sublane token-pad + mask path).
    B, n_spatial, C, num_heads = 16, 7, 32, 4
    hidden = 4 * C                                   # mlp_ratio = 4.0

    key = jax.random.PRNGKey(0)
    ks = jax.random.split(key, 16)
    x = jax.random.normal(ks[0], (B, n_spatial, C), jnp.float32)
    cls_token = jax.random.normal(ks[1], (B, 1, C), jnp.float32)

    def rnd(k, shape, s=0.1):
        return s * jax.random.normal(k, shape, jnp.float32)

    params = dict(
        g1=1.0 + rnd(ks[2], (1, C)), b1=rnd(ks[3], (1, C)),
        wq=rnd(ks[4], (C, C)), wk=rnd(ks[5], (C, C)), wv=rnd(ks[6], (C, C)),
        wp=rnd(ks[7], (C, C)), bp=rnd(ks[8], (1, C)),
        g2=1.0 + rnd(ks[9], (1, C)), b2=rnd(ks[10], (1, C)),
        w_fc1=rnd(ks[11], (C, hidden)), b_fc1=rnd(ks[12], (1, hidden)),
        w_fc2=rnd(ks[13], (hidden, C)), b_fc2=rnd(ks[14], (1, C)),
    )

    ref = block_cls_ref(x, cls_token, params, num_heads=num_heads)

    # f32 verification path: exact reciprocal / divide, tight tolerance.
    out_f32 = block_cls_forward(x, cls_token, params, num_heads=num_heads,
                                compute_dtype=jnp.float32)
    out_f32 = jax.block_until_ready(out_f32)
    assert out_f32.shape == (B, 1, C)
    assert jnp.allclose(out_f32, ref, atol=1e-4, rtol=1e-4), "f32 kernel mismatch vs reference"

    # Default fast path: bf16 MXU operands (f32 accumulation / LN / softmax / GELU).
    out_bf16 = jax.block_until_ready(
        block_cls_forward(x, cls_token, params, num_heads=num_heads))
    assert out_bf16.shape == (B, 1, C)
    assert jnp.allclose(out_bf16, ref, atol=5e-2, rtol=5e-2), "bf16 kernel mismatch vs reference"

    print("KERNEL_OK")
</pallas_src>

<mosaic_0001>
module attributes {stable_mosaic.version = 11 : i64} {
  func.func @_block_cls_kernel(%arg0: i32, %arg1: memref<8x32xf32, #tpu.memory_space<vmem>>, %arg2: memref<8x8x32xf32, #tpu.memory_space<vmem>>, %arg3: memref<6x32xf32, #tpu.memory_space<vmem>>, %arg4: memref<1x128xf32, #tpu.memory_space<vmem>>, %arg5: memref<32x32xf32, #tpu.memory_space<vmem>>, %arg6: memref<32x64xf32, #tpu.memory_space<vmem>>, %arg7: memref<32x32xf32, #tpu.memory_space<vmem>>, %arg8: memref<32x128xf32, #tpu.memory_space<vmem>>, %arg9: memref<128x32xf32, #tpu.memory_space<vmem>>, %arg10: memref<32x4xf32, #tpu.memory_space<vmem>>, %arg11: memref<4x32xf32, #tpu.memory_space<vmem>>, %arg12: memref<8x4xf32, #tpu.memory_space<vmem>>, %arg13: memref<8x32xf32, #tpu.memory_space<vmem>>) attributes {dimension_semantics = [#tpu.dimension_semantics<parallel>], iteration_bounds = array<i64: 2>, scalar_prefetch = 0 : i64, scratch_operands = 0 : i64, tpu.core_type = #tpu.core_type<tc>, window_params = [{transform_indices = @transform_0, window_bounds = array<i64: 8, 32>}, {transform_indices = @transform_1, window_bounds = array<i64: 8, 8, 32>}, {pipeline_mode = #tpu.pipeline_mode<synchronous>, transform_indices = @transform_2, window_bounds = array<i64: 6, 32>}, {pipeline_mode = #tpu.pipeline_mode<synchronous>, transform_indices = @transform_3, window_bounds = array<i64: 1, 128>}, {pipeline_mode = #tpu.pipeline_mode<synchronous>, transform_indices = @transform_4, window_bounds = array<i64: 32, 32>}, {pipeline_mode = #tpu.pipeline_mode<synchronous>, transform_indices = @transform_5, window_bounds = array<i64: 32, 64>}, {pipeline_mode = #tpu.pipeline_mode<synchronous>, transform_indices = @transform_6, window_bounds = array<i64: 32, 32>}, {pipeline_mode = #tpu.pipeline_mode<synchronous>, transform_indices = @transform_7, window_bounds = array<i64: 32, 128>}, {pipeline_mode = #tpu.pipeline_mode<synchronous>, transform_indices = @transform_8, window_bounds = array<i64: 128, 32>}, {pipeline_mode = #tpu.pipeline_mode<synchronous>, transform_indices = @transform_9, window_bounds = array<i64: 32, 4>}, {pipeline_mode = #tpu.pipeline_mode<synchronous>, transform_indices = @transform_10, window_bounds = array<i64: 4, 32>}, {pipeline_mode = #tpu.pipeline_mode<synchronous>, transform_indices = @transform_11, window_bounds = array<i64: 8, 4>}, {transform_indices = @transform_12, window_bounds = array<i64: 8, 32>}]} {
    %c0 = arith.constant 0 : index
    %c0_0 = arith.constant 0 : index
    %0 = vector.load %arg1[%c0, %c0_0] : memref<8x32xf32, #tpu.memory_space<vmem>>, vector<8x32xf32>
    %c0_1 = arith.constant 0 : index
    %c0_2 = arith.constant 0 : index
    %c0_3 = arith.constant 0 : index
    %1 = vector.load %arg2[%c0_1, %c0_2, %c0_3] : memref<8x8x32xf32, #tpu.memory_space<vmem>>, vector<8x8x32xf32>
    %c0_4 = arith.constant 0 : index
    %c0_5 = arith.constant 0 : index
    %2 = vector.load %arg3[%c0_4, %c0_5] : memref<6x32xf32, #tpu.memory_space<vmem>>, vector<1x32xf32>
    %c1 = arith.constant 1 : index
    %c0_6 = arith.constant 0 : index
    %3 = vector.load %arg3[%c1, %c0_6] : memref<6x32xf32, #tpu.memory_space<vmem>>, vector<1x32xf32>
    %c2 = arith.constant 2 : index
    %c0_7 = arith.constant 0 : index
    %4 = vector.load %arg3[%c2, %c0_7] : memref<6x32xf32, #tpu.memory_space<vmem>>, vector<1x32xf32>
    %c3 = arith.constant 3 : index
    %c0_8 = arith.constant 0 : index
    %5 = vector.load %arg3[%c3, %c0_8] : memref<6x32xf32, #tpu.memory_space<vmem>>, vector<1x32xf32>
    %c4 = arith.constant 4 : index
    %c0_9 = arith.constant 0 : index
    %6 = vector.load %arg3[%c4, %c0_9] : memref<6x32xf32, #tpu.memory_space<vmem>>, vector<1x32xf32>
    %c5 = arith.constant 5 : index
    %c0_10 = arith.constant 0 : index
    %7 = vector.load %arg3[%c5, %c0_10] : memref<6x32xf32, #tpu.memory_space<vmem>>, vector<1x32xf32>
    %cst = arith.constant dense<0.000000e+00> : vector<8xf32>
    %8 = vector.multi_reduction <add>, %0, %cst [1] : vector<8x32xf32> to vector<8xf32>
    %9 = vector.shape_cast %8 : vector<8xf32> to vector<8x1xf32>
    %cst_11 = arith.constant 3.200000e+01 : f32
    %10 = vector.broadcast %cst_11 : f32 to vector<8x1xf32>
    %11 = arith.divf %9, %10 : vector<8x1xf32>
    %12 = vector.broadcast %11 : vector<8x1xf32> to vector<8x32xf32>
    %13 = arith.subf %0, %12 : vector<8x32xf32>
    %14 = arith.mulf %13, %13 : vector<8x32xf32>
    %cst_12 = arith.constant dense<0.000000e+00> : vector<8xf32>
    %15 = vector.multi_reduction <add>, %14, %cst_12 [1] : vector<8x32xf32> to vector<8xf32>
    %16 = vector.shape_cast %15 : vector<8xf32> to vector<8x1xf32>
    %cst_13 = arith.constant 3.200000e+01 : f32
    %17 = vector.broadcast %cst_13 : f32 to vector<8x1xf32>
    %18 = arith.divf %16, %17 : vector<8x1xf32>
    %cst_14 = arith.constant 9.99999974E-6 : f32
    %19 = vector.broadcast %cst_14 : f32 to vector<8x1xf32>
    %20 = arith.addf %18, %19 : vector<8x1xf32>
    %21 = math.rsqrt %20 : vector<8x1xf32>
    %22 = vector.broadcast %21 : vector<8x1xf32> to vector<8x32xf32>
    %23 = arith.mulf %13, %22 : vector<8x32xf32>
    %24 = vector.broadcast %2 : vector<1x32xf32> to vector<8x32xf32>
    %25 = arith.mulf %23, %24 : vector<8x32xf32>
    %26 = vector.broadcast %3 : vector<1x32xf32> to vector<8x32xf32>
    %27 = arith.addf %25, %26 : vector<8x32xf32>
    %cst_15 = arith.constant dense<0.000000e+00> : vector<8x8xf32>
    %28 = vector.multi_reduction <add>, %1, %cst_15 [2] : vector<8x8x32xf32> to vector<8x8xf32>
    %29 = vector.shape_cast %28 : vector<8x8xf32> to vector<8x8x1xf32>
    %cst_16 = arith.constant 3.200000e+01 : f32
    %30 = vector.broadcast %cst_16 : f32 to vector<8x8x1xf32>
    %31 = arith.divf %29, %30 : vector<8x8x1xf32>
    %32 = vector.broadcast %31 : vector<8x8x1xf32> to vector<8x8x32xf32>
    %33 = arith.subf %1, %32 : vector<8x8x32xf32>
    %34 = arith.mulf %33, %33 : vector<8x8x32xf32>
    %cst_17 = arith.constant dense<0.000000e+00> : vector<8x8xf32>
    %35 = vector.multi_reduction <add>, %34, %cst_17 [2] : vector<8x8x32xf32> to vector<8x8xf32>
    %36 = vector.shape_cast %35 : vector<8x8xf32> to vector<8x8x1xf32>
    %cst_18 = arith.constant 3.200000e+01 : f32
    %37 = vector.broadcast %cst_18 : f32 to vector<8x8x1xf32>
    %38 = arith.divf %36, %37 : vector<8x8x1xf32>
    %cst_19 = arith.constant 9.99999974E-6 : f32
    %39 = vector.broadcast %cst_19 : f32 to vector<8x8x1xf32>
    %40 = arith.addf %38, %39 : vector<8x8x1xf32>
    %41 = math.rsqrt %40 : vector<8x8x1xf32>
    %42 = vector.broadcast %41 : vector<8x8x1xf32> to vector<8x8x32xf32>
    %43 = arith.mulf %33, %42 : vector<8x8x32xf32>
    %44 = vector.shape_cast %2 : vector<1x32xf32> to vector<1x1x32xf32>
    %45 = vector.broadcast %44 : vector<1x1x32xf32> to vector<8x8x32xf32>
    %46 = arith.mulf %43, %45 : vector<8x8x32xf32>
    %47 = vector.shape_cast %3 : vector<1x32xf32> to vector<1x1x32xf32>
    %48 = vector.broadcast %47 : vector<1x1x32xf32> to vector<8x8x32xf32>
    %49 = arith.addf %46, %48 : vector<8x8x32xf32>
    %c0_20 = arith.constant 0 : index
    %c0_21 = arith.constant 0 : index
    %50 = vector.load %arg5[%c0_20, %c0_21] : memref<32x32xf32, #tpu.memory_space<vmem>>, vector<32x32xf32>
    %cst_22 = arith.constant dense<0.000000e+00> : vector<8x32xf32>
    %51 = tpu.matmul %27, %50, %cst_22 {dimension_numbers = #tpu.dot_dimension_numbers<[1], [0], [0], [1], [0, 0, 1, 1], [], []>} : vector<8x32xf32>, vector<32x32xf32>, vector<8x32xf32> -> vector<8x32xf32>
    %cst_23 = arith.constant 0.353553385 : f32
    %52 = vector.broadcast %cst_23 : f32 to vector<8x32xf32>
    %53 = arith.mulf %51, %52 : vector<8x32xf32>
    %c0_24 = arith.constant 0 : index
    %c0_25 = arith.constant 0 : index
    %54 = vector.load %arg6[%c0_24, %c0_25] : memref<32x64xf32, #tpu.memory_space<vmem>>, vector<32x64xf32>
    %cst_26 = arith.constant dense<0.000000e+00> : vector<8x64xf32>
    %55 = tpu.matmul %27, %54, %cst_26 {dimension_numbers = #tpu.dot_dimension_numbers<[1], [0], [0], [1], [0, 0, 1, 1], [], []>} : vector<8x32xf32>, vector<32x64xf32>, vector<8x64xf32> -> vector<8x64xf32>
    %56 = vector.shape_cast %49 : vector<8x8x32xf32> to vector<64x32xf32>
    %c0_27 = arith.constant 0 : index
    %c0_28 = arith.constant 0 : index
    %57 = vector.load %arg6[%c0_27, %c0_28] : memref<32x64xf32, #tpu.memory_space<vmem>>, vector<32x64xf32>
    %cst_29 = arith.constant dense<0.000000e+00> : vector<64x64xf32>
    %58 = tpu.matmul %56, %57, %cst_29 {dimension_numbers = #tpu.dot_dimension_numbers<[1], [0], [0], [1], [0, 0, 1, 1], [], []>} : vector<64x32xf32>, vector<32x64xf32>, vector<64x64xf32> -> vector<64x64xf32>
    %59 = vector.shape_cast %58 : vector<64x64xf32> to vector<8x8x64xf32>
    %60 = vector.extract_strided_slice %55 {offsets = [0, 0], sizes = [8, 32], strides = [1, 1]} : vector<8x64xf32> to vector<8x32xf32>
    %61 = vector.extract_strided_slice %55 {offsets = [0, 32], sizes = [8, 32], strides = [1, 1]} : vector<8x64xf32> to vector<8x32xf32>
    %62 = vector.extract_strided_slice %59 {offsets = [0, 0, 0], sizes = [8, 8, 32], strides = [1, 1, 1]} : vector<8x8x64xf32> to vector<8x8x32xf32>
    %63 = vector.extract_strided_slice %59 {offsets = [0, 0, 32], sizes = [8, 8, 32], strides = [1, 1, 1]} : vector<8x8x64xf32> to vector<8x8x32xf32>
    %64 = arith.mulf %53, %60 : vector<8x32xf32>
    %c0_30 = arith.constant 0 : index
    %c0_31 = arith.constant 0 : index
    %65 = vector.load %arg10[%c0_30, %c0_31] : memref<32x4xf32, #tpu.memory_space<vmem>>, vector<32x4xf32>
    %cst_32 = arith.constant dense<0.000000e+00> : vector<8x4xf32>
    %66 = tpu.matmul %64, %65, %cst_32 {dimension_numbers = #tpu.dot_dimension_numbers<[1], [0], [0], [1], [0, 0, 1, 1], [], []>} : vector<8x32xf32>, vector<32x4xf32>, vector<8x4xf32> -> vector<8x4xf32>
    %67 = vector.shape_cast %53 : vector<8x32xf32> to vector<8x1x32xf32>
    %68 = vector.broadcast %67 : vector<8x1x32xf32> to vector<8x8x32xf32>
    %69 = arith.mulf %68, %62 : vector<8x8x32xf32>
    %70 = vector.shape_cast %69 : vector<8x8x32xf32> to vector<64x32xf32>
    %c0_33 = arith.constant 0 : index
    %c0_34 = arith.constant 0 : index
    %71 = vector.load %arg10[%c0_33, %c0_34] : memref<32x4xf32, #tpu.memory_space<vmem>>, vector<32x4xf32>
    %cst_35 = arith.constant dense<0.000000e+00> : vector<64x4xf32>
    %72 = tpu.matmul %70, %71, %cst_35 {dimension_numbers = #tpu.dot_dimension_numbers<[1], [0], [0], [1], [0, 0, 1, 1], [], []>} : vector<64x32xf32>, vector<32x4xf32>, vector<64x4xf32> -> vector<64x4xf32>
    %73 = vector.shape_cast %72 : vector<64x4xf32> to vector<8x8x4xf32>
    %cst_36 = arith.constant dense<0xFF800000> : vector<8x4xf32>
    %74 = vector.multi_reduction <maximumf>, %73, %cst_36 [1] : vector<8x8x4xf32> to vector<8x4xf32>
    %75 = arith.maximumf %66, %74 : vector<8x4xf32>
    %76 = arith.subf %66, %75 : vector<8x4xf32>
    %77 = math.exp %76 : vector<8x4xf32>
    %78 = vector.shape_cast %75 : vector<8x4xf32> to vector<8x1x4xf32>
    %79 = vector.broadcast %78 : vector<8x1x4xf32> to vector<8x8x4xf32>
    %80 = arith.subf %73, %79 : vector<8x8x4xf32>
    %81 = math.exp %80 : vector<8x8x4xf32>
    %c0_37 = arith.constant 0 : index
    %c0_38 = arith.constant 0 : index
    %82 = vector.load %arg12[%c0_37, %c0_38] : memref<8x4xf32, #tpu.memory_space<vmem>>, vector<8x4xf32>
    %83 = vector.shape_cast %82 : vector<8x4xf32> to vector<1x8x4xf32>
    %84 = vector.broadcast %83 : vector<1x8x4xf32> to vector<8x8x4xf32>
    %85 = arith.mulf %81, %84 : vector<8x8x4xf32>
    %cst_39 = arith.constant dense<0.000000e+00> : vector<8x4xf32>
    %86 = vector.multi_reduction <add>, %85, %cst_39 [1] : vector<8x8x4xf32> to vector<8x4xf32>
    %87 = arith.addf %77, %86 : vector<8x4xf32>
    %88 = tpu.reciprocal %87 : vector<8x4xf32> -> vector<8x4xf32>
    %89 = arith.mulf %77, %88 : vector<8x4xf32>
    %90 = vector.shape_cast %88 : vector<8x4xf32> to vector<8x1x4xf32>
    %91 = vector.broadcast %90 : vector<8x1x4xf32> to vector<8x8x4xf32>
    %92 = arith.mulf %85, %91 : vector<8x8x4xf32>
    %c0_40 = arith.constant 0 : index
    %c0_41 = arith.constant 0 : index
    %93 = vector.load %arg11[%c0_40, %c0_41] : memref<4x32xf32, #tpu.memory_space<vmem>>, vector<4x32xf32>
    %cst_42 = arith.constant dense<0.000000e+00> : vector<8x32xf32>
    %94 = tpu.matmul %89, %93, %cst_42 {dimension_numbers = #tpu.dot_dimension_numbers<[1], [0], [0], [1], [0, 0, 1, 1], [], []>} : vector<8x4xf32>, vector<4x32xf32>, vector<8x32xf32> -> vector<8x32xf32>
    %95 = arith.mulf %94, %61 : vector<8x32xf32>
    %96 = vector.shape_cast %92 : vector<8x8x4xf32> to vector<64x4xf32>
    %c0_43 = arith.constant 0 : index
    %c0_44 = arith.constant 0 : index
    %97 = vector.load %arg11[%c0_43, %c0_44] : memref<4x32xf32, #tpu.memory_space<vmem>>, vector<4x32xf32>
    %cst_45 = arith.constant dense<0.000000e+00> : vector<64x32xf32>
    %98 = tpu.matmul %96, %97, %cst_45 {dimension_numbers = #tpu.dot_dimension_numbers<[1], [0], [0], [1], [0, 0, 1, 1], [], []>} : vector<64x4xf32>, vector<4x32xf32>, vector<64x32xf32> -> vector<64x32xf32>
    %99 = vector.shape_cast %98 : vector<64x32xf32> to vector<8x8x32xf32>
    %100 = arith.mulf %99, %63 : vector<8x8x32xf32>
    %cst_46 = arith.constant dense<0.000000e+00> : vector<8x32xf32>
    %101 = vector.multi_reduction <add>, %100, %cst_46 [1] : vector<8x8x32xf32> to vector<8x32xf32>
    %102 = arith.addf %95, %101 : vector<8x32xf32>
    %c0_47 = arith.constant 0 : index
    %c0_48 = arith.constant 0 : index
    %103 = vector.load %arg7[%c0_47, %c0_48] : memref<32x32xf32, #tpu.memory_space<vmem>>, vector<32x32xf32>
    %cst_49 = arith.constant dense<0.000000e+00> : vector<8x32xf32>
    %104 = tpu.matmul %102, %103, %cst_49 {dimension_numbers = #tpu.dot_dimension_numbers<[1], [0], [0], [1], [0, 0, 1, 1], [], []>} : vector<8x32xf32>, vector<32x32xf32>, vector<8x32xf32> -> vector<8x32xf32>
    %105 = vector.broadcast %4 : vector<1x32xf32> to vector<8x32xf32>
    %106 = arith.addf %104, %105 : vector<8x32xf32>
    %107 = arith.addf %0, %106 : vector<8x32xf32>
    %cst_50 = arith.constant dense<0.000000e+00> : vector<8xf32>
    %108 = vector.multi_reduction <add>, %107, %cst_50 [1] : vector<8x32xf32> to vector<8xf32>
    %109 = vector.shape_cast %108 : vector<8xf32> to vector<8x1xf32>
    %cst_51 = arith.constant 3.200000e+01 : f32
    %110 = vector.broadcast %cst_51 : f32 to vector<8x1xf32>
    %111 = arith.divf %109, %110 : vector<8x1xf32>
    %112 = vector.broadcast %111 : vector<8x1xf32> to vector<8x32xf32>
    %113 = arith.subf %107, %112 : vector<8x32xf32>
    %114 = arith.mulf %113, %113 : vector<8x32xf32>
    %cst_52 = arith.constant dense<0.000000e+00> : vector<8xf32>
    %115 = vector.multi_reduction <add>, %114, %cst_52 [1] : vector<8x32xf32> to vector<8xf32>
    %116 = vector.shape_cast %115 : vector<8xf32> to vector<8x1xf32>
    %cst_53 = arith.constant 3.200000e+01 : f32
    %117 = vector.broadcast %cst_53 : f32 to vector<8x1xf32>
    %118 = arith.divf %116, %117 : vector<8x1xf32>
    %cst_54 = arith.constant 9.99999974E-6 : f32
    %119 = vector.broadcast %cst_54 : f32 to vector<8x1xf32>
    %120 = arith.addf %118, %119 : vector<8x1xf32>
    %121 = math.rsqrt %120 : vector<8x1xf32>
    %122 = vector.broadcast %121 : vector<8x1xf32> to vector<8x32xf32>
    %123 = arith.mulf %113, %122 : vector<8x32xf32>
    %124 = vector.broadcast %5 : vector<1x32xf32> to vector<8x32xf32>
    %125 = arith.mulf %123, %124 : vector<8x32xf32>
    %126 = vector.broadcast %6 : vector<1x32xf32> to vector<8x32xf32>
    %127 = arith.addf %125, %126 : vector<8x32xf32>
    %c0_55 = arith.constant 0 : index
    %c0_56 = arith.constant 0 : index
    %128 = vector.load %arg8[%c0_55, %c0_56] : memref<32x128xf32, #tpu.memory_space<vmem>>, vector<32x128xf32>
    %cst_57 = arith.constant dense<0.000000e+00> : vector<8x128xf32>
    %129 = tpu.matmul %127, %128, %cst_57 {dimension_numbers = #tpu.dot_dimension_numbers<[1], [0], [0], [1], [0, 0, 1, 1], [], []>} : vector<8x32xf32>, vector<32x128xf32>, vector<8x128xf32> -> vector<8x128xf32>
    %c0_58 = arith.constant 0 : index
    %c0_59 = arith.constant 0 : index
    %130 = vector.load %arg4[%c0_58, %c0_59] : memref<1x128xf32, #tpu.memory_space<vmem>>, vector<1x128xf32>
    %131 = vector.broadcast %130 : vector<1x128xf32> to vector<8x128xf32>
    %132 = arith.addf %129, %131 : vector<8x128xf32>
    %cst_60 = arith.constant 5.000000e-01 : f32
    %133 = vector.broadcast %cst_60 : f32 to vector<8x128xf32>
    %134 = arith.mulf %133, %132 : vector<8x128xf32>
    %cst_61 = arith.constant 0.707106769 : f32
    %135 = vector.broadcast %cst_61 : f32 to vector<8x128xf32>
    %136 = arith.mulf %132, %135 : vector<8x128xf32>
    %cst_62 = arith.constant 0.000000e+00 : f32
    %137 = vector.broadcast %cst_62 : f32 to vector<8x128xf32>
    %138 = arith.cmpf oge, %136, %137 : vector<8x128xf32>
    %cst_63 = arith.constant 1.000000e+00 : f32
    %cst_64 = arith.constant -1.000000e+00 : f32
    %139 = vector.broadcast %cst_63 : f32 to vector<8x128xf32>
    %140 = vector.broadcast %cst_64 : f32 to vector<8x128xf32>
    %141 = arith.select %138, %139, %140 : vector<8x128xi1>, vector<8x128xf32>
    %142 = math.absf %136 : vector<8x128xf32>
    %cst_65 = arith.constant 0.327591091 : f32
    %143 = vector.broadcast %cst_65 : f32 to vector<8x128xf32>
    %144 = arith.mulf %143, %142 : vector<8x128xf32>
    %cst_66 = arith.constant 1.000000e+00 : f32
    %145 = vector.broadcast %cst_66 : f32 to vector<8x128xf32>
    %146 = arith.addf %145, %144 : vector<8x128xf32>
    %cst_67 = arith.constant 1.000000e+00 : f32
    %147 = vector.broadcast %cst_67 : f32 to vector<8x128xf32>
    %148 = arith.divf %147, %146 : vector<8x128xf32>
    %cst_68 = arith.constant 1.06140542 : f32
    %149 = vector.broadcast %cst_68 : f32 to vector<8x128xf32>
    %150 = arith.mulf %149, %148 : vector<8x128xf32>
    %cst_69 = arith.constant -1.45315206 : f32
    %151 = vector.broadcast %cst_69 : f32 to vector<8x128xf32>
    %152 = arith.addf %150, %151 : vector<8x128xf32>
    %153 = arith.mulf %152, %148 : vector<8x128xf32>
    %cst_70 = arith.constant 1.42141378 : f32
    %154 = vector.broadcast %cst_70 : f32 to vector<8x128xf32>
    %155 = arith.addf %153, %154 : vector<8x128xf32>
    %156 = arith.mulf %155, %148 : vector<8x128xf32>
    %cst_71 = arith.constant -0.284496725 : f32
    %157 = vector.broadcast %cst_71 : f32 to vector<8x128xf32>
    %158 = arith.addf %156, %157 : vector<8x128xf32>
    %159 = arith.mulf %158, %148 : vector<8x128xf32>
    %cst_72 = arith.constant 0.254829586 : f32
    %160 = vector.broadcast %cst_72 : f32 to vector<8x128xf32>
    %161 = arith.addf %159, %160 : vector<8x128xf32>
    %162 = arith.mulf %161, %148 : vector<8x128xf32>
    %cst_73 = arith.constant 0.000000e+00 : f32
    %163 = vector.broadcast %cst_73 : f32 to vector<8x128xf32>
    %164 = arith.subf %163, %142 : vector<8x128xf32>
    %165 = arith.mulf %164, %142 : vector<8x128xf32>
    %166 = math.exp %165 : vector<8x128xf32>
    %167 = arith.mulf %162, %166 : vector<8x128xf32>
    %cst_74 = arith.constant 1.000000e+00 : f32
    %168 = vector.broadcast %cst_74 : f32 to vector<8x128xf32>
    %169 = arith.subf %168, %167 : vector<8x128xf32>
    %170 = arith.mulf %141, %169 : vector<8x128xf32>
    %cst_75 = arith.constant 1.000000e+00 : f32
    %171 = vector.broadcast %cst_75 : f32 to vector<8x128xf32>
    %172 = arith.addf %171, %170 : vector<8x128xf32>
    %173 = arith.mulf %134, %172 : vector<8x128xf32>
    %c0_76 = arith.constant 0 : index
    %c0_77 = arith.constant 0 : index
    %174 = vector.load %arg9[%c0_76, %c0_77] : memref<128x32xf32, #tpu.memory_space<vmem>>, vector<128x32xf32>
    %cst_78 = arith.constant dense<0.000000e+00> : vector<8x32xf32>
    %175 = tpu.matmul %173, %174, %cst_78 {dimension_numbers = #tpu.dot_dimension_numbers<[1], [0], [0], [1], [0, 0, 1, 1], [], []>} : vector<8x128xf32>, vector<128x32xf32>, vector<8x32xf32> -> vector<8x32xf32>
    %176 = vector.broadcast %7 : vector<1x32xf32> to vector<8x32xf32>
    %177 = arith.addf %175, %176 : vector<8x32xf32>
    %178 = arith.addf %107, %177 : vector<8x32xf32>
    %c0_79 = arith.constant 0 : index
    %c0_80 = arith.constant 0 : index
    %179 = vector.load %arg13[%c0_79, %c0_80] : memref<8x32xf32, #tpu.memory_space<vmem>>, vector<8x32xf32>
    tpu.vector_store %arg13[%c0_79, %c0_80], %178 {strides = array<i32>} : memref<8x32xf32, #tpu.memory_space<vmem>>, vector<8x32xf32>,
    return
  }
  func.func @transform_0(%arg0: i32) -> (i32, i32) {
    %c0_i32 = arith.constant 0 : i32
    %c0_i32_0 = arith.constant 0 : i32
    return %arg0, %c0_i32 : i32, i32
  }
  func.func @transform_1(%arg0: i32) -> (i32, i32, i32) {
    %c0_i32 = arith.constant 0 : i32
    %c0_i32_0 = arith.constant 0 : i32
    %c0_i32_1 = arith.constant 0 : i32
    return %arg0, %c0_i32, %c0_i32_0 : i32, i32, i32
  }
  func.func @transform_2(%arg0: i32) -> (i32, i32) {
    %c0_i32 = arith.constant 0 : i32
    %c0_i32_0 = arith.constant 0 : i32
    %c0_i32_1 = arith.constant 0 : i32
    return %c0_i32, %c0_i32_0 : i32, i32
  }
  func.func @transform_3(%arg0: i32) -> (i32, i32) {
    %c0_i32 = arith.constant 0 : i32
    %c0_i32_0 = arith.constant 0 : i32
    %c0_i32_1 = arith.constant 0 : i32
    return %c0_i32, %c0_i32_0 : i32, i32
  }
  func.func @transform_4(%arg0: i32) -> (i32, i32) {
    %c0_i32 = arith.constant 0 : i32
    %c0_i32_0 = arith.constant 0 : i32
    %c0_i32_1 = arith.constant 0 : i32
    return %c0_i32, %c0_i32_0 : i32, i32
  }
  func.func @transform_5(%arg0: i32) -> (i32, i32) {
    %c0_i32 = arith.constant 0 : i32
    %c0_i32_0 = arith.constant 0 : i32
    %c0_i32_1 = arith.constant 0 : i32
    return %c0_i32, %c0_i32_0 : i32, i32
  }
  func.func @transform_6(%arg0: i32) -> (i32, i32) {
    %c0_i32 = arith.constant 0 : i32
    %c0_i32_0 = arith.constant 0 : i32
    %c0_i32_1 = arith.constant 0 : i32
    return %c0_i32, %c0_i32_0 : i32, i32
  }
  func.func @transform_7(%arg0: i32) -> (i32, i32) {
    %c0_i32 = arith.constant 0 : i32
    %c0_i32_0 = arith.constant 0 : i32
    %c0_i32_1 = arith.constant 0 : i32
    return %c0_i32, %c0_i32_0 : i32, i32
  }
  func.func @transform_8(%arg0: i32) -> (i32, i32) {
    %c0_i32 = arith.constant 0 : i32
    %c0_i32_0 = arith.constant 0 : i32
    %c0_i32_1 = arith.constant 0 : i32
    return %c0_i32, %c0_i32_0 : i32, i32
  }
  func.func @transform_9(%arg0: i32) -> (i32, i32) {
    %c0_i32 = arith.constant 0 : i32
    %c0_i32_0 = arith.constant 0 : i32
    %c0_i32_1 = arith.constant 0 : i32
    return %c0_i32, %c0_i32_0 : i32, i32
  }
  func.func @transform_10(%arg0: i32) -> (i32, i32) {
    %c0_i32 = arith.constant 0 : i32
    %c0_i32_0 = arith.constant 0 : i32
    %c0_i32_1 = arith.constant 0 : i32
    return %c0_i32, %c0_i32_0 : i32, i32
  }
  func.func @transform_11(%arg0: i32) -> (i32, i32) {
    %c0_i32 = arith.constant 0 : i32
    %c0_i32_0 = arith.constant 0 : i32
    %c0_i32_1 = arith.constant 0 : i32
    return %c0_i32, %c0_i32_0 : i32, i32
  }
  func.func @transform_12(%arg0: i32) -> (i32, i32) {
    %c0_i32 = arith.constant 0 : i32
    %c0_i32_0 = arith.constant 0 : i32
    return %arg0, %c0_i32 : i32, i32
  }
}

module attributes {stable_mosaic.version = 11 : i64} {
  func.func @_block_cls_kernel(%arg0: i32, %arg1: memref<8x32xf32, #tpu.memory_space<vmem>>, %arg2: memref<8x8x32xf32, #tpu.memory_space<vmem>>, %arg3: memref<6x32xf32, #tpu.memory_space<vmem>>, %arg4: memref<1x128xf32, #tpu.memory_space<vmem>>, %arg5: memref<32x32xf32, #tpu.memory_space<vmem>>, %arg6: memref<32x64xf32, #tpu.memory_space<vmem>>, %arg7: memref<32x32xf32, #tpu.memory_space<vmem>>, %arg8: memref<32x128xf32, #tpu.memory_space<vmem>>, %arg9: memref<128x32xf32, #tpu.memory_space<vmem>>, %arg10: memref<32x4xf32, #tpu.memory_space<vmem>>, %arg11: memref<4x32xf32, #tpu.memory_space<vmem>>, %arg12: memref<8x4xf32, #tpu.memory_space<vmem>>, %arg13: memref<8x32xf32, #tpu.memory_space<vmem>>) attributes {dimension_semantics = [#tpu.dimension_semantics<parallel>], iteration_bounds = array<i64: 2>, scalar_prefetch = 0 : i64, scratch_operands = 0 : i64, tpu.core_type = #tpu.core_type<tc>, window_params = [{transform_indices = @transform_0, window_bounds = array<i64: 8, 32>}, {transform_indices = @transform_1, window_bounds = array<i64: 8, 8, 32>}, {pipeline_mode = #tpu.pipeline_mode<synchronous>, transform_indices = @transform_2, window_bounds = array<i64: 6, 32>}, {pipeline_mode = #tpu.pipeline_mode<synchronous>, transform_indices = @transform_3, window_bounds = array<i64: 1, 128>}, {pipeline_mode = #tpu.pipeline_mode<synchronous>, transform_indices = @transform_4, window_bounds = array<i64: 32, 32>}, {pipeline_mode = #tpu.pipeline_mode<synchronous>, transform_indices = @transform_5, window_bounds = array<i64: 32, 64>}, {pipeline_mode = #tpu.pipeline_mode<synchronous>, transform_indices = @transform_6, window_bounds = array<i64: 32, 32>}, {pipeline_mode = #tpu.pipeline_mode<synchronous>, transform_indices = @transform_7, window_bounds = array<i64: 32, 128>}, {pipeline_mode = #tpu.pipeline_mode<synchronous>, transform_indices = @transform_8, window_bounds = array<i64: 128, 32>}, {pipeline_mode = #tpu.pipeline_mode<synchronous>, transform_indices = @transform_9, window_bounds = array<i64: 32, 4>}, {pipeline_mode = #tpu.pipeline_mode<synchronous>, transform_indices = @transform_10, window_bounds = array<i64: 4, 32>}, {pipeline_mode = #tpu.pipeline_mode<synchronous>, transform_indices = @transform_11, window_bounds = array<i64: 8, 4>}, {transform_indices = @transform_12, window_bounds = array<i64: 8, 32>}]} {
    %c0 = arith.constant 0 : index
    %c0_0 = arith.constant 0 : index
    %0 = vector.load %arg1[%c0, %c0_0] : memref<8x32xf32, #tpu.memory_space<vmem>>, vector<8x32xf32>
    %c0_1 = arith.constant 0 : index
    %c0_2 = arith.constant 0 : index
    %c0_3 = arith.constant 0 : index
    %1 = vector.load %arg2[%c0_1, %c0_2, %c0_3] : memref<8x8x32xf32, #tpu.memory_space<vmem>>, vector<8x8x32xf32>
    %c0_4 = arith.constant 0 : index
    %c0_5 = arith.constant 0 : index
    %2 = vector.load %arg3[%c0_4, %c0_5] : memref<6x32xf32, #tpu.memory_space<vmem>>, vector<1x32xf32>
    %c1 = arith.constant 1 : index
    %c0_6 = arith.constant 0 : index
    %3 = vector.load %arg3[%c1, %c0_6] : memref<6x32xf32, #tpu.memory_space<vmem>>, vector<1x32xf32>
    %c2 = arith.constant 2 : index
    %c0_7 = arith.constant 0 : index
    %4 = vector.load %arg3[%c2, %c0_7] : memref<6x32xf32, #tpu.memory_space<vmem>>, vector<1x32xf32>
    %c3 = arith.constant 3 : index
    %c0_8 = arith.constant 0 : index
    %5 = vector.load %arg3[%c3, %c0_8] : memref<6x32xf32, #tpu.memory_space<vmem>>, vector<1x32xf32>
    %c4 = arith.constant 4 : index
    %c0_9 = arith.constant 0 : index
    %6 = vector.load %arg3[%c4, %c0_9] : memref<6x32xf32, #tpu.memory_space<vmem>>, vector<1x32xf32>
    %c5 = arith.constant 5 : index
    %c0_10 = arith.constant 0 : index
    %7 = vector.load %arg3[%c5, %c0_10] : memref<6x32xf32, #tpu.memory_space<vmem>>, vector<1x32xf32>
    %cst = arith.constant dense<0.000000e+00> : vector<8xf32>
    %8 = vector.multi_reduction <add>, %0, %cst [1] : vector<8x32xf32> to vector<8xf32>
    %9 = vector.shape_cast %8 : vector<8xf32> to vector<8x1xf32>
    %cst_11 = arith.constant 3.200000e+01 : f32
    %10 = vector.broadcast %cst_11 : f32 to vector<8x1xf32>
    %11 = arith.divf %9, %10 : vector<8x1xf32>
    %12 = vector.broadcast %11 : vector<8x1xf32> to vector<8x32xf32>
    %13 = arith.subf %0, %12 : vector<8x32xf32>
    %14 = arith.mulf %13, %13 : vector<8x32xf32>
    %cst_12 = arith.constant dense<0.000000e+00> : vector<8xf32>
    %15 = vector.multi_reduction <add>, %14, %cst_12 [1] : vector<8x32xf32> to vector<8xf32>
    %16 = vector.shape_cast %15 : vector<8xf32> to vector<8x1xf32>
    %cst_13 = arith.constant 3.200000e+01 : f32
    %17 = vector.broadcast %cst_13 : f32 to vector<8x1xf32>
    %18 = arith.divf %16, %17 : vector<8x1xf32>
    %cst_14 = arith.constant 9.99999974E-6 : f32
    %19 = vector.broadcast %cst_14 : f32 to vector<8x1xf32>
    %20 = arith.addf %18, %19 : vector<8x1xf32>
    %21 = math.rsqrt %20 : vector<8x1xf32>
    %22 = vector.broadcast %21 : vector<8x1xf32> to vector<8x32xf32>
    %23 = arith.mulf %13, %22 : vector<8x32xf32>
    %24 = vector.broadcast %2 : vector<1x32xf32> to vector<8x32xf32>
    %25 = arith.mulf %23, %24 : vector<8x32xf32>
    %26 = vector.broadcast %3 : vector<1x32xf32> to vector<8x32xf32>
    %27 = arith.addf %25, %26 : vector<8x32xf32>
    %cst_15 = arith.constant dense<0.000000e+00> : vector<8x8xf32>
    %28 = vector.multi_reduction <add>, %1, %cst_15 [2] : vector<8x8x32xf32> to vector<8x8xf32>
    %29 = vector.shape_cast %28 : vector<8x8xf32> to vector<8x8x1xf32>
    %cst_16 = arith.constant 3.200000e+01 : f32
    %30 = vector.broadcast %cst_16 : f32 to vector<8x8x1xf32>
    %31 = arith.divf %29, %30 : vector<8x8x1xf32>
    %32 = vector.broadcast %31 : vector<8x8x1xf32> to vector<8x8x32xf32>
    %33 = arith.subf %1, %32 : vector<8x8x32xf32>
    %34 = arith.mulf %33, %33 : vector<8x8x32xf32>
    %cst_17 = arith.constant dense<0.000000e+00> : vector<8x8xf32>
    %35 = vector.multi_reduction <add>, %34, %cst_17 [2] : vector<8x8x32xf32> to vector<8x8xf32>
    %36 = vector.shape_cast %35 : vector<8x8xf32> to vector<8x8x1xf32>
    %cst_18 = arith.constant 3.200000e+01 : f32
    %37 = vector.broadcast %cst_18 : f32 to vector<8x8x1xf32>
    %38 = arith.divf %36, %37 : vector<8x8x1xf32>
    %cst_19 = arith.constant 9.99999974E-6 : f32
    %39 = vector.broadcast %cst_19 : f32 to vector<8x8x1xf32>
    %40 = arith.addf %38, %39 : vector<8x8x1xf32>
    %41 = math.rsqrt %40 : vector<8x8x1xf32>
    %42 = vector.broadcast %41 : vector<8x8x1xf32> to vector<8x8x32xf32>
    %43 = arith.mulf %33, %42 : vector<8x8x32xf32>
    %44 = vector.shape_cast %2 : vector<1x32xf32> to vector<1x1x32xf32>
    %45 = vector.broadcast %44 : vector<1x1x32xf32> to vector<8x8x32xf32>
    %46 = arith.mulf %43, %45 : vector<8x8x32xf32>
    %47 = vector.shape_cast %3 : vector<1x32xf32> to vector<1x1x32xf32>
    %48 = vector.broadcast %47 : vector<1x1x32xf32> to vector<8x8x32xf32>
    %49 = arith.addf %46, %48 : vector<8x8x32xf32>
    %c0_20 = arith.constant 0 : index
    %c0_21 = arith.constant 0 : index
    %50 = vector.load %arg5[%c0_20, %c0_21] : memref<32x32xf32, #tpu.memory_space<vmem>>, vector<32x32xf32>
    %cst_22 = arith.constant dense<0.000000e+00> : vector<8x32xf32>
    %51 = tpu.matmul %27, %50, %cst_22 {dimension_numbers = #tpu.dot_dimension_numbers<[1], [0], [0], [1], [0, 0, 1, 1], [], []>} : vector<8x32xf32>, vector<32x32xf32>, vector<8x32xf32> -> vector<8x32xf32>
    %cst_23 = arith.constant 0.353553385 : f32
    %52 = vector.broadcast %cst_23 : f32 to vector<8x32xf32>
    %53 = arith.mulf %51, %52 : vector<8x32xf32>
    %c0_24 = arith.constant 0 : index
    %c0_25 = arith.constant 0 : index
    %54 = vector.load %arg6[%c0_24, %c0_25] : memref<32x64xf32, #tpu.memory_space<vmem>>, vector<32x64xf32>
    %cst_26 = arith.constant dense<0.000000e+00> : vector<8x64xf32>
    %55 = tpu.matmul %27, %54, %cst_26 {dimension_numbers = #tpu.dot_dimension_numbers<[1], [0], [0], [1], [0, 0, 1, 1], [], []>} : vector<8x32xf32>, vector<32x64xf32>, vector<8x64xf32> -> vector<8x64xf32>
    %56 = vector.shape_cast %49 : vector<8x8x32xf32> to vector<64x32xf32>
    %c0_27 = arith.constant 0 : index
    %c0_28 = arith.constant 0 : index
    %57 = vector.load %arg6[%c0_27, %c0_28] : memref<32x64xf32, #tpu.memory_space<vmem>>, vector<32x64xf32>
    %cst_29 = arith.constant dense<0.000000e+00> : vector<64x64xf32>
    %58 = tpu.matmul %56, %57, %cst_29 {dimension_numbers = #tpu.dot_dimension_numbers<[1], [0], [0], [1], [0, 0, 1, 1], [], []>} : vector<64x32xf32>, vector<32x64xf32>, vector<64x64xf32> -> vector<64x64xf32>
    %59 = vector.shape_cast %58 : vector<64x64xf32> to vector<8x8x64xf32>
    %60 = vector.extract_strided_slice %55 {offsets = [0, 0], sizes = [8, 32], strides = [1, 1]} : vector<8x64xf32> to vector<8x32xf32>
    %61 = vector.extract_strided_slice %55 {offsets = [0, 32], sizes = [8, 32], strides = [1, 1]} : vector<8x64xf32> to vector<8x32xf32>
    %62 = vector.extract_strided_slice %59 {offsets = [0, 0, 0], sizes = [8, 8, 32], strides = [1, 1, 1]} : vector<8x8x64xf32> to vector<8x8x32xf32>
    %63 = vector.extract_strided_slice %59 {offsets = [0, 0, 32], sizes = [8, 8, 32], strides = [1, 1, 1]} : vector<8x8x64xf32> to vector<8x8x32xf32>
    %64 = arith.mulf %53, %60 : vector<8x32xf32>
    %c0_30 = arith.constant 0 : index
    %c0_31 = arith.constant 0 : index
    %65 = vector.load %arg10[%c0_30, %c0_31] : memref<32x4xf32, #tpu.memory_space<vmem>>, vector<32x4xf32>
    %cst_32 = arith.constant dense<0.000000e+00> : vector<8x4xf32>
    %66 = tpu.matmul %64, %65, %cst_32 {dimension_numbers = #tpu.dot_dimension_numbers<[1], [0], [0], [1], [0, 0, 1, 1], [], []>} : vector<8x32xf32>, vector<32x4xf32>, vector<8x4xf32> -> vector<8x4xf32>
    %67 = vector.shape_cast %53 : vector<8x32xf32> to vector<8x1x32xf32>
    %68 = vector.broadcast %67 : vector<8x1x32xf32> to vector<8x8x32xf32>
    %69 = arith.mulf %68, %62 : vector<8x8x32xf32>
    %70 = vector.shape_cast %69 : vector<8x8x32xf32> to vector<64x32xf32>
    %c0_33 = arith.constant 0 : index
    %c0_34 = arith.constant 0 : index
    %71 = vector.load %arg10[%c0_33, %c0_34] : memref<32x4xf32, #tpu.memory_space<vmem>>, vector<32x4xf32>
    %cst_35 = arith.constant dense<0.000000e+00> : vector<64x4xf32>
    %72 = tpu.matmul %70, %71, %cst_35 {dimension_numbers = #tpu.dot_dimension_numbers<[1], [0], [0], [1], [0, 0, 1, 1], [], []>} : vector<64x32xf32>, vector<32x4xf32>, vector<64x4xf32> -> vector<64x4xf32>
    %73 = vector.shape_cast %72 : vector<64x4xf32> to vector<8x8x4xf32>
    %cst_36 = arith.constant dense<0xFF800000> : vector<8x4xf32>
    %74 = vector.multi_reduction <maximumf>, %73, %cst_36 [1] : vector<8x8x4xf32> to vector<8x4xf32>
    %75 = arith.maximumf %66, %74 : vector<8x4xf32>
    %76 = arith.subf %66, %75 : vector<8x4xf32>
    %77 = math.exp %76 : vector<8x4xf32>
    %78 = vector.shape_cast %75 : vector<8x4xf32> to vector<8x1x4xf32>
    %79 = vector.broadcast %78 : vector<8x1x4xf32> to vector<8x8x4xf32>
    %80 = arith.subf %73, %79 : vector<8x8x4xf32>
    %81 = math.exp %80 : vector<8x8x4xf32>
    %c0_37 = arith.constant 0 : index
    %c0_38 = arith.constant 0 : index
    %82 = vector.load %arg12[%c0_37, %c0_38] : memref<8x4xf32, #tpu.memory_space<vmem>>, vector<8x4xf32>
    %83 = vector.shape_cast %82 : vector<8x4xf32> to vector<1x8x4xf32>
    %84 = vector.broadcast %83 : vector<1x8x4xf32> to vector<8x8x4xf32>
    %85 = arith.mulf %81, %84 : vector<8x8x4xf32>
    %cst_39 = arith.constant dense<0.000000e+00> : vector<8x4xf32>
    %86 = vector.multi_reduction <add>, %85, %cst_39 [1] : vector<8x8x4xf32> to vector<8x4xf32>
    %87 = arith.addf %77, %86 : vector<8x4xf32>
    %88 = tpu.reciprocal %87 : vector<8x4xf32> -> vector<8x4xf32>
    %89 = arith.mulf %77, %88 : vector<8x4xf32>
    %90 = vector.shape_cast %88 : vector<8x4xf32> to vector<8x1x4xf32>
    %91 = vector.broadcast %90 : vector<8x1x4xf32> to vector<8x8x4xf32>
    %92 = arith.mulf %85, %91 : vector<8x8x4xf32>
    %c0_40 = arith.constant 0 : index
    %c0_41 = arith.constant 0 : index
    %93 = vector.load %arg11[%c0_40, %c0_41] : memref<4x32xf32, #tpu.memory_space<vmem>>, vector<4x32xf32>
    %cst_42 = arith.constant dense<0.000000e+00> : vector<8x32xf32>
    %94 = tpu.matmul %89, %93, %cst_42 {dimension_numbers = #tpu.dot_dimension_numbers<[1], [0], [0], [1], [0, 0, 1, 1], [], []>} : vector<8x4xf32>, vector<4x32xf32>, vector<8x32xf32> -> vector<8x32xf32>
    %95 = arith.mulf %94, %61 : vector<8x32xf32>
    %96 = vector.shape_cast %92 : vector<8x8x4xf32> to vector<64x4xf32>
    %c0_43 = arith.constant 0 : index
    %c0_44 = arith.constant 0 : index
    %97 = vector.load %arg11[%c0_43, %c0_44] : memref<4x32xf32, #tpu.memory_space<vmem>>, vector<4x32xf32>
    %cst_45 = arith.constant dense<0.000000e+00> : vector<64x32xf32>
    %98 = tpu.matmul %96, %97, %cst_45 {dimension_numbers = #tpu.dot_dimension_numbers<[1], [0], [0], [1], [0, 0, 1, 1], [], []>} : vector<64x4xf32>, vector<4x32xf32>, vector<64x32xf32> -> vector<64x32xf32>
    %99 = vector.shape_cast %98 : vector<64x32xf32> to vector<8x8x32xf32>
    %100 = arith.mulf %99, %63 : vector<8x8x32xf32>
    %cst_46 = arith.constant dense<0.000000e+00> : vector<8x32xf32>
    %101 = vector.multi_reduction <add>, %100, %cst_46 [1] : vector<8x8x32xf32> to vector<8x32xf32>
    %102 = arith.addf %95, %101 : vector<8x32xf32>
    %c0_47 = arith.constant 0 : index
    %c0_48 = arith.constant 0 : index
    %103 = vector.load %arg7[%c0_47, %c0_48] : memref<32x32xf32, #tpu.memory_space<vmem>>, vector<32x32xf32>
    %cst_49 = arith.constant dense<0.000000e+00> : vector<8x32xf32>
    %104 = tpu.matmul %102, %103, %cst_49 {dimension_numbers = #tpu.dot_dimension_numbers<[1], [0], [0], [1], [0, 0, 1, 1], [], []>} : vector<8x32xf32>, vector<32x32xf32>, vector<8x32xf32> -> vector<8x32xf32>
    %105 = vector.broadcast %4 : vector<1x32xf32> to vector<8x32xf32>
    %106 = arith.addf %104, %105 : vector<8x32xf32>
    %107 = arith.addf %0, %106 : vector<8x32xf32>
    %cst_50 = arith.constant dense<0.000000e+00> : vector<8xf32>
    %108 = vector.multi_reduction <add>, %107, %cst_50 [1] : vector<8x32xf32> to vector<8xf32>
    %109 = vector.shape_cast %108 : vector<8xf32> to vector<8x1xf32>
    %cst_51 = arith.constant 3.200000e+01 : f32
    %110 = vector.broadcast %cst_51 : f32 to vector<8x1xf32>
    %111 = arith.divf %109, %110 : vector<8x1xf32>
    %112 = vector.broadcast %111 : vector<8x1xf32> to vector<8x32xf32>
    %113 = arith.subf %107, %112 : vector<8x32xf32>
    %114 = arith.mulf %113, %113 : vector<8x32xf32>
    %cst_52 = arith.constant dense<0.000000e+00> : vector<8xf32>
    %115 = vector.multi_reduction <add>, %114, %cst_52 [1] : vector<8x32xf32> to vector<8xf32>
    %116 = vector.shape_cast %115 : vector<8xf32> to vector<8x1xf32>
    %cst_53 = arith.constant 3.200000e+01 : f32
    %117 = vector.broadcast %cst_53 : f32 to vector<8x1xf32>
    %118 = arith.divf %116, %117 : vector<8x1xf32>
    %cst_54 = arith.constant 9.99999974E-6 : f32
    %119 = vector.broadcast %cst_54 : f32 to vector<8x1xf32>
    %120 = arith.addf %118, %119 : vector<8x1xf32>
    %121 = math.rsqrt %120 : vector<8x1xf32>
    %122 = vector.broadcast %121 : vector<8x1xf32> to vector<8x32xf32>
    %123 = arith.mulf %113, %122 : vector<8x32xf32>
    %124 = vector.broadcast %5 : vector<1x32xf32> to vector<8x32xf32>
    %125 = arith.mulf %123, %124 : vector<8x32xf32>
    %126 = vector.broadcast %6 : vector<1x32xf32> to vector<8x32xf32>
    %127 = arith.addf %125, %126 : vector<8x32xf32>
    %c0_55 = arith.constant 0 : index
    %c0_56 = arith.constant 0 : index
    %128 = vector.load %arg8[%c0_55, %c0_56] : memref<32x128xf32, #tpu.memory_space<vmem>>, vector<32x128xf32>
    %cst_57 = arith.constant dense<0.000000e+00> : vector<8x128xf32>
    %129 = tpu.matmul %127, %128, %cst_57 {dimension_numbers = #tpu.dot_dimension_numbers<[1], [0], [0], [1], [0, 0, 1, 1], [], []>} : vector<8x32xf32>, vector<32x128xf32>, vector<8x128xf32> -> vector<8x128xf32>
    %c0_58 = arith.constant 0 : index
    %c0_59 = arith.constant 0 : index
    %130 = vector.load %arg4[%c0_58, %c0_59] : memref<1x128xf32, #tpu.memory_space<vmem>>, vector<1x128xf32>
    %131 = vector.broadcast %130 : vector<1x128xf32> to vector<8x128xf32>
    %132 = arith.addf %129, %131 : vector<8x128xf32>
    %cst_60 = arith.constant 5.000000e-01 : f32
    %133 = vector.broadcast %cst_60 : f32 to vector<8x128xf32>
    %134 = arith.mulf %133, %132 : vector<8x128xf32>
    %cst_61 = arith.constant 0.707106769 : f32
    %135 = vector.broadcast %cst_61 : f32 to vector<8x128xf32>
    %136 = arith.mulf %132, %135 : vector<8x128xf32>
    %cst_62 = arith.constant 0.000000e+00 : f32
    %137 = vector.broadcast %cst_62 : f32 to vector<8x128xf32>
    %138 = arith.cmpf oge, %136, %137 : vector<8x128xf32>
    %cst_63 = arith.constant 1.000000e+00 : f32
    %cst_64 = arith.constant -1.000000e+00 : f32
    %139 = vector.broadcast %cst_63 : f32 to vector<8x128xf32>
    %140 = vector.broadcast %cst_64 : f32 to vector<8x128xf32>
    %141 = arith.select %138, %139, %140 : vector<8x128xi1>, vector<8x128xf32>
    %142 = math.absf %136 : vector<8x128xf32>
    %cst_65 = arith.constant 0.327591091 : f32
    %143 = vector.broadcast %cst_65 : f32 to vector<8x128xf32>
    %144 = arith.mulf %143, %142 : vector<8x128xf32>
    %cst_66 = arith.constant 1.000000e+00 : f32
    %145 = vector.broadcast %cst_66 : f32 to vector<8x128xf32>
    %146 = arith.addf %145, %144 : vector<8x128xf32>
    %cst_67 = arith.constant 1.000000e+00 : f32
    %147 = vector.broadcast %cst_67 : f32 to vector<8x128xf32>
    %148 = arith.divf %147, %146 : vector<8x128xf32>
    %cst_68 = arith.constant 1.06140542 : f32
    %149 = vector.broadcast %cst_68 : f32 to vector<8x128xf32>
    %150 = arith.mulf %149, %148 : vector<8x128xf32>
    %cst_69 = arith.constant -1.45315206 : f32
    %151 = vector.broadcast %cst_69 : f32 to vector<8x128xf32>
    %152 = arith.addf %150, %151 : vector<8x128xf32>
    %153 = arith.mulf %152, %148 : vector<8x128xf32>
    %cst_70 = arith.constant 1.42141378 : f32
    %154 = vector.broadcast %cst_70 : f32 to vector<8x128xf32>
    %155 = arith.addf %153, %154 : vector<8x128xf32>
    %156 = arith.mulf %155, %148 : vector<8x128xf32>
    %cst_71 = arith.constant -0.284496725 : f32
    %157 = vector.broadcast %cst_71 : f32 to vector<8x128xf32>
    %158 = arith.addf %156, %157 : vector<8x128xf32>
    %159 = arith.mulf %158, %148 : vector<8x128xf32>
    %cst_72 = arith.constant 0.254829586 : f32
    %160 = vector.broadcast %cst_72 : f32 to vector<8x128xf32>
    %161 = arith.addf %159, %160 : vector<8x128xf32>
    %162 = arith.mulf %161, %148 : vector<8x128xf32>
    %cst_73 = arith.constant 0.000000e+00 : f32
    %163 = vector.broadcast %cst_73 : f32 to vector<8x128xf32>
    %164 = arith.subf %163, %142 : vector<8x128xf32>
    %165 = arith.mulf %164, %142 : vector<8x128xf32>
    %166 = math.exp %165 : vector<8x128xf32>
    %167 = arith.mulf %162, %166 : vector<8x128xf32>
    %cst_74 = arith.constant 1.000000e+00 : f32
    %168 = vector.broadcast %cst_74 : f32 to vector<8x128xf32>
    %169 = arith.subf %168, %167 : vector<8x128xf32>
    %170 = arith.mulf %141, %169 : vector<8x128xf32>
    %cst_75 = arith.constant 1.000000e+00 : f32
    %171 = vector.broadcast %cst_75 : f32 to vector<8x128xf32>
    %172 = arith.addf %171, %170 : vector<8x128xf32>
    %173 = arith.mulf %134, %172 : vector<8x128xf32>
    %c0_76 = arith.constant 0 : index
    %c0_77 = arith.constant 0 : index
    %174 = vector.load %arg9[%c0_76, %c0_77] : memref<128x32xf32, #tpu.memory_space<vmem>>, vector<128x32xf32>
    %cst_78 = arith.constant dense<0.000000e+00> : vector<8x32xf32>
    %175 = tpu.matmul %173, %174, %cst_78 {dimension_numbers = #tpu.dot_dimension_numbers<[1], [0], [0], [1], [0, 0, 1, 1], [], []>} : vector<8x128xf32>, vector<128x32xf32>, vector<8x32xf32> -> vector<8x32xf32>
    %176 = vector.broadcast %7 : vector<1x32xf32> to vector<8x32xf32>
    %177 = arith.addf %175, %176 : vector<8x32xf32>
    %178 = arith.addf %107, %177 : vector<8x32xf32>
    %c0_79 = arith.constant 0 : index
    %c0_80 = arith.constant 0 : index
    %179 = vector.load %arg13[%c0_79, %c0_80] : memref<8x32xf32, #tpu.memory_space<vmem>>, vector<8x32xf32>
    tpu.vector_store %arg13[%c0_79, %c0_80], %178 {strides = array<i32>} : memref<8x32xf32, #tpu.memory_space<vmem>>, vector<8x32xf32>,
    return
  }
  func.func @transform_0(%arg0: i32) -> (i32, i32) {
    %c0_i32 = arith.constant 0 : i32
    %c0_i32_0 = arith.constant 0 : i32
    return %arg0, %c0_i32 : i32, i32
  }
  func.func @transform_1(%arg0: i32) -> (i32, i32, i32) {
    %c0_i32 = arith.constant 0 : i32
    %c0_i32_0 = arith.constant 0 : i32
    %c0_i32_1 = arith.constant 0 : i32
    return %arg0, %c0_i32, %c0_i32_0 : i32, i32, i32
  }
  func.func @transform_2(%arg0: i32) -> (i32, i32) {
    %c0_i32 = arith.constant 0 : i32
    %c0_i32_0 = arith.constant 0 : i32
    %c0_i32_1 = arith.constant 0 : i32
    return %c0_i32, %c0_i32_0 : i32, i32
  }
  func.func @transform_3(%arg0: i32) -> (i32, i32) {
    %c0_i32 = arith.constant 0 : i32
    %c0_i32_0 = arith.constant 0 : i32
    %c0_i32_1 = arith.constant 0 : i32
    return %c0_i32, %c0_i32_0 : i32, i32
  }
  func.func @transform_4(%arg0: i32) -> (i32, i32) {
    %c0_i32 = arith.constant 0 : i32
    %c0_i32_0 = arith.constant 0 : i32
    %c0_i32_1 = arith.constant 0 : i32
    return %c0_i32, %c0_i32_0 : i32, i32
  }
  func.func @transform_5(%arg0: i32) -> (i32, i32) {
    %c0_i32 = arith.constant 0 : i32
    %c0_i32_0 = arith.constant 0 : i32
    %c0_i32_1 = arith.constant 0 : i32
    return %c0_i32, %c0_i32_0 : i32, i32
  }
  func.func @transform_6(%arg0: i32) -> (i32, i32) {
    %c0_i32 = arith.constant 0 : i32
    %c0_i32_0 = arith.constant 0 : i32
    %c0_i32_1 = arith.constant 0 : i32
    return %c0_i32, %c0_i32_0 : i32, i32
  }
  func.func @transform_7(%arg0: i32) -> (i32, i32) {
    %c0_i32 = arith.constant 0 : i32
    %c0_i32_0 = arith.constant 0 : i32
    %c0_i32_1 = arith.constant 0 : i32
    return %c0_i32, %c0_i32_0 : i32, i32
  }
  func.func @transform_8(%arg0: i32) -> (i32, i32) {
    %c0_i32 = arith.constant 0 : i32
    %c0_i32_0 = arith.constant 0 : i32
    %c0_i32_1 = arith.constant 0 : i32
    return %c0_i32, %c0_i32_0 : i32, i32
  }
  func.func @transform_9(%arg0: i32) -> (i32, i32) {
    %c0_i32 = arith.constant 0 : i32
    %c0_i32_0 = arith.constant 0 : i32
    %c0_i32_1 = arith.constant 0 : i32
    return %c0_i32, %c0_i32_0 : i32, i32
  }
  func.func @transform_10(%arg0: i32) -> (i32, i32) {
    %c0_i32 = arith.constant 0 : i32
    %c0_i32_0 = arith.constant 0 : i32
    %c0_i32_1 = arith.constant 0 : i32
    return %c0_i32, %c0_i32_0 : i32, i32
  }
  func.func @transform_11(%arg0: i32) -> (i32, i32) {
    %c0_i32 = arith.constant 0 : i32
    %c0_i32_0 = arith.constant 0 : i32
    %c0_i32_1 = arith.constant 0 : i32
    return %c0_i32, %c0_i32_0 : i32, i32
  }
  func.func @transform_12(%arg0: i32) -> (i32, i32) {
    %c0_i32 = arith.constant 0 : i32
    %c0_i32_0 = arith.constant 0 : i32
    return %arg0, %c0_i32 : i32, i32
  }
}

</mosaic_0001>

<bundles_post_ra>
// kernel: tpu_custom_call.1
= control target key start
LH: loop header
LB: loop body
LE: loop exit
PB: predicated region body
PF: predicated region fallthrough
CT: control target
= control target key end

     0   :  { %s2891_s0 = inlined_call_operand.vmem [shape: f32[16,32], index: 0, kind: input, shape index: {}]   ;;  %s2892_s1 = inlined_call_operand.vmem [shape: f32[16,8,32], index: 1, kind: input, shape index: {}]   ;;  %s2893_s2 = inlined_call_operand.hbm [shape: f32[6,32], index: 2, kind: input, shape index: {}]   ;;  %s2894_s3 = inlined_call_operand.hbm [shape: f32[1,128], index: 3, kind: input, shape index: {}]   ;;  %s2895_s4 = inlined_call_operand.vmem [shape: f32[32,32], index: 4, kind: input, shape index: {}]   ;;  %s2896_s5 = inlined_call_operand.hbm [shape: f32[32,64], index: 5, kind: input, shape index: {}]   ;;  %s2897_s6 = inlined_call_operand.hbm [shape: f32[32,32], index: 6, kind: input, shape index: {}]   ;;  %s2898_s7 = inlined_call_operand.hbm [shape: f32[32,128], index: 7, kind: input, shape index: {}]   ;;  %s2899_s8 = inlined_call_operand.vmem [shape: f32[128,32], index: 8, kind: input, shape index: {}]   ;;  %s2900_s9 = inlined_call_operand.vmem [shape: f32[32,4], index: 9, kind: input, shape index: {}]   ;;  %s2901_s10 = inlined_call_operand.hbm [shape: f32[4,32], index: 10, kind: input, shape index: {}]   ;;  %s2902_s11 = inlined_call_operand.vmem [shape: f32[8,4], index: 11, kind: input, shape index: {}]   ;;  %s2903_s12 = inlined_call_operand.hbm [shape: f32[16,32], index: 12, kind: output, shape index: {}]  }
   0x1   :  { %2909 = sst [smem:[#allocation24_spill]] %s2893_s2 }
   0x2   :  { %2910 = sst [smem:[#allocation25_spill]] %s2894_s3 }
   0x3   :  { %2911 = sst [smem:[#allocation26_spill]] %s2897_s6 }
   0x4   :  { %17 = vsyncpa [#allocation3], 0 }
   0x5   :  { %18 = vsyncpa [#allocation6], 0 }
   0x6   :  { %19 = vsyncpa [#allocation9], 0 }
   0x7   :  { %20 = vsyncpa [#allocation12], 0 }
   0x8   :  { %21 = vsyncpa [#allocation4], 0 }
   0x9   :  { %23 = vsyncpa [#allocation4 + $0x1], 0  ;;  %s2343_s21 = smov 0   ;;  %s2345_s22 = smov 0  }
   0xa   :  { %s2347_s23 = smov 0   ;;  %s2349_s24 = smov 0  }
   0xb LB: > { %2912 = sst [smem:[#allocation19_spill]] %s2253_s21  ;;  %s2364_s25 = sadd.s32 4294967295, %s2265_s24   ;;  %s2265_s24 = sphi %s2349_s24, %s2926_s24   ;;  %s2261_s23 = sphi %s2347_s23, %s2928_s23   ;;  %s2257_s22 = sphi %s2345_s22, %s2930_s22   ;;  %s2253_s21 = sphi %s2343_s21, %s2929_s21  }
   0xc   : > { %2913 = sst [smem:[#allocation20_spill]] %s2261_s23  ;;  %s1792_s26 = sadd.s32 4294967294, %s2265_s24  }
   0xd   : > { %s2368_s27 = sadd.s32 1, %s2265_s24   ;;  %s298_s28 = sadd.s32 1, %s2261_s23 }
   0xe   : > { %2914 = sst [smem:[#allocation21_spill]] %s2368_s27  ;;  %s295_s29 = ssub.s32 %s2265_s24, %s2368_s27 }
   0xf   : > { %p308_p0 = scmp.ne.s32.totalorder %s2261_s23, %s2257_s22  ;;  %p296_p1 = scmp.eq.s32.totalorder %s295_s29, 0 }
  0x10   : > { %p309_p2 = scmp.eq.s32.totalorder %s2364_s25, 1  ;;  %p314_p3 = scmp.ne.s32.totalorder %s2257_s22, %s2253_s21 }
  0x11   : > { %p315_p4 = scmp.eq.s32.totalorder %s1792_s26, 1  ;;  %p1793_p7 = scmp.ge.s32.totalorder %s2265_s24, 1 }
  0x12   : > { %s2379_s30 = scalar_select %p296_p1, %s2261_s23, %s298_s28  }
  0x13   : > { %p2381_p5 = por %p309_p2, %p308_p0  ;;  %p2385_p6 = por %p315_p4, %p314_p3 }
  0x14   : > { %2915 = sst [smem:[#allocation22_spill]] %s2379_s30  ;;  %p322_p8 = scmp.lt.s32.totalorder %s2265_s24, 3 }
  0x15   : > { %s2917_s14 = scalar_select %p2385_p6, 1, 0 }
  0x16   : > { %p1897_p9 = scmp.eq.s32.totalorder %s2364_s25, 0  ;;  %p2392_p10 = pnand %p1793_p7, %p322_p8 }
  0x17   : > { %2918 = sst [smem:[#allocation23_spill]] %s2917_s14  ;;  %s2267_s19 = smov [#allocation5]  }
  0x18   : > { %s2920_s3 = sld [smem:[#allocation25_spill]]  ;;  %p1874_p11 = pneg %p2392_p10 }
  0x19   : > { %s348_s20 = sshll.u32 %s2267_s19, 4  ;;  %s2922_s6 = sld [smem:[#allocation26_spill]]  ;;  %s349_s20 = int_to_ptr.vmem [resolvable:$true] %s348_s20 }
  0x1a   : > { %p2403_p12 = pnand %p1897_p9, %p1874_p11  ;;  %s2268_s16 = smov [#allocation8]  }
  0x1b   : > { %s376_s17 = sshll.u32 %s2268_s16, 4  ;;  %s2923_s2 = sld [smem:[#allocation24_spill]]  ;;  %s377_s17 = int_to_ptr.vmem [resolvable:$true] %s376_s17 }
  0x1c   : > { %s2269_s27 = smov 128   ;;  %s2270_s14 = smov 8  }
  0x1d   : > { %s2271_s21 = smov [#allocation2]   ;;  %s409_s28 = sshll.u32 %s2901_s10, 4  ;;  %s410_s28 = int_to_ptr.hbm [resolvable:$true] %s409_s28 }
  0x1e   : > { %s346_s18 = sshll.u32 %s2920_s3, 4  ;;  %s2272_s3 = smov [#allocation7]   ;;  %s347_s18 = int_to_ptr.hbm [resolvable:$true] %s346_s18 }
  0x1f   : > { %s374_s30 = sshll.u32 %s2922_s6, 4  ;;  %s360_s6 = sshll.u32 %s2896_s5, 4  ;;  %s375_s30 = int_to_ptr.hbm [resolvable:$true] %s374_s30  ;;  %s361_s6 = int_to_ptr.hbm [resolvable:$true] %s360_s6 }
  0x20   : > { %1880 = dma.hbm_to_vmem [thread:$0]  (!%p2403_p12), %s347_s18, 16, %s349_s20, [#allocation6]  }
  0x21   : > { %s334_s23 = sshll.u32 %s2923_s2, 4  ;;  %s336_s18 = sshll.u32 %s2271_s21, 4  ;;  %s335_s23 = int_to_ptr.hbm [resolvable:$true] %s334_s23  ;;  %s337_s18 = int_to_ptr.vmem [resolvable:$true] %s336_s18 }
  0x22   : > { %1886 = dma.hbm_to_vmem [thread:$0]  (!%p2403_p12), %s375_s30, 512, %s377_s17, [#allocation9], %s2269_s27, %s2269_s27, %s2270_s14  }
  0x23   : > { %1877 = dma.hbm_to_vmem [thread:$0]  (!%p2403_p12), %s335_s23, 128, %s337_s18, [#allocation3]  }
  0x24   : > { %s362_s20 = sshll.u32 %s2272_s3, 4  ;;  %s388_s2 = sshll.u32 %s2898_s7, 4  ;;  %s363_s20 = int_to_ptr.vmem [resolvable:$true] %s362_s20  ;;  %s389_s2 = int_to_ptr.hbm [resolvable:$true] %s388_s2 }
  0x25   : > { %1883 = dma.hbm_to_vmem [thread:$0]  (!%p2403_p12), %s361_s6, 512, %s363_s20, [#allocation6], %s2269_s27, %s2269_s27, %s2270_s14  }
  0x26   : > { %s2273_s21 = smov [#allocation10]   ;;  %s2274_s23 = smov [#allocation11]  }
  0x27   : > { %s390_s29 = sshll.u32 %s2273_s21, 4  ;;  %s411_s18 = sshll.u32 %s2274_s23, 4  ;;  %s391_s29 = int_to_ptr.vmem [resolvable:$true] %s390_s29  ;;  %s412_s18 = int_to_ptr.vmem [resolvable:$true] %s411_s18 }
  0x28   : > { %1889 = dma.hbm_to_vmem [thread:$0]  (!%p2403_p12), %s389_s2, 512, %s391_s29, [#allocation9], %s2269_s27, %s2269_s27, %s2270_s14  }
  0x29   : > { %1892 = dma.hbm_to_vmem [thread:$0]  (!%p2403_p12), %s410_s28, 64, %s412_s18, [#allocation12]  }
  0x2a   : > { %443 = sbr.rel (%p2392_p10) target bundleno = 1649 (0x671), region = 68 }
  0x2f   : > { %2232 = dma.done.wait (%p1897_p9), [#allocation3], 128  }
  0x30   : > { %2234 = vsyncadd (%p1897_p9), [#allocation3], 4294967168 }
  0x31   : > { %2236 = dma.done.wait (%p1897_p9), [#allocation6], 528  }
  0x32   : > { %2238 = vsyncadd (%p1897_p9), [#allocation6], 4294966768 }
  0x33   : > { %2240 = dma.done.wait (%p1897_p9), [#allocation9], 1024  }
  0x34   : > { %2242 = vsyncadd (%p1897_p9), [#allocation9], 4294966272 }
  0x35   : > { %2244 = dma.done.wait (%p1897_p9), [#allocation12], 64  }
  0x36   : > { %2246 = vsyncadd (%p1897_p9), [#allocation12], 4294967232  ;;  %s2453_s2 = sshll.u32 %s2364_s25, 3  ;;  %p515_p13 = scmp.lt.s32.totalorder %s2364_s25, 1  ;;  %vm540_vm0 = vcmask 261120   ;;  %v2275_v18 = vmov 32.0  }
  0x37   : > { %p520_p0 = scmp.lt.s32.totalorder %s2453_s2, 15  ;;  %1960 = vrcp.f32 %v2275_v18  ;;  %s512_s30 = sand.u32 1, %s2257_s22  }
  0x38   : > { %s2932_s25 = smov (!%p515_p13, %s2364_s25), 1  ;;  %s1808_s17 = sshll.u32 %s512_s30, 3 }
  0x39   : > { %s521_s6 = scalar_select %p520_p0, %s2453_s2, 15 }
  0x3a   : > { %s1809_s27 = sshll.u32 %s2932_s25, 3  ;;  %s2276_s25 = smov 96  }
  0x3b   : > { %s1811_s14 = sshll.u32 %s521_s6, 3  ;;  %s2465_s19 = scalar_lea.vmem %s2891_s0, %s1809_s27 }
  0x3c   : > { %s523_s3 = scalar_lea.vmem %s2892_s1, %s1811_s14  ;;  %v525_v7 = vld [vmem:[%s2465_s19] sm:$0xff]  ;;  %s1656_s21 = scalar_lea.hbm %s2903_s12, %s2453_s2 }
  0x3d   : > { %v529_v0 = vld [vmem:[%s523_s3 + $0x18] sm:$0xff]  ;;  %v526_v1 = vld [vmem:[%s523_s3] sm:$0xff]  ;;  %v527_v4 = vld [vmem:[%s523_s3 + $0x8] sm:$0xff]  ;;  %v541_v10 = vsel %vm540_vm0, %v525_v7, 0.0  ;;  %v1961_v19 = vpop.eup %1960  ;;  %s514_s29 = scalar_lea.vmem [#allocation13], %s1808_s17  ;;  %s1660_s18 = sshll.u32 %s1656_s21, 4  ;;  %s1661_s18 = int_to_ptr.hbm [resolvable:$true] %s1660_s18 }
  0x3e   : > { %v583_v2 = vsel %vm540_vm0, %v529_v0, 0.0  ;;  %v574_v3 = vsel %vm540_vm0, %v526_v1, 0.0  ;;  %v577_v5 = vsel %vm540_vm0, %v527_v4, 0.0  ;;  %v530_v6 = vld [vmem:[%s523_s3 + $0x20] sm:$0xff]  ;;  %v528_v8 = vld [vmem:[%s523_s3 + $0x10] sm:$0xff]  ;;  %v531_v13 = vld [vmem:[%s523_s3 + $0x28] sm:$0xff]  ;;  %vm549_vm1 = vweird.f32 %v1961_v19 }
  0x3f   : > { %584 = vadd.xlane.f32.xlu2 %v583_v2  ;;  %575 = vadd.xlane.f32.xlu0 %v574_v3  ;;  %v586_v9 = vsel %vm540_vm0, %v530_v6, 0.0  ;;  %v580_v11 = vsel %vm540_vm0, %v528_v8, 0.0  ;;  %v532_v12 = vld [vmem:[%s523_s3 + $0x30] sm:$0xff]  ;;  %v589_v15 = vsel %vm540_vm0, %v531_v13, 0.0  ;;  %v533_v16 = vld [vmem:[%s523_s3 + $0x38] sm:$0xff]  ;;  %v545_v20 = vmul.f32 32.0, %v1961_v19 }
  0x40   : > { %578 = vadd.xlane.f32.xlu1 %v577_v5  ;;  %v592_v14 = vsel %vm540_vm0, %v532_v12, 0.0  ;;  %v595_v17 = vsel %vm540_vm0, %v533_v16, 0.0  ;;  %s1658_s23 = sshll.u32 %s514_s29, 4  ;;  %s1646_s6 = scalar_lea.sflag [#allocation4], %s512_s30  ;;  %s1659_s23 = int_to_ptr.vmem [resolvable:$true] %s1658_s23 }
  0x41   : > { %v546_v21 = vsub.f32 1.0, %v545_v20  ;;  %s2201_s27 = sshra.s32 %s1661_s18, 4  ;;  %s2207_s26 = scalar_lea.hbm %s2903_s12, 16  ;;  %s2202_s27 = int_to_ptr.hbm [resolvable:$true] %s2201_s27 }
  0x42   : > { %s2203_s14 = scalar_lea.hbm %s2202_s27, 8  ;;  %p2208_p4 = scmp.lt.s32.totalorder %s2202_s27, %s2903_s12 }
  0x43   : > { %v547_v22 = vmul.f32 %v1961_v19, %v546_v21  ;;  %p2204_p1 = scmp.ne.s32.totalorder %s2202_s27, %s2203_s14  ;;  %p2209_p7 = scmp.lt.s32.totalorder %s2207_s26, %s2203_s14 }
  0x45   : > { %v548_v23 = vadd.f32 %v1961_v19, %v547_v22  ;;  %p2205_p2 = pnand %p2204_p1, %p2381_p5  ;;  %p2210_p8 = por %p2209_p7, %p2208_p4 }
  0x47   : > { %587 = vadd.xlane.f32.xlu2 %v586_v9  ;;  %542 = vadd.xlane.f32.xlu0 %v541_v10  ;;  %v2477_v24 = vsel %vm549_vm1, %v1961_v19, %v548_v23  ;;  %v794_v9 = vld [vmem:[#allocation7] sm:$0xff]  ;;  %p2206_p3 = pneg %p2205_p2 }
  0x48   : > { %581 = vadd.xlane.f32.xlu1 %v580_v11 }
  0x49   : > { %p2211_p9 = pnand %p2210_p8, %p2206_p3 }
  0x4f   : > { %593 = vadd.xlane.f32.xlu2 %v592_v14  ;;  %590 = vadd.xlane.f32.xlu0 %v589_v15  ;;  %v768_v14 = vld [vmem:[%s2895_s4 + $0x10] sm:$0xff]  ;;  %v767_v15 = vld [vmem:[%s2895_s4 + $0x8] sm:$0xff] }
  0x57   : > { %596 = vadd.xlane.f32.xlu2 %v595_v17 }
  0xb2   : > { %v585_v25 = vpop.xlane.xlu2 %584  ;;  %v576_v26 = vpop.xlane.xlu0 %575 }
  0xb3   : > { %v598_v27 = vmul.f32 %v576_v26, %v2477_v24  ;;  %v579_v28 = vpop.xlane.xlu1 %578  ;;  %v601_v36 = vmul.f32 %v585_v25, %v2477_v24 }
  0xb4   : > { %v599_v29 = vmul.f32 %v579_v28, %v2477_v24 }
  0xb5   : > { %v2481_v30 = vsub.f32 %v526_v1, %v598_v27  ;;  %v2498_v44 = vsub.f32 %v529_v0, %v601_v36 }
  0xb6   : > { %v2483_v31 = vsub.f32 %v527_v4, %v599_v29 }
  0xb7   : > { %v614_v32 = vmul.f32 %v2481_v30, %v2481_v30  ;;  %v617_v54 = vmul.f32 %v2498_v44, %v2498_v44 }
  0xb8   : > { %v615_v40 = vmul.f32 %v2483_v31, %v2483_v31 }
  0xb9   : > { %v622_v33 = vsel %vm540_vm0, %v614_v32, 0.0  ;;  %v631_v58 = vsel %vm540_vm0, %v617_v54, 0.0 }
  0xba   : > { %v588_v34 = vpop.xlane.xlu2 %587  ;;  %623 = vadd.xlane.f32.xlu1 %v622_v33  ;;  %v543_v35 = vpop.xlane.xlu0 %542  ;;  %v625_v46 = vsel %vm540_vm0, %v615_v40, 0.0 }
  0xbb   : > { %v602_v37 = vmul.f32 %v588_v34, %v2477_v24  ;;  %v551_v38 = vmul.f32 %v2477_v24, %v543_v35  ;;  %v582_v39 = vpop.xlane.xlu1 %581 }
  0xbc   : > { %v600_v41 = vmul.f32 %v582_v39, %v2477_v24 }
  0xbd   : > { %v2494_v42 = vsub.f32 %v530_v6, %v602_v37  ;;  %v2496_v43 = vsub.f32 %v525_v7, %v551_v38  ;;  %v797_v6 = vld [vmem:[#allocation7 + $0x18] sm:$0xff]  ;;  %v796_v7 = vld [vmem:[#allocation7 + $0x10] sm:$0xff] }
  0xbe   : > { %v2505_v48 = vsub.f32 %v528_v8, %v600_v41  ;;  %854 = vmatpush.msra.mxu2 %v797_v6  ;;  %810 = vmatpush.msra.mxu1 %v797_v6  ;;  %v795_v8 = vld [vmem:[#allocation7 + $0x8] sm:$0xff] }
  0xbf   : > { %v618_v45 = vmul.f32 %v2494_v42, %v2494_v42  ;;  %v553_v47 = vmul.f32 %v2496_v43, %v2496_v43 }
  0xc0   : > { %v616_v55 = vmul.f32 %v2505_v48, %v2505_v48  ;;  %855 = vmatpush.msra.mxu2 %v796_v7  ;;  %811 = vmatpush.msra.mxu1 %v796_v7 }
  0xc1   : > { %v634_v49 = vsel %vm540_vm0, %v618_v45, 0.0  ;;  %v554_v50 = vsel %vm540_vm0, %v553_v47, 0.0  ;;  %v2558_v47 = vld [vmem:[#allocation2] ss:$0 sm:$0xff] }
  0xc2   : > { %635 = vadd.xlane.f32.xlu2 %v634_v49  ;;  %v594_v51 = vpop.xlane.xlu2 %593  ;;  %626 = vadd.xlane.f32.xlu1 %v625_v46  ;;  %v591_v52 = vpop.xlane.xlu0 %590  ;;  %v628_v59 = vsel %vm540_vm0, %v616_v55, 0.0 }
  0xc3   : > { %v604_v53 = vmul.f32 %v594_v51, %v2477_v24  ;;  %555 = vadd.xlane.f32.xlu0 %v554_v50  ;;  %v603_v56 = vmul.f32 %v591_v52, %v2477_v24  ;;  %856 = vmatpush.msra.mxu2 %v795_v8  ;;  %v2562_v52 = vld [vmem:[#allocation2 + $0x1] ss:$0 sm:$0xff] }
  0xc4   : > { %812 = vmatpush.msra.mxu1 %v795_v8 }
  0xc5   : > { %v2515_v57 = vsub.f32 %v532_v12, %v604_v53  ;;  %v2519_v60 = vsub.f32 %v531_v13, %v603_v56  ;;  %857 = vmatpush.msra.mxu2 %v794_v9  ;;  %v769_v12 = vld [vmem:[%s2895_s4 + $0x18] sm:$0xff] }
  0xc6   : > { %813 = vmatpush.msra.mxu1 %v794_v9  ;;  %785 = vmatpush.msra.mxu0 %v769_v12 }
  0xc7   : > { %v620_v63 = vmul.f32 %v2515_v57, %v2515_v57  ;;  %v619_v0 = vmul.f32 %v2519_v60, %v2519_v60 }
  0xc8   : > { %786 = vmatpush.msra.mxu0 %v768_v14 }
  0xc9   : > { %v640_v3 = vsel %vm540_vm0, %v620_v63, 0.0  ;;  %v637_v4 = vsel %vm540_vm0, %v619_v0, 0.0 }
  0xca   : > { %v597_v61 = vpop.xlane.xlu2 %596  ;;  %632 = vadd.xlane.f32.xlu1 %v631_v58  ;;  %787 = vmatpush.msra.mxu0 %v767_v15 }
  0xcb   : > { %v605_v62 = vmul.f32 %v597_v61, %v2477_v24  ;;  %629 = vadd.xlane.f32.xlu0 %v628_v59 }
  0xcd   : > { %v2526_v1 = vsub.f32 %v533_v16, %v605_v62  ;;  %v766_v16 = vld [vmem:[%s2895_s4] sm:$0xff] }
  0xce   : > { %788 = vmatpush.msra.mxu0 %v766_v16 }
  0xcf   : > { %v621_v2 = vmul.f32 %v2526_v1, %v2526_v1 }
  0xd1   : > { %v643_v5 = vsel %vm540_vm0, %v621_v2, 0.0 }
  0xd2   : > { %644 = vadd.xlane.f32.xlu2 %v643_v5  ;;  %641 = vadd.xlane.f32.xlu1 %v640_v3 }
  0xd3   : > { %638 = vadd.xlane.f32.xlu0 %v637_v4 }
 0x12d   : > { %v624_v10 = vpop.xlane.xlu1 %623 }
 0x12e   : > { %v646_v11 = vmul.f32 %v624_v10, %v2477_v24 }
 0x130   : > { %v654_v13 = vadd.f32 1e-05, %v646_v11 }
 0x132   : > { %1962 = vrsqrt.f32 %v654_v13  ;;  %vm668_vm3 = vweird.f32 %v654_v13 }
 0x135   : > { %v627_v17 = vpop.xlane.xlu1 %626  ;;  %v636_v22 = vpop.xlane.xlu2 %635 }
 0x136   : > { %v647_v18 = vmul.f32 %v627_v17, %v2477_v24  ;;  %v556_v19 = vpop.xlane.xlu0 %555  ;;  %v650_v28 = vmul.f32 %v636_v22, %v2477_v24 }
 0x137   : > { %v557_v20 = vmul.f32 %v556_v19, %v2477_v24 }
 0x138   : > { %v1963_v21 = vpop.eup %1962  ;;  %v655_v23 = vadd.f32 1e-05, %v647_v18  ;;  %v2550_v36 = vadd.f32 1e-05, %v650_v28 }
 0x139   : > { %v663_v25 = vmul.f32 %v1963_v21, %v654_v13  ;;  %v558_v26 = vadd.f32 1e-05, %v557_v20  ;;  %vm669_vm2 = vweird.f32 %v1963_v21 }
 0x13a   : > { %1964 = vrsqrt.f32 %v655_v23  ;;  %vm670_vm4 = vmor %vm668_vm3, %vm669_vm2  ;;  %vm678_vm5 = vweird.f32 %v655_v23  ;;  %vm708_vm2 = vweird.f32 %v2550_v36 }
 0x13b   : > { %v664_v27 = vmul.f32 %v1963_v21, %v663_v25  ;;  %1966 = vrsqrt.f32 %v558_v26  ;;  %vm565_vm8 = vweird.f32 %v558_v26 }
 0x13d   : > { %v665_v29 = vmul.f32 0.5, %v664_v27  ;;  %v633_v32 = vpop.xlane.xlu1 %632 }
 0x13e   : > { %v649_v33 = vmul.f32 %v633_v32, %v2477_v24  ;;  %v630_v34 = vpop.xlane.xlu0 %629 }
 0x13f   : > { %v666_v35 = vsub.f32 1.5, %v665_v29  ;;  %v648_v37 = vmul.f32 %v630_v34, %v2477_v24 }
 0x140   : > { %v2553_v38 = vadd.f32 1e-05, %v649_v33  ;;  %v1965_v39 = vpop.eup %1964 }
 0x141   : > { %v667_v40 = vmul.f32 %v1963_v21, %v666_v35  ;;  %v2555_v41 = vadd.f32 1e-05, %v648_v37  ;;  %v1967_v45 = vpop.eup %1966  ;;  %v673_v46 = vmul.f32 %v1965_v39, %v655_v23  ;;  %vm679_vm6 = vweird.f32 %v1965_v39 }
 0x142   : > { %1968 = vrsqrt.f32 %v2553_v38  ;;  %v560_v50 = vmul.f32 %v1967_v45, %v558_v26  ;;  %vm566_vm7 = vweird.f32 %v1967_v45  ;;  %vm680_vm9 = vmor %vm678_vm5, %vm679_vm6  ;;  %vm698_vm13 = vweird.f32 %v2553_v38 }
 0x143   : > { %v671_v49 = vsel %vm670_vm4, %v1963_v21, %v667_v40  ;;  %1970 = vrsqrt.f32 %v2550_v36  ;;  %v674_v51 = vmul.f32 %v1965_v39, %v673_v46  ;;  %vm567_vm10 = vmor %vm565_vm8, %vm566_vm7  ;;  %vm688_vm11 = vweird.f32 %v2555_v41 }
 0x144   : > { %1972 = vrsqrt.f32 %v2555_v41  ;;  %v742_v53 = vmul.f32 %v671_v49, %v2481_v30  ;;  %v561_v54 = vmul.f32 %v1967_v45, %v560_v50 }
 0x145   : > { %v675_v55 = vmul.f32 0.5, %v674_v51  ;;  %v642_v63 = vpop.xlane.xlu1 %641  ;;  %v645_v25 = vpop.xlane.xlu2 %644 }
 0x146   : > { %v639_v56 = vpop.xlane.xlu0 %638  ;;  %v750_v58 = vmul.f32 %v2558_v47, %v742_v53  ;;  %v562_v59 = vmul.f32 0.5, %v561_v54  ;;  %v652_v10 = vmul.f32 %v642_v63, %v2477_v24  ;;  %v653_v29 = vmul.f32 %v645_v25, %v2477_v24 }
 0x147   : > { %v676_v62 = vsub.f32 1.5, %v675_v55  ;;  %v651_v0 = vmul.f32 %v639_v56, %v2477_v24 }
 0x148   : > { %v2566_v61 = vpop.eup %1968  ;;  %v758_v2 = vadd.f32 %v2562_v52, %v750_v58  ;;  %v563_v4 = vsub.f32 1.5, %v562_v59  ;;  %v2586_v20 = vadd.f32 1e-05, %v652_v10 }
 0x149   : > { %v2570_v3 = vpop.eup %1970  ;;  %v693_v30 = vmul.f32 %v2566_v61, %v2553_v38  ;;  %v677_v6 = vmul.f32 %v1965_v39, %v676_v62  ;;  %v2581_v13 = vadd.f32 1e-05, %v651_v0  ;;  %vm699_vm14 = vweird.f32 %v2566_v61 }
 0x14a   : > { %v1973_v5 = vpop.eup %1972  ;;  %1814 = vmatmul.msk.f32.vlgmr.msra.gmra.mxu2 %vm540_vm0, %v758_v2  ;;  %v564_v7 = vmul.f32 %v1967_v45, %v563_v4  ;;  %v703_v11 = vmul.f32 %v2570_v3, %v2550_v36  ;;  %vm700_vm1 = vmor %vm698_vm13, %vm699_vm14  ;;  %vm709_vm3 = vweird.f32 %v2570_v3  ;;  %vm728_vm8 = vweird.f32 %v2586_v20 }
 0x14b   : > { %v694_v8 = vmul.f32 %v2566_v61, %v693_v30  ;;  %v683_v9 = vmul.f32 %v1973_v5, %v2555_v41  ;;  %v681_v12 = vsel %vm680_vm9, %v1965_v39, %v677_v6  ;;  %1974 = vrsqrt.f32 %v2581_v13  ;;  %vm710_vm4 = vmor %vm708_vm2, %vm709_vm3 }
 0x14c   : > { %v568_v14 = vsel %vm567_vm10, %v1967_v45, %v564_v7  ;;  %v743_v17 = vmul.f32 %v681_v12, %v2483_v31  ;;  %v704_v22 = vmul.f32 %v2570_v3, %v703_v11  ;;  %vm689_vm12 = vweird.f32 %v1973_v5 }
 0x14d   : > { %v695_v15 = vmul.f32 0.5, %v694_v8  ;;  %v684_v16 = vmul.f32 %v1973_v5, %v683_v9  ;;  %v569_v18 = vmul.f32 %v568_v14, %v2496_v43  ;;  %1976 = vrsqrt.f32 %v2586_v20  ;;  %vm690_vm15 = vmor %vm688_vm11, %vm689_vm12 }
 0x14e   : > { %v751_v21 = vmul.f32 %v2558_v47, %v743_v17  ;;  %v705_v33 = vmul.f32 0.5, %v704_v22  ;;  %v661_v39 = vadd.f32 1e-05, %v653_v29  ;;  %vm718_vm5 = vweird.f32 %v2581_v13 }
 0x14f   : > { %v685_v19 = vmul.f32 0.5, %v684_v16  ;;  %v696_v23 = vsub.f32 1.5, %v695_v15  ;;  %v571_v26 = vmul.f32 %v2558_v47, %v569_v18  ;;  %vm1008_vm14 = vcmask 31744  }
 0x150   : > { %v759_v43 = vadd.f32 %v2562_v52, %v751_v21  ;;  %v706_v40 = vsub.f32 1.5, %v705_v33  ;;  %1978 = vrsqrt.f32 %v661_v39  ;;  %vm738_vm11 = vweird.f32 %v661_v39 }
 0x151   : > { %v686_v27 = vsub.f32 1.5, %v685_v19  ;;  %v573_v31 = vadd.f32 %v2562_v52, %v571_v26  ;;  %v1975_v32 = vpop.eup %1974  ;;  %v697_v34 = vmul.f32 %v2566_v61, %v696_v23  ;;  %v886_v19 = vld [vmem:[%s2900_s9 + $0x10] sm:$0xff]  ;;  %vm1077_vm2 = vcmask 1043459  }
 0x152   : > { %v713_v37 = vmul.f32 %v1975_v32, %v2581_v13  ;;  %1815 = vmatmul.msk.f32.gmra.mxu2 %vm540_vm0, %v759_v43  ;;  %v707_v53 = vmul.f32 %v2570_v3, %v706_v40  ;;  %vm719_vm6 = vweird.f32 %v1975_v32  ;;  %vm1079_vm3 = vcmask 1044484  }
 0x153   : > { %v687_v28 = vmul.f32 %v1973_v5, %v686_v27  ;;  %1812 = vmatmul.msk.f32.vlgmr.msra.gmra.mxu0 %vm540_vm0, %v573_v31  ;;  %1813 = vmatmul.msk.f32.vlgmr.msra.gmra.mxu1 %vm540_vm0, %v573_v31  ;;  %v701_v41 = vsel %vm700_vm1, %v2566_v61, %v697_v34  ;;  %v1977_v49 = vpop.eup %1976  ;;  %vm720_vm7 = vmor %vm718_vm5, %vm719_vm6  ;;  %vm1075_vm1 = vcmask 1042434   ;;  %vm1083_vm5 = vcmask 1046534  }
 0x154   : > { %v714_v45 = vmul.f32 %v1975_v32, %v713_v37  ;;  %v745_v51 = vmul.f32 %v701_v41, %v2498_v44  ;;  %v711_v56 = vsel %vm710_vm4, %v2570_v3, %v707_v53  ;;  %vm729_vm9 = vweird.f32 %v1977_v49 }
 0x155   : > { %v691_v35 = vsel %vm690_vm15, %v1973_v5, %v687_v28  ;;  %v746_v61 = vmul.f32 %v711_v56, %v2494_v42  ;;  %vm730_vm10 = vmor %vm728_vm8, %vm729_vm9  ;;  %vm1073_vm15 = vcmask 1041409   ;;  %vm1081_vm4 = vcmask 1045509  }
 0x156   : > { %v744_v38 = vmul.f32 %v691_v35, %v2505_v48  ;;  %v723_v48 = vmul.f32 %v1977_v49, %v2586_v20  ;;  %v715_v54 = vmul.f32 0.5, %v714_v45  ;;  %v753_v55 = vmul.f32 %v2558_v47, %v745_v51  ;;  %v1979_v59 = vpop.eup %1978 }
 0x157   : > { %v733_v62 = vmul.f32 %v1979_v59, %v661_v39  ;;  %v754_v2 = vmul.f32 %v2558_v47, %v746_v61  ;;  %vm739_vm12 = vweird.f32 %v1979_v59  ;;  %vm1085_vm6 = vcmask 1047559  }
 0x158   : > { %v752_v46 = vmul.f32 %v2558_v47, %v744_v38  ;;  %v724_v36 = vmul.f32 %v1977_v49, %v723_v48  ;;  %v716_v58 = vsub.f32 1.5, %v715_v54  ;;  %v761_v44 = vadd.f32 %v2562_v52, %v753_v55  ;;  %vm740_vm13 = vmor %vm738_vm11, %vm739_vm12 }
 0x159   : > { %v734_v4 = vmul.f32 %v1979_v59, %v733_v62  ;;  %v762_v5 = vadd.f32 %v2562_v52, %v754_v2 }
 0x15a   : > { %v760_v50 = vadd.f32 %v2562_v52, %v752_v46  ;;  %v725_v63 = vmul.f32 0.5, %v724_v36  ;;  %v717_v0 = vmul.f32 %v1975_v32, %v716_v58 }
 0x15b   : > { %v735_v7 = vmul.f32 0.5, %v734_v4 }
 0x15c   : > { %1816 = vmatmul.msk.f32.gmra.mxu2 %vm540_vm0, %v760_v50  ;;  %v726_v3 = vsub.f32 1.5, %v725_v63  ;;  %v721_v30 = vsel %vm720_vm7, %v1975_v32, %v717_v0  ;;  %vm1273_vm7 = vcmask 1043456  }
 0x15d   : > { %v747_v6 = vmul.f32 %v721_v30, %v2519_v60  ;;  %v736_v9 = vsub.f32 1.5, %v735_v7 }
 0x15e   : > { %v727_v42 = vmul.f32 %v1977_v49, %v726_v3 }
 0x15f   : > { %v755_v8 = vmul.f32 %v2558_v47, %v747_v6  ;;  %v737_v13 = vmul.f32 %v1979_v59, %v736_v9 }
 0x160   : > { %v731_v10 = vsel %vm730_vm10, %v1977_v49, %v727_v42 }
 0x161   : > { %v763_v11 = vadd.f32 %v2562_v52, %v755_v8  ;;  %v748_v12 = vmul.f32 %v731_v10, %v2515_v57  ;;  %v741_v14 = vsel %vm740_vm13, %v1979_v59, %v737_v13  ;;  %v887_v57 = vld [vmem:[%s2900_s9 + $0x18] sm:$0xff] }
 0x162   : > { %v749_v16 = vmul.f32 %v741_v14, %v2526_v1  ;;  %903 = vmatpush.msra.mxu3 %v887_v57  ;;  %979 = vmatpush.msrb.mxu0 %v887_v57  ;;  %v885_v1 = vld [vmem:[%s2900_s9 + $0x8] sm:$0xff] }
 0x163   : > { %v756_v60 = vmul.f32 %v2558_v47, %v748_v12 }
 0x164   : > { %1817 = vmatmul.msk.f32.gmra.mxu2 %vm540_vm0, %v761_v44  ;;  %v757_v17 = vmul.f32 %v2558_v47, %v749_v16  ;;  %904 = vmatpush.msra.mxu3 %v886_v19  ;;  %v884_v47 = vld [vmem:[%s2900_s9] sm:$0xff] }
 0x165   : > { %v764_v15 = vadd.f32 %v2562_v52, %v756_v60  ;;  %980 = vmatpush.msrb.mxu0 %v886_v19 }
 0x166   : > { %v765_v18 = vadd.f32 %v2562_v52, %v757_v17  ;;  %905 = vmatpush.msra.mxu3 %v885_v1 }
 0x167   : > { %981 = vmatpush.msrb.mxu0 %v885_v1 }
 0x168   : > { %906 = vmatpush.msra.mxu3 %v884_v47 }
 0x169   : > { %982 = vmatpush.msrb.mxu0 %v884_v47 }
 0x16c   : > { %1818 = vmatmul.msk.f32.gmra.mxu2 %vm540_vm0, %v762_v5 }
 0x174   : > { %1819 = vmatmul.msk.f32.gmra.mxu2 %vm540_vm0, %v763_v11 }
 0x17c   : > { %1820 = vmatmul.msk.f32.gmra.mxu2 %vm540_vm0, %v764_v15 }
 0x184   : > { %1821 = vmatmul.msk.f32.gmra.mxu2 %vm540_vm0, %v765_v18 }
 0x1cd   : > { %v859_v52 = vpop.f32.mrf.mxu2 }
 0x1ce   : > { %1375 = vrot.lane.b32.xlu0 %v859_v52, %s2276_s25 }
 0x1d0   : > { %v790_v20 = vpop.f32.mrf.mxu0  ;;  %v815_v22 = vpop.f32.mrf.mxu1 }
 0x1d1   : > { %v793_v21 = vmul.f32 0.35355338, %v790_v20 }
 0x1d3   : > { %v883_v23 = vmul.f32 %v815_v22, %v793_v21  ;;  %v919_v25 = vperm.slane %v793_v21, 0  ;;  %v912_v26 = vrot.slane %v793_v21, 1  ;;  %v913_v32 = vrot.slane %v793_v21, 2 }
 0x1d4   : > { %v914_v37 = vrot.slane %v793_v21, 3  ;;  %v915_v41 = vrot.slane %v793_v21, 4  ;;  %v916_v50 = vrot.slane %v793_v21, 5  ;;  %v917_v54 = vrot.slane %v793_v21, 6 }
 0x1d5   : > { %1822 = vmatmul.msk.f32.vlgmr.msra.gmra.mxu3 %vm540_vm0, %v883_v23  ;;  %v935_v27 = vmul.f32 %v919_v25, %v859_v52  ;;  %v862_v31 = vpop.f32.mrf.mxu2  ;;  %v920_v43 = vperm.slane %v912_v26, 0  ;;  %v921_v33 = vperm.slane %v913_v32, 0  ;;  %v918_v58 = vrot.slane %v793_v21, 7 }
 0x1d6   : > { %1377 = vrot.lane.b32.xlu1 %v862_v31, %s2276_s25  ;;  %v922_v38 = vperm.slane %v914_v37, 0  ;;  %v923_v45 = vperm.slane %v915_v41, 0  ;;  %v924_v51 = vperm.slane %v916_v50, 0  ;;  %v925_v55 = vperm.slane %v917_v54, 0 }
 0x1d7   : > { %1823 = vmatmul.msk.f32.vlgmr.msrb.gmra.mxu0 %vm540_vm0, %v935_v27  ;;  %v936_v28 = vmul.f32 %v920_v43, %v862_v31  ;;  %v926_v59 = vperm.slane %v918_v58, 0 }
 0x1df   : > { %v865_v29 = vpop.f32.mrf.mxu2  ;;  %1824 = vmatmul.msk.f32.gmra.mxu0 %vm540_vm0, %v936_v28 }
 0x1e0   : > { %1379 = vrot.lane.b32.xlu2 %v865_v29, %s2276_s25  ;;  %v937_v34 = vmul.f32 %v921_v33, %v865_v29 }
 0x1e7   : > { %v868_v35 = vpop.f32.mrf.mxu2  ;;  %1825 = vmatmul.msk.f32.gmra.mxu0 %vm540_vm0, %v937_v34 }
 0x1e8   : > { %1381 = vrot.lane.b32.xlu0 %v868_v35, %s2276_s25  ;;  %v938_v39 = vmul.f32 %v922_v38, %v868_v35 }
 0x1ef   : > { %v871_v40 = vpop.f32.mrf.mxu2  ;;  %1826 = vmatmul.msk.f32.gmra.mxu0 %vm540_vm0, %v938_v39 }
 0x1f0   : > { %1383 = vrot.lane.b32.xlu2 %v871_v40, %s2276_s25  ;;  %v939_v46 = vmul.f32 %v923_v45, %v871_v40 }
 0x1f7   : > { %v874_v49 = vpop.f32.mrf.mxu2  ;;  %1827 = vmatmul.msk.f32.gmra.mxu0 %vm540_vm0, %v939_v46 }
 0x1f8   : > { %1385 = vrot.lane.b32.xlu1 %v874_v49, %s2276_s25  ;;  %v940_v53 = vmul.f32 %v924_v51, %v874_v49 }
 0x1ff   : > { %v877_v48 = vpop.f32.mrf.mxu2  ;;  %1828 = vmatmul.msk.f32.gmra.mxu0 %vm540_vm0, %v940_v53 }
 0x200   : > { %1298 = vrot.lane.b32.xlu1 %v815_v22, %s2276_s25  ;;  %1387 = vrot.lane.b32.xlu0 %v877_v48, %s2276_s25  ;;  %v941_v56 = vmul.f32 %v925_v55, %v877_v48 }
 0x207   : > { %v880_v36 = vpop.f32.mrf.mxu2  ;;  %1829 = vmatmul.msk.f32.gmra.mxu0 %vm540_vm0, %v941_v56 }
 0x208   : > { %1389 = vrot.lane.b32.xlu2 %v880_v36, %s2276_s25  ;;  %v942_v44 = vmul.f32 %v926_v59, %v880_v36 }
 0x20f   : > { %1830 = vmatmul.msk.f32.gmra.mxu0 %vm540_vm0, %v942_v44 }
 0x254   : > { %v2665_v61 = vpop.f32.mrf.mxu0 }
 0x255   : > { %v1009_v30 = vsel %vm1008_vm14, %v2665_v61, -inf }
 0x256   : > { %v1010_v10 = vrot.slane %v1009_v30, 4 }
 0x258   : > { %v1011_v15 = vmax.f32 %v1009_v30, %v1010_v10 }
 0x25a   : > { %v1012_v52 = vrot.slane %v1011_v15, 2 }
 0x25c   : > { %v2667_v62 = vpop.f32.mrf.mxu0  ;;  %v1013_v31 = vmax.f32 %v1011_v15, %v1012_v52 }
 0x25d   : > { %v1016_v4 = vsel %vm1008_vm14, %v2667_v62, -inf }
 0x25e   : > { %v1017_v6 = vrot.slane %v1016_v4, 4  ;;  %v1014_v39 = vrot.slane %v1013_v31, 1 }
 0x260   : > { %v1018_v13 = vmax.f32 %v1016_v4, %v1017_v6  ;;  %v1015_v48 = vmax.f32 %v1013_v31, %v1014_v39 }
 0x262   : > { %v1019_v18 = vrot.slane %v1018_v13, 2 }
 0x264   : > { %v2669_v63 = vpop.f32.mrf.mxu0  ;;  %v1020_v23 = vmax.f32 %v1018_v13, %v1019_v18 }
 0x265   : > { %v1023_v3 = vsel %vm1008_vm14, %v2669_v63, -inf }
 0x266   : > { %v1024_v8 = vrot.slane %v1023_v3, 4  ;;  %v1021_v32 = vrot.slane %v1020_v23, 1 }
 0x268   : > { %v1025_v14 = vmax.f32 %v1023_v3, %v1024_v8  ;;  %v1022_v46 = vmax.f32 %v1020_v23, %v1021_v32 }
 0x26a   : > { %v1026_v1 = vrot.slane %v1025_v14, 2  ;;  %v1074_v36 = vsel %vm1073_vm15, %v1022_v46, %v1015_v48 }
 0x26c   : > { %v2671_v0 = vpop.f32.mrf.mxu0  ;;  %v1027_v27 = vmax.f32 %v1025_v14, %v1026_v1 }
 0x26d   : > { %v1030_v5 = vsel %vm1008_vm14, %v2671_v0, -inf }
 0x26e   : > { %v1031_v11 = vrot.slane %v1030_v5, 4  ;;  %v1028_v35 = vrot.slane %v1027_v27, 1 }
 0x270   : > { %v1032_v16 = vmax.f32 %v1030_v5, %v1031_v11  ;;  %v1029_v51 = vmax.f32 %v1027_v27, %v1028_v35 }
 0x272   : > { %v1033_v20 = vrot.slane %v1032_v16, 2  ;;  %v1076_v44 = vsel %vm1075_vm1, %v1029_v51, %v1074_v36 }
 0x274   : > { %v2673_v2 = vpop.f32.mrf.mxu0  ;;  %v1034_v43 = vmax.f32 %v1032_v16, %v1033_v20 }
 0x275   : > { %v1037_v7 = vsel %vm1008_vm14, %v2673_v2, -inf }
 0x276   : > { %v1038_v12 = vrot.slane %v1037_v7, 4  ;;  %v1035_v40 = vrot.slane %v1034_v43, 1 }
 0x278   : > { %v1039_v17 = vmax.f32 %v1037_v7, %v1038_v12  ;;  %v1036_v54 = vmax.f32 %v1034_v43, %v1035_v40 }
 0x27a   : > { %v1040_v22 = vrot.slane %v1039_v17, 2  ;;  %v1078_v3 = vsel %vm1077_vm2, %v1036_v54, %v1076_v44 }
 0x27c   : > { %v2685_v42 = vpop.f32.mrf.mxu0  ;;  %v1041_v29 = vmax.f32 %v1039_v17, %v1040_v22 }
 0x27d   : > { %v1044_v9 = vsel %vm1008_vm14, %v2685_v42, -inf }
 0x27e   : > { %v1045_v60 = vrot.slane %v1044_v9, 4  ;;  %v1042_v45 = vrot.slane %v1041_v29, 1 }
 0x280   : > { %v1046_v57 = vmax.f32 %v1044_v9, %v1045_v60  ;;  %v1043_v56 = vmax.f32 %v1041_v29, %v1042_v45  ;;  %v2703_v9 = vpop.f32.mrf.mxu3 }
 0x282   : > { %v1047_v25 = vrot.slane %v1046_v57, 2  ;;  %v1080_v5 = vsel %vm1079_vm3, %v1043_v56, %v1078_v3 }
 0x284   : > { %v2689_v19 = vpop.f32.mrf.mxu0  ;;  %v1048_v33 = vmax.f32 %v1046_v57, %v1047_v25 }
 0x285   : > { %v1051_v47 = vsel %vm1008_vm14, %v2689_v19, -inf }
 0x286   : > { %v1052_v21 = vrot.slane %v1051_v47, 4  ;;  %v1049_v49 = vrot.slane %v1048_v33, 1 }
 0x288   : > { %v1053_v26 = vmax.f32 %v1051_v47, %v1052_v21  ;;  %v1050_v58 = vmax.f32 %v1048_v33, %v1049_v49 }
 0x28a   : > { %v1054_v28 = vrot.slane %v1053_v26, 2  ;;  %v1082_v6 = vsel %vm1081_vm4, %v1050_v58, %v1080_v5 }
 0x28c   : > { %v2693_v34 = vpop.f32.mrf.mxu0  ;;  %v1055_v37 = vmax.f32 %v1053_v26, %v1054_v28 }
 0x28d   : > { %v1058_v38 = vsel %vm1008_vm14, %v2693_v34, -inf }
 0x28e   : > { %v1059_v41 = vrot.slane %v1058_v38, 4  ;;  %v1056_v53 = vrot.slane %v1055_v37, 1 }
 0x290   : > { %v1060_v50 = vmax.f32 %v1058_v38, %v1059_v41  ;;  %v1057_v4 = vmax.f32 %v1055_v37, %v1056_v53  ;;  %v1269_v38 = vld [vmem:[#allocation11] sm:$0xf] }
 0x291   : > { %1833 = vmatpush.msk.msrb.mxu3 %vm1273_vm7, %v1269_v38  ;;  %1831 = vmatpush.msk.msrb.mxu1 %vm1273_vm7, %v1269_v38 }
 0x292   : > { %v1061_v55 = vrot.slane %v1060_v50, 2  ;;  %v1084_v8 = vsel %vm1083_vm5, %v1057_v4, %v1082_v6 }
 0x294   : > { %v1062_v59 = vmax.f32 %v1060_v50, %v1061_v55 }
 0x296   : > { %v1063_v30 = vrot.slane %v1062_v59, 1 }
 0x298   : > { %v1064_v7 = vmax.f32 %v1062_v59, %v1063_v30 }
 0x29a   : > { %v1086_v10 = vsel %vm1085_vm6, %v1064_v7, %v1084_v8 }
 0x29b   : > { %v1088_v11 = vmax.f32 %v2703_v9, %v1086_v10 }
 0x29d   : > { %v1093_v12 = vrot.slane %v1088_v11, 1  ;;  %v1094_v13 = vrot.slane %v1088_v11, 2  ;;  %v1095_v60 = vrot.slane %v1088_v11, 3  ;;  %v1096_v14 = vrot.slane %v1088_v11, 4 }
 0x29e   : > { %v1097_v15 = vrot.slane %v1088_v11, 5  ;;  %v1098_v16 = vrot.slane %v1088_v11, 6  ;;  %v1099_v17 = vrot.slane %v1088_v11, 7  ;;  %v1100_v18 = vperm.slane %v1088_v11, 0 }
 0x29f   : > { %v1101_v57 = vperm.slane %v1093_v12, 0  ;;  %v1102_v1 = vperm.slane %v1094_v13, 0  ;;  %v1103_v47 = vperm.slane %v1095_v60, 0  ;;  %v1104_v52 = vperm.slane %v1096_v14, 0 }
 0x2a0   : > { %v1105_v20 = vperm.slane %v1097_v15, 0  ;;  %v1106_v21 = vperm.slane %v1098_v16, 0  ;;  %v1107_v22 = vperm.slane %v1099_v17, 0  ;;  %v1116_v23 = vsub.f32 %v2665_v61, %v1100_v18 }
 0x2a1   : > { %v1117_v25 = vsub.f32 %v2667_v62, %v1101_v57  ;;  %v1118_v26 = vsub.f32 %v2669_v63, %v1102_v1  ;;  %v1119_v27 = vsub.f32 %v2671_v0, %v1103_v47  ;;  %v1120_v31 = vsub.f32 %v2673_v2, %v1104_v52  ;;  %v1140_v2 = vld [vmem:[%s2902_s11] sm:$0xff] }
 0x2a2   : > { %v1121_v43 = vsub.f32 %v2685_v42, %v1105_v20  ;;  %v1122_v28 = vsub.f32 %v2689_v19, %v1106_v21  ;;  %v1124_v29 = vmul.f32 1.442695, %v1116_v23  ;;  %v1123_v32 = vsub.f32 %v2693_v34, %v1107_v22 }
 0x2a3   : > { %v1126_v33 = vmul.f32 1.442695, %v1117_v25  ;;  %v1128_v35 = vmul.f32 1.442695, %v1118_v26  ;;  %v1130_v37 = vmul.f32 1.442695, %v1119_v27  ;;  %v1089_v39 = vsub.f32 %v2703_v9, %v1088_v11 }
 0x2a4   : > { %1980 = vpow2.f32 %v1124_v29  ;;  %v1132_v61 = vmul.f32 1.442695, %v1120_v31  ;;  %v1134_v62 = vmul.f32 1.442695, %v1121_v43  ;;  %v1136_v63 = vmul.f32 1.442695, %v1122_v28 }
 0x2a5   : > { %1982 = vpow2.f32 %v1126_v33  ;;  %v1138_v0 = vmul.f32 1.442695, %v1123_v32  ;;  %v1090_v58 = vmul.f32 1.442695, %v1089_v39 }
 0x2a6   : > { %1984 = vpow2.f32 %v1128_v35 }
 0x2a7   : > { %1986 = vpow2.f32 %v1130_v37 }
 0x2a8   : > { %1988 = vpow2.f32 %v1132_v61 }
 0x2a9   : > { %1990 = vpow2.f32 %v1134_v62 }
 0x2aa   : > { %v1981_v42 = vpop.eup %1980  ;;  %1992 = vpow2.f32 %v1136_v63 }
 0x2ab   : > { %v1983_v19 = vpop.eup %1982  ;;  %1994 = vpow2.f32 %v1138_v0  ;;  %v2718_v34 = vmul.f32 %v1981_v42, %v1140_v2 }
 0x2ac   : > { %v1985_v40 = vpop.eup %1984  ;;  %v2721_v41 = vmul.f32 %v1983_v19, %v1140_v2  ;;  %1996 = vpow2.f32 %v1090_v58 }
 0x2ad   : > { %v1987_v45 = vpop.eup %1986  ;;  %v2723_v46 = vmul.f32 %v1985_v40, %v1140_v2  ;;  %v1149_v49 = vsel %vm1008_vm14, %v2718_v34, 0.0 }
 0x2ae   : > { %v1989_v50 = vpop.eup %1988  ;;  %v2727_v51 = vmul.f32 %v1987_v45, %v1140_v2  ;;  %v1150_v53 = vrot.slane %v1149_v49, 4  ;;  %v1156_v48 = vsel %vm1008_vm14, %v2721_v41, 0.0 }
 0x2af   : > { %v1991_v54 = vpop.eup %1990  ;;  %v2731_v55 = vmul.f32 %v1989_v50, %v1140_v2  ;;  %v1157_v56 = vrot.slane %v1156_v48, 4  ;;  %v1163_v36 = vsel %vm1008_vm14, %v2723_v46, 0.0 }
 0x2b0   : > { %v1993_v59 = vpop.eup %1992  ;;  %v2735_v44 = vmul.f32 %v1991_v54, %v1140_v2  ;;  %v1151_v4 = vadd.f32 %v1150_v53, %v1149_v49  ;;  %v1164_v3 = vrot.slane %v1163_v36, 4  ;;  %v1170_v30 = vsel %vm1008_vm14, %v2727_v51, 0.0 }
 0x2b1   : > { %v1995_v5 = vpop.eup %1994  ;;  %v2739_v6 = vmul.f32 %v1993_v59, %v1140_v2  ;;  %v1158_v7 = vadd.f32 %v1157_v56, %v1156_v48  ;;  %v1171_v8 = vrot.slane %v1170_v30, 4  ;;  %v1177_v9 = vsel %vm1008_vm14, %v2731_v55, 0.0 }
 0x2b2   : > { %v2743_v10 = vmul.f32 %v1995_v5, %v1140_v2  ;;  %v1152_v11 = vrot.slane %v1151_v4, 2  ;;  %v1165_v12 = vadd.f32 %v1164_v3, %v1163_v36  ;;  %v1178_v13 = vrot.slane %v1177_v9, 4 }
 0x2b3   : > { %v1159_v60 = vrot.slane %v1158_v7, 2  ;;  %v1172_v14 = vadd.f32 %v1171_v8, %v1170_v30  ;;  %v1184_v15 = vsel %vm1008_vm14, %v2735_v44, 0.0  ;;  %v1191_v16 = vsel %vm1008_vm14, %v2739_v6, 0.0 }
 0x2b4   : > { %v1153_v17 = vadd.f32 %v1152_v11, %v1151_v4  ;;  %v1166_v18 = vrot.slane %v1165_v12, 2  ;;  %v1179_v57 = vadd.f32 %v1178_v13, %v1177_v9  ;;  %v1185_v1 = vrot.slane %v1184_v15, 4 }
 0x2b5   : > { %v1160_v47 = vadd.f32 %v1159_v60, %v1158_v7  ;;  %v1173_v52 = vrot.slane %v1172_v14, 2  ;;  %v1192_v20 = vrot.slane %v1191_v16, 4  ;;  %v1198_v21 = vsel %vm1008_vm14, %v2743_v10, 0.0  ;;  %v1997_v7 = vpop.eup %1996 }
 0x2b6   : > { %v1154_v22 = vrot.slane %v1153_v17, 1  ;;  %v1167_v23 = vadd.f32 %v1166_v18, %v1165_v12  ;;  %v1180_v25 = vrot.slane %v1179_v57, 2  ;;  %v1186_v26 = vadd.f32 %v1185_v1, %v1184_v15 }
 0x2b7   : > { %v1161_v27 = vrot.slane %v1160_v47, 1  ;;  %v1174_v31 = vadd.f32 %v1173_v52, %v1172_v14  ;;  %v1193_v43 = vadd.f32 %v1192_v20, %v1191_v16  ;;  %v1199_v28 = vrot.slane %v1198_v21, 4 }
 0x2b8   : > { %v1155_v29 = vadd.f32 %v1154_v22, %v1153_v17  ;;  %v1168_v32 = vrot.slane %v1167_v23, 1  ;;  %v1181_v33 = vadd.f32 %v1180_v25, %v1179_v57  ;;  %v1187_v35 = vrot.slane %v1186_v26, 2 }
 0x2b9   : > { %v1162_v37 = vadd.f32 %v1161_v27, %v1160_v47  ;;  %v1175_v61 = vrot.slane %v1174_v31, 1  ;;  %v1194_v62 = vrot.slane %v1193_v43, 2  ;;  %v1200_v38 = vadd.f32 %v1199_v28, %v1198_v21 }
 0x2ba   : > { %v1169_v63 = vadd.f32 %v1168_v32, %v1167_v23  ;;  %v1182_v0 = vrot.slane %v1181_v33, 1  ;;  %v1188_v2 = vadd.f32 %v1187_v35, %v1186_v26 }
 0x2bb   : > { %v1176_v42 = vadd.f32 %v1175_v61, %v1174_v31  ;;  %v1195_v19 = vadd.f32 %v1194_v62, %v1193_v43  ;;  %v1201_v39 = vrot.slane %v1200_v38, 2  ;;  %v1213_v40 = vsel %vm1073_vm15, %v1162_v37, %v1155_v29 }
 0x2bc   : > { %v1183_v45 = vadd.f32 %v1182_v0, %v1181_v33  ;;  %v1189_v49 = vrot.slane %v1188_v2, 1  ;;  %v1214_v50 = vsel %vm1075_vm1, %v1169_v63, %v1213_v40  ;;  %v1378_v0 = vpop.permute.xlu1 %1377 }
 0x2bd   : > { %v1196_v53 = vrot.slane %v1195_v19, 1  ;;  %v1202_v48 = vadd.f32 %v1201_v39, %v1200_v38  ;;  %v1215_v54 = vsel %vm1077_vm2, %v1176_v42, %v1214_v50 }
 0x2be   : > { %v1190_v56 = vadd.f32 %v1189_v49, %v1188_v2  ;;  %v1216_v36 = vsel %vm1079_vm3, %v1183_v45, %v1215_v54 }
 0x2bf   : > { %v1197_v59 = vadd.f32 %v1196_v53, %v1195_v19  ;;  %v1203_v4 = vrot.slane %v1202_v48, 1 }
 0x2c0   : > { %v1217_v3 = vsel %vm1081_vm4, %v1190_v56, %v1216_v36  ;;  %v1483_v56 = vld [vmem:[#allocation8 + $0x18] sm:$0xff]  ;;  %v1482_v36 = vld [vmem:[#allocation8 + $0x10] sm:$0xff] }
 0x2c1   : > { %v1204_v30 = vadd.f32 %v1203_v4, %v1202_v48  ;;  %v1218_v5 = vsel %vm1083_vm5, %v1197_v59, %v1217_v3  ;;  %1500 = vmatpush.msra.mxu1 %v1483_v56 }
 0x2c3   : > { %v1219_v8 = vsel %vm1085_vm6, %v1204_v30, %v1218_v5  ;;  %1501 = vmatpush.msra.mxu1 %v1482_v36 }
 0x2c4   : > { %v1221_v9 = vadd.f32 %v1997_v7, %v1219_v8  ;;  %v1386_v53 = vpop.permute.xlu1 %1385 }
 0x2c6   : > { %1998 = vrcp.f32 %v1221_v9  ;;  %v1233_v60 = vand.u32 2147483648, %v1221_v9  ;;  %v1231_v14 = vand.u32 2147483647, %v1221_v9  ;;  %vm1227_vm9 = vweird.f32 %v1221_v9 }
 0x2c8   : > { %v1234_v16 = vor.u32 1.1754944e-38, %v1233_v60  ;;  %vm1232_vm11 = vcmp.eq.f32.partialorder %v1231_v14, 8.507059e+37 }
 0x2cc   : > { %v1999_v11 = vpop.eup %1998 }
 0x2cd   : > { %v1223_v12 = vmul.f32 %v1999_v11, %v1221_v9  ;;  %vm1228_vm8 = vweird.f32 %v1999_v11 }
 0x2ce   : > { %vm1229_vm10 = vmor %vm1227_vm9, %vm1228_vm8 }
 0x2cf   : > { %v1224_v13 = vsub.f32 1.0, %v1223_v12 }
 0x2d1   : > { %v1225_v58 = vmul.f32 %v1999_v11, %v1224_v13  ;;  %v1480_v13 = vld [vmem:[#allocation8] sm:$0xff] }
 0x2d3   : > { %v1226_v15 = vadd.f32 %v1999_v11, %v1225_v58 }
 0x2d5   : > { %v1230_v17 = vsel %vm1229_vm10, %v1999_v11, %v1226_v15 }
 0x2d6   : > { %v1235_v18 = vsel %vm1232_vm11, %v1234_v16, %v1230_v17 }
 0x2d7   : > { %v1236_v57 = vmul.f32 %v1997_v7, %v1235_v18  ;;  %v1245_v1 = vperm.slane %v1235_v18, 0  ;;  %v1240_v47 = vrot.slane %v1235_v18, 3  ;;  %v1241_v52 = vrot.slane %v1235_v18, 4  ;;  %v1481_v7 = vld [vmem:[#allocation8 + $0x8] sm:$0xff] }
 0x2d8   : > { %v1242_v20 = vrot.slane %v1235_v18, 5  ;;  %v1243_v21 = vrot.slane %v1235_v18, 6  ;;  %v1238_v23 = vrot.slane %v1235_v18, 1  ;;  %v1244_v25 = vrot.slane %v1235_v18, 7  ;;  %1502 = vmatpush.msra.mxu1 %v1481_v7 }
 0x2d9   : > { %1832 = vmatmul.msk.f32.vlgmr.msrb.gmra.mxu1 %vm1008_vm14, %v1236_v57  ;;  %v1261_v22 = vmul.f32 %v1245_v1, %v2718_v34  ;;  %v1248_v26 = vperm.slane %v1240_v47, 0  ;;  %v1249_v27 = vperm.slane %v1241_v52, 0  ;;  %v1239_v62 = vrot.slane %v1235_v18, 2 }
 0x2da   : > { %v1250_v31 = vperm.slane %v1242_v20, 0  ;;  %v1251_v43 = vperm.slane %v1243_v21, 0  ;;  %v1252_v28 = vperm.slane %v1244_v25, 0  ;;  %v1246_v37 = vperm.slane %v1238_v23, 0  ;;  %1503 = vmatpush.msra.mxu1 %v1480_v13 }
 0x2db   : > { %1834 = vmatmul.msk.f32.vlgmr.msrb.gmra.mxu3 %vm1008_vm14, %v1261_v22  ;;  %v1264_v29 = vmul.f32 %v1248_v26, %v2727_v51  ;;  %v1265_v32 = vmul.f32 %v1249_v27, %v2731_v55  ;;  %v1247_v38 = vperm.slane %v1239_v62, 0 }
 0x2dc   : > { %v1266_v33 = vmul.f32 %v1250_v31, %v2735_v44  ;;  %v1267_v35 = vmul.f32 %v1251_v43, %v2739_v6  ;;  %v1268_v34 = vmul.f32 %v1252_v28, %v2743_v10  ;;  %v1262_v61 = vmul.f32 %v1246_v37, %v2721_v41  ;;  %v1376_v6 = vpop.permute.xlu0 %1375  ;;  %v1380_v10 = vpop.permute.xlu2 %1379 }
 0x2dd   : > { %v1263_v63 = vmul.f32 %v1247_v38, %v2723_v46 }
 0x2e3   : > { %1835 = vmatmul.msk.f32.gmra.mxu3 %vm1008_vm14, %v1262_v61 }
 0x2e4   : > { %v1382_v42 = vpop.permute.xlu0 %1381  ;;  %v1384_v39 = vpop.permute.xlu2 %1383 }
 0x2eb   : > { %1836 = vmatmul.msk.f32.gmra.mxu3 %vm1008_vm14, %v1263_v63 }
 0x2ec   : > { %v1388_v16 = vpop.permute.xlu0 %1387 }
 0x2f3   : > { %1837 = vmatmul.msk.f32.gmra.mxu3 %vm1008_vm14, %v1264_v29 }
 0x2fb   : > { %1838 = vmatmul.msk.f32.gmra.mxu3 %vm1008_vm14, %v1265_v32  ;;  %v1390_v32 = vpop.permute.xlu2 %1389 }
 0x303   : > { %1839 = vmatmul.msk.f32.gmra.mxu3 %vm1008_vm14, %v1266_v33 }
 0x30b   : > { %1840 = vmatmul.msk.f32.gmra.mxu3 %vm1008_vm14, %v1267_v35 }
 0x313   : > { %1841 = vmatmul.msk.f32.gmra.mxu3 %vm1008_vm14, %v1268_v34 }
 0x35e   : > { %v1343_v51 = vpop.f32.mrf.mxu3 }
 0x35f   : > { %v1399_v40 = vmul.f32 %v1376_v6, %v1343_v51 }
 0x361   : > { %v1407_v59 = vsel %vm540_vm0, %v1399_v40, 0.0 }
 0x362   : > { %v1408_v11 = vrot.slane %v1407_v59, 4 }
 0x364   : > { %v1409_v17 = vadd.f32 %v1408_v11, %v1407_v59  ;;  %v1294_v59 = vpop.f32.mrf.mxu1 }
 0x366   : > { %v1346_v41 = vpop.f32.mrf.mxu3  ;;  %v1410_v23 = vrot.slane %v1409_v17, 2 }
 0x367   : > { %v1400_v2 = vmul.f32 %v1378_v0, %v1346_v41 }
 0x368   : > { %v1411_v33 = vadd.f32 %v1410_v23, %v1409_v17  ;;  %v1535_v23 = vld [vmem:[#allocation10] sm:$0xff] }
 0x369   : > { %v1414_v50 = vsel %vm540_vm0, %v1400_v2, 0.0 }
 0x36a   : > { %v1415_v30 = vrot.slane %v1414_v50, 4 }
 0x36c   : > { %v1416_v58 = vadd.f32 %v1415_v30, %v1414_v50 }
 0x36e   : > { %v1349_v55 = vpop.f32.mrf.mxu3  ;;  %v1417_v52 = vrot.slane %v1416_v58, 2 }
 0x36f   : > { %v1401_v19 = vmul.f32 %v1380_v10, %v1349_v55 }
 0x370   : > { %v1418_v31 = vadd.f32 %v1417_v52, %v1416_v58 }
 0x371   : > { %v1421_v48 = vsel %vm540_vm0, %v1401_v19, 0.0 }
 0x372   : > { %v1422_v8 = vrot.slane %v1421_v48, 4  ;;  %v1419_v38 = vrot.slane %v1418_v31, 1 }
 0x374   : > { %v1423_v15 = vadd.f32 %v1422_v8, %v1421_v48 }
 0x376   : > { %v1352_v44 = vpop.f32.mrf.mxu3  ;;  %v1424_v21 = vrot.slane %v1423_v15, 2 }
 0x377   : > { %v1402_v45 = vmul.f32 %v1382_v42, %v1352_v44  ;;  %v1412_v44 = vrot.slane %v1411_v33, 1 }
 0x378   : > { %v1425_v29 = vadd.f32 %v1424_v21, %v1423_v15  ;;  %v2006_v15 = vld [vmem:[%s2465_s19] sm:$0xff] }
 0x379   : > { %v1428_v4 = vsel %vm540_vm0, %v1402_v45, 0.0  ;;  %v1413_v40 = vadd.f32 %v1412_v44, %v1411_v33  ;;  %v1537_v21 = vld [vmem:[#allocation10 + $0x10] sm:$0xff]  ;;  %v1620_v44 = vld [vmem:[%s2899_s8 + $0x70] sm:$0xff] }
 0x37a   : > { %v1429_v12 = vrot.slane %v1428_v4, 4  ;;  %v1426_v51 = vrot.slane %v1425_v29, 1 }
 0x37c   : > { %v1430_v18 = vadd.f32 %v1429_v12, %v1428_v4  ;;  %v1427_v19 = vadd.f32 %v1426_v51, %v1425_v29 }
 0x37e   : > { %v1355_v46 = vpop.f32.mrf.mxu3  ;;  %v1431_v25 = vrot.slane %v1430_v18, 2 }
 0x37f   : > { %v1403_v49 = vmul.f32 %v1384_v39, %v1355_v46  ;;  %v1420_v46 = vadd.f32 %v1419_v38, %v1418_v31 }
 0x380   : > { %v1432_v35 = vadd.f32 %v1431_v25, %v1430_v18 }
 0x381   : > { %v1435_v5 = vsel %vm540_vm0, %v1403_v49, 0.0 }
 0x382   : > { %v1436_v60 = vrot.slane %v1435_v5, 4  ;;  %v1433_v6 = vrot.slane %v1432_v35, 1 }
 0x384   : > { %v1437_v1 = vadd.f32 %v1436_v60, %v1435_v5  ;;  %v1434_v45 = vadd.f32 %v1433_v6, %v1432_v35  ;;  %v1299_v5 = vpop.permute.xlu1 %1298  ;;  %v1955_v60 = vld [vmem:[#allocation2 + $0x2] ss:$0 sm:$0xff]  ;;  %v1956_v35 = vld [vmem:[#allocation2 + $0x3] ss:$0 sm:$0xff] }
 0x386   : > { %v1358_v54 = vpop.f32.mrf.mxu3  ;;  %v1438_v27 = vrot.slane %v1437_v1, 2 }
 0x387   : > { %v1404_v3 = vmul.f32 %v1386_v53, %v1358_v54  ;;  %v1471_v53 = vsel %vm1073_vm15, %v1420_v46, %v1413_v40  ;;  %v1618_v46 = vld [vmem:[%s2899_s8 + $0x60] sm:$0xff] }
 0x388   : > { %v1439_v61 = vadd.f32 %v1438_v27, %v1437_v1  ;;  %v1472_v56 = vsel %vm1075_vm1, %v1427_v19, %v1471_v53  ;;  %v1616_v19 = vld [vmem:[%s2899_s8 + $0x50] sm:$0xff]  ;;  %v1614_v40 = vld [vmem:[%s2899_s8 + $0x40] sm:$0xff] }
 0x389   : > { %v1442_v9 = vsel %vm540_vm0, %v1404_v3, 0.0  ;;  %v1473_v4 = vsel %vm1077_vm2, %v1434_v45, %v1472_v56  ;;  %v1612_v53 = vld [vmem:[%s2899_s8 + $0x30] sm:$0xff]  ;;  %v1611_v56 = vld [vmem:[%s2899_s8 + $0x28] sm:$0xff] }
 0x38a   : > { %v1443_v14 = vrot.slane %v1442_v9, 4  ;;  %v1440_v0 = vrot.slane %v1439_v61, 1 }
 0x38c   : > { %v1444_v20 = vadd.f32 %v1443_v14, %v1442_v9  ;;  %v1441_v50 = vadd.f32 %v1440_v0, %v1439_v61  ;;  %v1301_v9 = vmul.f32 %v1299_v5, %v1294_v59  ;;  %v1957_v61 = vld [vmem:[#allocation2 + $0x4] ss:$0 sm:$0xff] }
 0x38e   : > { %v1361_v57 = vpop.f32.mrf.mxu3  ;;  %v1445_v43 = vrot.slane %v1444_v20, 2  ;;  %v1474_v30 = vsel %vm1079_vm3, %v1441_v50, %v1473_v4  ;;  %v1610_v4 = vld [vmem:[%s2899_s8 + $0x20] sm:$0xff] }
 0x38f   : > { %v1405_v47 = vmul.f32 %v1388_v16, %v1361_v57 }
 0x390   : > { %v1446_v63 = vadd.f32 %v1445_v43, %v1444_v20  ;;  %v1538_v20 = vld [vmem:[#allocation10 + $0x18] sm:$0xff] }
 0x391   : > { %v1449_v22 = vsel %vm540_vm0, %v1405_v47, 0.0  ;;  %1558 = vmatpush.msrb.mxu1 %v1538_v20 }
 0x392   : > { %v1450_v26 = vrot.slane %v1449_v22, 4  ;;  %v1447_v2 = vrot.slane %v1446_v63, 1 }
 0x393   : > { %1559 = vmatpush.msrb.mxu1 %v1537_v21 }
 0x394   : > { %v1451_v28 = vadd.f32 %v1450_v26, %v1449_v22  ;;  %v1448_v48 = vadd.f32 %v1447_v2, %v1446_v63  ;;  %v1536_v22 = vld [vmem:[#allocation10 + $0x8] sm:$0xff] }
 0x395   : > { %1560 = vmatpush.msrb.mxu1 %v1536_v22 }
 0x396   : > { %v1452_v37 = vrot.slane %v1451_v28, 2  ;;  %v1364_v34 = vpop.f32.mrf.mxu3  ;;  %v1475_v7 = vsel %vm1081_vm4, %v1448_v48, %v1474_v30 }
 0x397   : > { %v1406_v62 = vmul.f32 %v1390_v32, %v1364_v34  ;;  %1561 = vmatpush.msrb.mxu1 %v1535_v23 }
 0x398   : > { %v1453_v41 = vadd.f32 %v1452_v37, %v1451_v28 }
 0x399   : > { %v1456_v55 = vsel %vm540_vm0, %v1406_v62, 0.0 }
 0x39a   : > { %v1457_v10 = vrot.slane %v1456_v55, 4  ;;  %v1454_v39 = vrot.slane %v1453_v41, 1 }
 0x39c   : > { %v1458_v42 = vadd.f32 %v1457_v10, %v1456_v55  ;;  %v1455_v36 = vadd.f32 %v1454_v39, %v1453_v41  ;;  %v1621_v41 = vld [vmem:[%s2899_s8 + $0x78] sm:$0xff]  ;;  %v1619_v10 = vld [vmem:[%s2899_s8 + $0x68] sm:$0xff] }
 0x39d   : > { %v1615_v39 = vld [vmem:[%s2899_s8 + $0x48] sm:$0xff] }
 0x39e   : > { %v1459_v49 = vrot.slane %v1458_v42, 2  ;;  %v1476_v11 = vsel %vm1083_vm5, %v1455_v36, %v1475_v7  ;;  %v1608_v7 = vld [vmem:[%s2899_s8 + $0x10] sm:$0xff] }
 0x3a0   : > { %v1460_v54 = vadd.f32 %v1459_v49, %v1458_v42  ;;  %v1617_v42 = vld [vmem:[%s2899_s8 + $0x58] sm:$0xff] }
 0x3a1   : > { %v1613_v49 = vld [vmem:[%s2899_s8 + $0x38] sm:$0xff] }
 0x3a2   : > { %v1461_v3 = vrot.slane %v1460_v54, 1 }
 0x3a4   : > { %v1462_v8 = vadd.f32 %v1461_v3, %v1460_v54  ;;  %v1609_v3 = vld [vmem:[%s2899_s8 + $0x18] sm:$0xff] }
 0x3a6   : > { %v1477_v12 = vsel %vm1085_vm6, %v1462_v8, %v1476_v11 }
 0x3a7   : > { %v1479_v13 = vadd.f32 %v1477_v12, %v1301_v9  ;;  %v1607_v12 = vld [vmem:[%s2899_s8 + $0x8] sm:$0xff] }
 0x3a9   : > { %1842 = vmatmul.msk.f32.vlgmr.msra.gmra.mxu1 %vm540_vm0, %v1479_v13 }
 0x3aa   : > { %1623 = vmatpush.msra.mxu1 %v1621_v41 }
 0x3ac   : > { %1624 = vmatpush.msra.mxu1 %v1620_v44 }
 0x3ae   : > { %1625 = vmatpush.msra.mxu1 %v1619_v10 }
 0x3b0   : > { %1626 = vmatpush.msra.mxu1 %v1618_v46 }
 0x3b2   : > { %1627 = vmatpush.msra.mxu1 %v1617_v42 }
 0x3b4   : > { %1628 = vmatpush.msra.mxu1 %v1616_v19 }
 0x3b6   : > { %1629 = vmatpush.msra.mxu1 %v1615_v39 }
 0x3b8   : > { %1630 = vmatpush.msra.mxu1 %v1614_v40 }
 0x3ba   : > { %1631 = vmatpush.msra.mxu1 %v1613_v49 }
 0x3bc   : > { %1632 = vmatpush.msra.mxu1 %v1612_v53 }
 0x3be   : > { %1633 = vmatpush.msra.mxu1 %v1611_v56 }
 0x3c0   : > { %1634 = vmatpush.msra.mxu1 %v1610_v4 }
 0x3c2   : > { %1635 = vmatpush.msra.mxu1 %v1609_v3 }
 0x3c4   : > { %1636 = vmatpush.msra.mxu1 %v1608_v7 }
 0x3c6   : > { %1637 = vmatpush.msra.mxu1 %v1607_v12 }
 0x426   : > { %v1505_v58 = vpop.f32.mrf.mxu1 }
 0x427   : > { %v1506_v14 = vadd.f32 %v1955_v60, %v1505_v58  ;;  %v1606_v60 = vld [vmem:[%s2899_s8] sm:$0xff] }
 0x428   : > { %1638 = vmatpush.msra.mxu1 %v1606_v60 }
 0x429   : > { %v2792_v16 = vadd.f32 %v2006_v15, %v1506_v14 }
 0x42b   : > { %v1509_v17 = vsel %vm540_vm0, %v2792_v16, 0.0 }
 0x42c   : > { %1510 = vadd.xlane.f32.xlu0 %v1509_v17 }
 0x49f   : > { %v1511_v18 = vpop.xlane.xlu0 %1510 }
 0x4a0   : > { %v1512_v57 = vmul.f32 %v1511_v18, %v2477_v24 }
 0x4a2   : > { %v1513_v1 = vsub.f32 %v2792_v16, %v1512_v57 }
 0x4a4   : > { %v1514_v47 = vmul.f32 %v1513_v1, %v1513_v1 }
 0x4a6   : > { %v1515_v52 = vsel %vm540_vm0, %v1514_v47, 0.0 }
 0x4a7   : > { %1516 = vadd.xlane.f32.xlu2 %v1515_v52 }
 0x51a   : > { %v1517_v25 = vpop.xlane.xlu2 %1516 }
 0x51b   : > { %v1518_v26 = vmul.f32 %v1517_v25, %v2477_v24  ;;  %v1958_v24 = vld [vmem:[#allocation5] ss:$0 sm:$0xff]  ;;  %v2277_v25 = vmov -1.0  }
 0x51d   : > { %v1519_v27 = vadd.f32 1e-05, %v1518_v26 }
 0x51f   : > { %2000 = vrsqrt.f32 %v1519_v27  ;;  %vm1526_vm13 = vweird.f32 %v1519_v27 }
 0x525   : > { %v2001_v31 = vpop.eup %2000 }
 0x526   : > { %v1521_v43 = vmul.f32 %v2001_v31, %v1519_v27  ;;  %vm1527_vm12 = vweird.f32 %v2001_v31 }
 0x527   : > { %vm1528_vm14 = vmor %vm1526_vm13, %vm1527_vm12 }
 0x528   : > { %v1522_v28 = vmul.f32 %v2001_v31, %v1521_v43 }
 0x52a   : > { %v1523_v29 = vmul.f32 0.5, %v1522_v28 }
 0x52c   : > { %v1524_v32 = vsub.f32 1.5, %v1523_v29  ;;  %v1959_v29 = vld [vmem:[#allocation2 + $0x5] ss:$0 sm:$0xff] }
 0x52e   : > { %v1525_v33 = vmul.f32 %v2001_v31, %v1524_v32 }
 0x530   : > { %v1529_v37 = vsel %vm1528_vm14, %v2001_v31, %v1525_v33 }
 0x531   : > { %v1530_v34 = vmul.f32 %v1529_v37, %v1513_v1 }
 0x533   : > { %v1532_v62 = vmul.f32 %v1956_v35, %v1530_v34 }
 0x535   : > { %v1534_v38 = vadd.f32 %v1957_v61, %v1532_v62 }
 0x537   : > { %1843 = vmatmul.msk.f32.vlgmr.msrb.gmra.mxu1 %vm540_vm0, %v1534_v38 }
 0x5b4   : > { %v1563_v63 = vpop.f32.mrf.mxu1 }
 0x5b5   : > { %v2801_v51 = vadd.f32 %v1958_v24, %v1563_v63 }
 0x5b7   : > { %v2807_v55 = vmul.f32 0.70710677, %v2801_v51  ;;  %v1566_v31 = vmul.f32 0.5, %v2801_v51 }
 0x5b9   : > { %v1570_v6 = vand.u32 2147483647, %v2807_v55  ;;  %vm1568_vm4 = vcmp.ge.f32.partialorder %v2807_v55, 0.0 }
 0x5ba   : > { %v1569_v26 = vsel %vm1568_vm4, 1.0, %v2277_v25 }
 0x5bb   : > { %v1571_v0 = vmul.f32 0.3275911, %v1570_v6  ;;  %v1597_v11 = vsub.f32 0.0, %v1570_v6 }
 0x5bd   : > { %v1572_v2 = vadd.f32 1.0, %v1571_v0  ;;  %v1598_v14 = vmul.f32 %v1597_v11, %v1570_v6 }
 0x5bf   : > { %2002 = vrcp.f32 %v1572_v2  ;;  %v1584_v54 = vand.u32 2147483648, %v1572_v2  ;;  %v1582_v59 = vand.u32 2147483647, %v1572_v2  ;;  %vm1578_vm1 = vweird.f32 %v1572_v2 }
 0x5c0   : > { %v1599_v18 = vmul.f32 1.442695, %v1598_v14 }
 0x5c1   : > { %v1585_v5 = vor.u32 1.1754944e-38, %v1584_v54  ;;  %vm1583_vm3 = vcmp.eq.f32.partialorder %v1582_v59, 8.507059e+37 }
 0x5c2   : > { %2004 = vpow2.f32 %v1599_v18 }
 0x5c5   : > { %v2003_v45 = vpop.eup %2002 }
 0x5c6   : > { %v1574_v50 = vmul.f32 %v2003_v45, %v1572_v2  ;;  %vm1579_vm15 = vweird.f32 %v2003_v45 }
 0x5c7   : > { %vm1580_vm2 = vmor %vm1578_vm1, %vm1579_vm15 }
 0x5c8   : > { %v1575_v48 = vsub.f32 1.0, %v1574_v50  ;;  %v2005_v21 = vpop.eup %2004 }
 0x5ca   : > { %v1576_v36 = vmul.f32 %v2003_v45, %v1575_v48 }
 0x5cc   : > { %v1577_v30 = vadd.f32 %v2003_v45, %v1576_v36 }
 0x5ce   : > { %v1581_v8 = vsel %vm1580_vm2, %v2003_v45, %v1577_v30 }
 0x5cf   : > { %v1586_v9 = vsel %vm1583_vm3, %v1585_v5, %v1581_v8 }
 0x5d0   : > { %v1588_v13 = vmul.f32 1.0614054, %v1586_v9 }
 0x5d2   : > { %v1589_v58 = vadd.f32 -1.4531521, %v1588_v13 }
 0x5d4   : > { %v1590_v15 = vmul.f32 %v1589_v58, %v1586_v9 }
 0x5d6   : > { %v1591_v17 = vadd.f32 1.4214138, %v1590_v15 }
 0x5d8   : > { %v1592_v57 = vmul.f32 %v1591_v17, %v1586_v9 }
 0x5da   : > { %v1593_v1 = vadd.f32 -0.28449672, %v1592_v57 }
 0x5dc   : > { %v1594_v47 = vmul.f32 %v1593_v1, %v1586_v9 }
 0x5de   : > { %v1595_v52 = vadd.f32 0.2548296, %v1594_v47 }
 0x5e0   : > { %v1596_v20 = vmul.f32 %v1595_v52, %v1586_v9 }
 0x5e2   : > { %v1601_v22 = vmul.f32 %v2005_v21, %v1596_v20 }
 0x5e4   : > { %v1602_v23 = vsub.f32 1.0, %v1601_v22 }
 0x5e6   : > { %v1603_v27 = vmul.f32 %v1602_v23, %v1569_v26 }
 0x5e8   : > { %v1604_v43 = vadd.f32 1.0, %v1603_v27 }
 0x5ea   : > { %v1605_v28 = vmul.f32 %v1604_v43, %v1566_v31 }
 0x5ec   : > { %1639 = vmatmul.f32.vlgmr.msra.gmra.mxu1 %v1605_v28 }
 0x669   : > { %v1640_v32 = vpop.f32.mrf.mxu1 }
 0x66a   : > { %v1641_v33 = vadd.f32 %v1959_v29, %v1640_v32 }
 0x66c   : > { %v1643_v35 = vadd.f32 %v1641_v33, %v2792_v16 }
 0x66e   : > { %1644 = vst.msk [vmem:[%s514_s29] sm:$0xff] %vm540_vm0, %v1643_v35 }
 0x66f   : > { %2214 = shalt.err (!%p2211_p9)
}
 0x670   : > { %1872 = dma.vmem_to_hbm [thread:$0]  (%p2381_p5), %s1659_s23, 128, %s1661_s18, %s1646_s6  }
 0x671 PF: > { %s2924_s16 = sld [smem:[#allocation19_spill]]  ;;  %p1909_p10 = scmp.ge.s32.totalorder %s2265_s24, 2 }
 0x673   : > { %p1894_p11 = pnand %p1909_p10, %p2385_p6 }
 0x675   : > { %p1895_p12 = pneg %p1894_p11 }
 0x677   : > { %s1672_s30 = sand.u32 1, %s2924_s16  }
 0x678   : > { %s1673_s17 = scalar_lea.sflag [#allocation4], %s1672_s30 }
 0x679   : > { %2248 = dma.done.wait (%p1895_p12), %s1673_s17, 128  }
 0x67a   : > { %2250 = vsyncadd (%p1895_p12), %s1673_s17, 4294967168  ;;  %s2926_s24 = sld [smem:[#allocation21_spill]]  ;;  %s2929_s21 = smov %s2257_s22 }
 0x67b   : > { %s2927_s19 = sld [smem:[#allocation20_spill]] }
 0x67c   : > { %s2928_s23 = sld [smem:[#allocation22_spill]] }
 0x680   : > { %p26_p13 = scmp.ge.s32.totalorder %s2926_s24, 4  }
 0x681   : > { %s2930_s22 = smov %s2927_s19 }
 0x682   :  { %28 = sbr.rel (!%p26_p13) target bundleno = 11 (0xb), region = 131 }
 0x687   :  { %1679 = vsyncpa [#allocation3], 1 }
 0x688   :  { %1681 = vsyncpa [#allocation3 + $0x1], 1 }
 0x689   :  { %1682 = vsyncpa [#allocation6], 1 }
 0x68a   :  { %1683 = vsyncpa [#allocation9], 1 }
 0x68b   :  { %1684 = vsyncpa [#allocation12], 1 }
 0x68c   :  { %1685 = vsyncpa [#allocation4], 1 }
 0x68d   :  { %1687 = vsyncpa [#allocation4 + $0x1], 1 }

// kernel: tpu_custom_call.1
= control target key start
LH: loop header
LB: loop body
LE: loop exit
PB: predicated region body
PF: predicated region fallthrough
CT: control target
= control target key end

     0   :  { %s2891_s0 = inlined_call_operand.vmem [shape: f32[16,32], index: 0, kind: input, shape index: {}]   ;;  %s2892_s1 = inlined_call_operand.vmem [shape: f32[16,8,32], index: 1, kind: input, shape index: {}]   ;;  %s2893_s2 = inlined_call_operand.hbm [shape: f32[6,32], index: 2, kind: input, shape index: {}]   ;;  %s2894_s3 = inlined_call_operand.hbm [shape: f32[1,128], index: 3, kind: input, shape index: {}]   ;;  %s2895_s4 = inlined_call_operand.vmem [shape: f32[32,32], index: 4, kind: input, shape index: {}]   ;;  %s2896_s5 = inlined_call_operand.hbm [shape: f32[32,64], index: 5, kind: input, shape index: {}]   ;;  %s2897_s6 = inlined_call_operand.hbm [shape: f32[32,32], index: 6, kind: input, shape index: {}]   ;;  %s2898_s7 = inlined_call_operand.hbm [shape: f32[32,128], index: 7, kind: input, shape index: {}]   ;;  %s2899_s8 = inlined_call_operand.vmem [shape: f32[128,32], index: 8, kind: input, shape index: {}]   ;;  %s2900_s9 = inlined_call_operand.vmem [shape: f32[32,4], index: 9, kind: input, shape index: {}]   ;;  %s2901_s10 = inlined_call_operand.hbm [shape: f32[4,32], index: 10, kind: input, shape index: {}]   ;;  %s2902_s11 = inlined_call_operand.vmem [shape: f32[8,4], index: 11, kind: input, shape index: {}]   ;;  %s2903_s12 = inlined_call_operand.hbm [shape: f32[16,32], index: 12, kind: output, shape index: {}]  }
   0x1   :  { %2909 = sst [smem:[#allocation24_spill]] %s2893_s2 }
   0x2   :  { %2910 = sst [smem:[#allocation25_spill]] %s2894_s3 }
   0x3   :  { %2911 = sst [smem:[#allocation26_spill]] %s2897_s6 }
   0x4   :  { %17 = vsyncpa [#allocation3], 0 }
   0x5   :  { %18 = vsyncpa [#allocation6], 0 }
   0x6   :  { %19 = vsyncpa [#allocation9], 0 }
   0x7   :  { %20 = vsyncpa [#allocation12], 0 }
   0x8   :  { %21 = vsyncpa [#allocation4], 0 }
   0x9   :  { %23 = vsyncpa [#allocation4 + $0x1], 0  ;;  %s2343_s21 = smov 0   ;;  %s2345_s22 = smov 0  }
   0xa   :  { %s2347_s23 = smov 0   ;;  %s2349_s24 = smov 0  }
   0xb LB: > { %2912 = sst [smem:[#allocation19_spill]] %s2253_s21  ;;  %s2364_s25 = sadd.s32 4294967295, %s2265_s24   ;;  %s2265_s24 = sphi %s2349_s24, %s2926_s24   ;;  %s2261_s23 = sphi %s2347_s23, %s2928_s23   ;;  %s2257_s22 = sphi %s2345_s22, %s2930_s22   ;;  %s2253_s21 = sphi %s2343_s21, %s2929_s21  }
   0xc   : > { %2913 = sst [smem:[#allocation20_spill]] %s2261_s23  ;;  %s1792_s26 = sadd.s32 4294967294, %s2265_s24  }
   0xd   : > { %s2368_s27 = sadd.s32 1, %s2265_s24   ;;  %s298_s28 = sadd.s32 1, %s2261_s23 }
   0xe   : > { %2914 = sst [smem:[#allocation21_spill]] %s2368_s27  ;;  %s295_s29 = ssub.s32 %s2265_s24, %s2368_s27 }
   0xf   : > { %p308_p0 = scmp.ne.s32.totalorder %s2261_s23, %s2257_s22  ;;  %p296_p1 = scmp.eq.s32.totalorder %s295_s29, 0 }
  0x10   : > { %p309_p2 = scmp.eq.s32.totalorder %s2364_s25, 1  ;;  %p314_p3 = scmp.ne.s32.totalorder %s2257_s22, %s2253_s21 }
  0x11   : > { %p315_p4 = scmp.eq.s32.totalorder %s1792_s26, 1  ;;  %p1793_p7 = scmp.ge.s32.totalorder %s2265_s24, 1 }
  0x12   : > { %s2379_s30 = scalar_select %p296_p1, %s2261_s23, %s298_s28  }
  0x13   : > { %p2381_p5 = por %p309_p2, %p308_p0  ;;  %p2385_p6 = por %p315_p4, %p314_p3 }
  0x14   : > { %2915 = sst [smem:[#allocation22_spill]] %s2379_s30  ;;  %p322_p8 = scmp.lt.s32.totalorder %s2265_s24, 3 }
  0x15   : > { %s2917_s14 = scalar_select %p2385_p6, 1, 0 }
  0x16   : > { %p1897_p9 = scmp.eq.s32.totalorder %s2364_s25, 0  ;;  %p2392_p10 = pnand %p1793_p7, %p322_p8 }
  0x17   : > { %2918 = sst [smem:[#allocation23_spill]] %s2917_s14  ;;  %s2267_s19 = smov [#allocation5]  }
  0x18   : > { %s2920_s3 = sld [smem:[#allocation25_spill]]  ;;  %p1874_p11 = pneg %p2392_p10 }
  0x19   : > { %s348_s20 = sshll.u32 %s2267_s19, 4  ;;  %s2922_s6 = sld [smem:[#allocation26_spill]]  ;;  %s349_s20 = int_to_ptr.vmem [resolvable:$true] %s348_s20 }
  0x1a   : > { %p2403_p12 = pnand %p1897_p9, %p1874_p11  ;;  %s2268_s16 = smov [#allocation8]  }
  0x1b   : > { %s376_s17 = sshll.u32 %s2268_s16, 4  ;;  %s2923_s2 = sld [smem:[#allocation24_spill]]  ;;  %s377_s17 = int_to_ptr.vmem [resolvable:$true] %s376_s17 }
  0x1c   : > { %s2269_s27 = smov 128   ;;  %s2270_s14 = smov 8  }
  0x1d   : > { %s2271_s21 = smov [#allocation2]   ;;  %s409_s28 = sshll.u32 %s2901_s10, 4  ;;  %s410_s28 = int_to_ptr.hbm [resolvable:$true] %s409_s28 }
  0x1e   : > { %s346_s18 = sshll.u32 %s2920_s3, 4  ;;  %s2272_s3 = smov [#allocation7]   ;;  %s347_s18 = int_to_ptr.hbm [resolvable:$true] %s346_s18 }
  0x1f   : > { %s374_s30 = sshll.u32 %s2922_s6, 4  ;;  %s360_s6 = sshll.u32 %s2896_s5, 4  ;;  %s375_s30 = int_to_ptr.hbm [resolvable:$true] %s374_s30  ;;  %s361_s6 = int_to_ptr.hbm [resolvable:$true] %s360_s6 }
  0x20   : > { %1880 = dma.hbm_to_vmem [thread:$0]  (!%p2403_p12), %s347_s18, 16, %s349_s20, [#allocation6]  }
  0x21   : > { %s334_s23 = sshll.u32 %s2923_s2, 4  ;;  %s336_s18 = sshll.u32 %s2271_s21, 4  ;;  %s335_s23 = int_to_ptr.hbm [resolvable:$true] %s334_s23  ;;  %s337_s18 = int_to_ptr.vmem [resolvable:$true] %s336_s18 }
  0x22   : > { %1886 = dma.hbm_to_vmem [thread:$0]  (!%p2403_p12), %s375_s30, 512, %s377_s17, [#allocation9], %s2269_s27, %s2269_s27, %s2270_s14  }
  0x23   : > { %1877 = dma.hbm_to_vmem [thread:$0]  (!%p2403_p12), %s335_s23, 128, %s337_s18, [#allocation3]  }
  0x24   : > { %s362_s20 = sshll.u32 %s2272_s3, 4  ;;  %s388_s2 = sshll.u32 %s2898_s7, 4  ;;  %s363_s20 = int_to_ptr.vmem [resolvable:$true] %s362_s20  ;;  %s389_s2 = int_to_ptr.hbm [resolvable:$true] %s388_s2 }
  0x25   : > { %1883 = dma.hbm_to_vmem [thread:$0]  (!%p2403_p12), %s361_s6, 512, %s363_s20, [#allocation6], %s2269_s27, %s2269_s27, %s2270_s14  }
  0x26   : > { %s2273_s21 = smov [#allocation10]   ;;  %s2274_s23 = smov [#allocation11]  }
  0x27   : > { %s390_s29 = sshll.u32 %s2273_s21, 4  ;;  %s411_s18 = sshll.u32 %s2274_s23, 4  ;;  %s391_s29 = int_to_ptr.vmem [resolvable:$true] %s390_s29  ;;  %s412_s18 = int_to_ptr.vmem [resolvable:$true] %s411_s18 }
  0x28   : > { %1889 = dma.hbm_to_vmem [thread:$0]  (!%p2403_p12), %s389_s2, 512, %s391_s29, [#allocation9], %s2269_s27, %s2269_s27, %s2270_s14  }
  0x29   : > { %1892 = dma.hbm_to_vmem [thread:$0]  (!%p2403_p12), %s410_s28, 64, %s412_s18, [#allocation12]  }
  0x2a   : > { %443 = sbr.rel (%p2392_p10) target bundleno = 1649 (0x671), region = 68 }
  0x2f   : > { %2232 = dma.done.wait (%p1897_p9), [#allocation3], 128  }
  0x30   : > { %2234 = vsyncadd (%p1897_p9), [#allocation3], 4294967168 }
  0x31   : > { %2236 = dma.done.wait (%p1897_p9), [#allocation6], 528  }
  0x32   : > { %2238 = vsyncadd (%p1897_p9), [#allocation6], 4294966768 }
  0x33   : > { %2240 = dma.done.wait (%p1897_p9), [#allocation9], 1024  }
  0x34   : > { %2242 = vsyncadd (%p1897_p9), [#allocation9], 4294966272 }
  0x35   : > { %2244 = dma.done.wait (%p1897_p9), [#allocation12], 64  }
  0x36   : > { %2246 = vsyncadd (%p1897_p9), [#allocation12], 4294967232  ;;  %s2453_s2 = sshll.u32 %s2364_s25, 3  ;;  %p515_p13 = scmp.lt.s32.totalorder %s2364_s25, 1  ;;  %vm540_vm0 = vcmask 261120   ;;  %v2275_v18 = vmov 32.0  }
  0x37   : > { %p520_p0 = scmp.lt.s32.totalorder %s2453_s2, 15  ;;  %1960 = vrcp.f32 %v2275_v18  ;;  %s512_s30 = sand.u32 1, %s2257_s22  }
  0x38   : > { %s2932_s25 = smov (!%p515_p13, %s2364_s25), 1  ;;  %s1808_s17 = sshll.u32 %s512_s30, 3 }
  0x39   : > { %s521_s6 = scalar_select %p520_p0, %s2453_s2, 15 }
  0x3a   : > { %s1809_s27 = sshll.u32 %s2932_s25, 3  ;;  %s2276_s25 = smov 96  }
  0x3b   : > { %s1811_s14 = sshll.u32 %s521_s6, 3  ;;  %s2465_s19 = scalar_lea.vmem %s2891_s0, %s1809_s27 }
  0x3c   : > { %s523_s3 = scalar_lea.vmem %s2892_s1, %s1811_s14  ;;  %v525_v7 = vld [vmem:[%s2465_s19] sm:$0xff]  ;;  %s1656_s21 = scalar_lea.hbm %s2903_s12, %s2453_s2 }
  0x3d   : > { %v529_v0 = vld [vmem:[%s523_s3 + $0x18] sm:$0xff]  ;;  %v526_v1 = vld [vmem:[%s523_s3] sm:$0xff]  ;;  %v527_v4 = vld [vmem:[%s523_s3 + $0x8] sm:$0xff]  ;;  %v541_v10 = vsel %vm540_vm0, %v525_v7, 0.0  ;;  %v1961_v19 = vpop.eup %1960  ;;  %s514_s29 = scalar_lea.vmem [#allocation13], %s1808_s17  ;;  %s1660_s18 = sshll.u32 %s1656_s21, 4  ;;  %s1661_s18 = int_to_ptr.hbm [resolvable:$true] %s1660_s18 }
  0x3e   : > { %v583_v2 = vsel %vm540_vm0, %v529_v0, 0.0  ;;  %v574_v3 = vsel %vm540_vm0, %v526_v1, 0.0  ;;  %v577_v5 = vsel %vm540_vm0, %v527_v4, 0.0  ;;  %v530_v6 = vld [vmem:[%s523_s3 + $0x20] sm:$0xff]  ;;  %v528_v8 = vld [vmem:[%s523_s3 + $0x10] sm:$0xff]  ;;  %v531_v13 = vld [vmem:[%s523_s3 + $0x28] sm:$0xff]  ;;  %vm549_vm1 = vweird.f32 %v1961_v19 }
  0x3f   : > { %584 = vadd.xlane.f32.xlu2 %v583_v2  ;;  %575 = vadd.xlane.f32.xlu0 %v574_v3  ;;  %v586_v9 = vsel %vm540_vm0, %v530_v6, 0.0  ;;  %v580_v11 = vsel %vm540_vm0, %v528_v8, 0.0  ;;  %v532_v12 = vld [vmem:[%s523_s3 + $0x30] sm:$0xff]  ;;  %v589_v15 = vsel %vm540_vm0, %v531_v13, 0.0  ;;  %v533_v16 = vld [vmem:[%s523_s3 + $0x38] sm:$0xff]  ;;  %v545_v20 = vmul.f32 32.0, %v1961_v19 }
  0x40   : > { %578 = vadd.xlane.f32.xlu1 %v577_v5  ;;  %v592_v14 = vsel %vm540_vm0, %v532_v12, 0.0  ;;  %v595_v17 = vsel %vm540_vm0, %v533_v16, 0.0  ;;  %s1658_s23 = sshll.u32 %s514_s29, 4  ;;  %s1646_s6 = scalar_lea.sflag [#allocation4], %s512_s30  ;;  %s1659_s23 = int_to_ptr.vmem [resolvable:$true] %s1658_s23 }
  0x41   : > { %v546_v21 = vsub.f32 1.0, %v545_v20  ;;  %s2201_s27 = sshra.s32 %s1661_s18, 4  ;;  %s2207_s26 = scalar_lea.hbm %s2903_s12, 16  ;;  %s2202_s27 = int_to_ptr.hbm [resolvable:$true] %s2201_s27 }
  0x42   : > { %s2203_s14 = scalar_lea.hbm %s2202_s27, 8  ;;  %p2208_p4 = scmp.lt.s32.totalorder %s2202_s27, %s2903_s12 }
  0x43   : > { %v547_v22 = vmul.f32 %v1961_v19, %v546_v21  ;;  %p2204_p1 = scmp.ne.s32.totalorder %s2202_s27, %s2203_s14  ;;  %p2209_p7 = scmp.lt.s32.totalorder %s2207_s26, %s2203_s14 }
  0x45   : > { %v548_v23 = vadd.f32 %v1961_v19, %v547_v22  ;;  %p2205_p2 = pnand %p2204_p1, %p2381_p5  ;;  %p2210_p8 = por %p2209_p7, %p2208_p4 }
  0x47   : > { %587 = vadd.xlane.f32.xlu2 %v586_v9  ;;  %542 = vadd.xlane.f32.xlu0 %v541_v10  ;;  %v2477_v24 = vsel %vm549_vm1, %v1961_v19, %v548_v23  ;;  %v794_v9 = vld [vmem:[#allocation7] sm:$0xff]  ;;  %p2206_p3 = pneg %p2205_p2 }
  0x48   : > { %581 = vadd.xlane.f32.xlu1 %v580_v11 }
  0x49   : > { %p2211_p9 = pnand %p2210_p8, %p2206_p3 }
  0x4f   : > { %593 = vadd.xlane.f32.xlu2 %v592_v14  ;;  %590 = vadd.xlane.f32.xlu0 %v589_v15  ;;  %v768_v14 = vld [vmem:[%s2895_s4 + $0x10] sm:$0xff]  ;;  %v767_v15 = vld [vmem:[%s2895_s4 + $0x8] sm:$0xff] }
  0x57   : > { %596 = vadd.xlane.f32.xlu2 %v595_v17 }
  0xb2   : > { %v585_v25 = vpop.xlane.xlu2 %584  ;;  %v576_v26 = vpop.xlane.xlu0 %575 }
  0xb3   : > { %v598_v27 = vmul.f32 %v576_v26, %v2477_v24  ;;  %v579_v28 = vpop.xlane.xlu1 %578  ;;  %v601_v36 = vmul.f32 %v585_v25, %v2477_v24 }
  0xb4   : > { %v599_v29 = vmul.f32 %v579_v28, %v2477_v24 }
  0xb5   : > { %v2481_v30 = vsub.f32 %v526_v1, %v598_v27  ;;  %v2498_v44 = vsub.f32 %v529_v0, %v601_v36 }
  0xb6   : > { %v2483_v31 = vsub.f32 %v527_v4, %v599_v29 }
  0xb7   : > { %v614_v32 = vmul.f32 %v2481_v30, %v2481_v30  ;;  %v617_v54 = vmul.f32 %v2498_v44, %v2498_v44 }
  0xb8   : > { %v615_v40 = vmul.f32 %v2483_v31, %v2483_v31 }
  0xb9   : > { %v622_v33 = vsel %vm540_vm0, %v614_v32, 0.0  ;;  %v631_v58 = vsel %vm540_vm0, %v617_v54, 0.0 }
  0xba   : > { %v588_v34 = vpop.xlane.xlu2 %587  ;;  %623 = vadd.xlane.f32.xlu1 %v622_v33  ;;  %v543_v35 = vpop.xlane.xlu0 %542  ;;  %v625_v46 = vsel %vm540_vm0, %v615_v40, 0.0 }
  0xbb   : > { %v602_v37 = vmul.f32 %v588_v34, %v2477_v24  ;;  %v551_v38 = vmul.f32 %v2477_v24, %v543_v35  ;;  %v582_v39 = vpop.xlane.xlu1 %581 }
  0xbc   : > { %v600_v41 = vmul.f32 %v582_v39, %v2477_v24 }
  0xbd   : > { %v2494_v42 = vsub.f32 %v530_v6, %v602_v37  ;;  %v2496_v43 = vsub.f32 %v525_v7, %v551_v38  ;;  %v797_v6 = vld [vmem:[#allocation7 + $0x18] sm:$0xff]  ;;  %v796_v7 = vld [vmem:[#allocation7 + $0x10] sm:$0xff] }
  0xbe   : > { %v2505_v48 = vsub.f32 %v528_v8, %v600_v41  ;;  %854 = vmatpush.msra.mxu2 %v797_v6  ;;  %810 = vmatpush.msra.mxu1 %v797_v6  ;;  %v795_v8 = vld [vmem:[#allocation7 + $0x8] sm:$0xff] }
  0xbf   : > { %v618_v45 = vmul.f32 %v2494_v42, %v2494_v42  ;;  %v553_v47 = vmul.f32 %v2496_v43, %v2496_v43 }
  0xc0   : > { %v616_v55 = vmul.f32 %v2505_v48, %v2505_v48  ;;  %855 = vmatpush.msra.mxu2 %v796_v7  ;;  %811 = vmatpush.msra.mxu1 %v796_v7 }
  0xc1   : > { %v634_v49 = vsel %vm540_vm0, %v618_v45, 0.0  ;;  %v554_v50 = vsel %vm540_vm0, %v553_v47, 0.0  ;;  %v2558_v47 = vld [vmem:[#allocation2] ss:$0 sm:$0xff] }
  0xc2   : > { %635 = vadd.xlane.f32.xlu2 %v634_v49  ;;  %v594_v51 = vpop.xlane.xlu2 %593  ;;  %626 = vadd.xlane.f32.xlu1 %v625_v46  ;;  %v591_v52 = vpop.xlane.xlu0 %590  ;;  %v628_v59 = vsel %vm540_vm0, %v616_v55, 0.0 }
  0xc3   : > { %v604_v53 = vmul.f32 %v594_v51, %v2477_v24  ;;  %555 = vadd.xlane.f32.xlu0 %v554_v50  ;;  %v603_v56 = vmul.f32 %v591_v52, %v2477_v24  ;;  %856 = vmatpush.msra.mxu2 %v795_v8  ;;  %v2562_v52 = vld [vmem:[#allocation2 + $0x1] ss:$0 sm:$0xff] }
  0xc4   : > { %812 = vmatpush.msra.mxu1 %v795_v8 }
  0xc5   : > { %v2515_v57 = vsub.f32 %v532_v12, %v604_v53  ;;  %v2519_v60 = vsub.f32 %v531_v13, %v603_v56  ;;  %857 = vmatpush.msra.mxu2 %v794_v9  ;;  %v769_v12 = vld [vmem:[%s2895_s4 + $0x18] sm:$0xff] }
  0xc6   : > { %813 = vmatpush.msra.mxu1 %v794_v9  ;;  %785 = vmatpush.msra.mxu0 %v769_v12 }
  0xc7   : > { %v620_v63 = vmul.f32 %v2515_v57, %v2515_v57  ;;  %v619_v0 = vmul.f32 %v2519_v60, %v2519_v60 }
  0xc8   : > { %786 = vmatpush.msra.mxu0 %v768_v14 }
  0xc9   : > { %v640_v3 = vsel %vm540_vm0, %v620_v63, 0.0  ;;  %v637_v4 = vsel %vm540_vm0, %v619_v0, 0.0 }
  0xca   : > { %v597_v61 = vpop.xlane.xlu2 %596  ;;  %632 = vadd.xlane.f32.xlu1 %v631_v58  ;;  %787 = vmatpush.msra.mxu0 %v767_v15 }
  0xcb   : > { %v605_v62 = vmul.f32 %v597_v61, %v2477_v24  ;;  %629 = vadd.xlane.f32.xlu0 %v628_v59 }
  0xcd   : > { %v2526_v1 = vsub.f32 %v533_v16, %v605_v62  ;;  %v766_v16 = vld [vmem:[%s2895_s4] sm:$0xff] }
  0xce   : > { %788 = vmatpush.msra.mxu0 %v766_v16 }
  0xcf   : > { %v621_v2 = vmul.f32 %v2526_v1, %v2526_v1 }
  0xd1   : > { %v643_v5 = vsel %vm540_vm0, %v621_v2, 0.0 }
  0xd2   : > { %644 = vadd.xlane.f32.xlu2 %v643_v5  ;;  %641 = vadd.xlane.f32.xlu1 %v640_v3 }
  0xd3   : > { %638 = vadd.xlane.f32.xlu0 %v637_v4 }
 0x12d   : > { %v624_v10 = vpop.xlane.xlu1 %623 }
 0x12e   : > { %v646_v11 = vmul.f32 %v624_v10, %v2477_v24 }
 0x130   : > { %v654_v13 = vadd.f32 1e-05, %v646_v11 }
 0x132   : > { %1962 = vrsqrt.f32 %v654_v13  ;;  %vm668_vm3 = vweird.f32 %v654_v13 }
 0x135   : > { %v627_v17 = vpop.xlane.xlu1 %626  ;;  %v636_v22 = vpop.xlane.xlu2 %635 }
 0x136   : > { %v647_v18 = vmul.f32 %v627_v17, %v2477_v24  ;;  %v556_v19 = vpop.xlane.xlu0 %555  ;;  %v650_v28 = vmul.f32 %v636_v22, %v2477_v24 }
 0x137   : > { %v557_v20 = vmul.f32 %v556_v19, %v2477_v24 }
 0x138   : > { %v1963_v21 = vpop.eup %1962  ;;  %v655_v23 = vadd.f32 1e-05, %v647_v18  ;;  %v2550_v36 = vadd.f32 1e-05, %v650_v28 }
 0x139   : > { %v663_v25 = vmul.f32 %v1963_v21, %v654_v13  ;;  %v558_v26 = vadd.f32 1e-05, %v557_v20  ;;  %vm669_vm2 = vweird.f32 %v1963_v21 }
 0x13a   : > { %1964 = vrsqrt.f32 %v655_v23  ;;  %vm670_vm4 = vmor %vm668_vm3, %vm669_vm2  ;;  %vm678_vm5 = vweird.f32 %v655_v23  ;;  %vm708_vm2 = vweird.f32 %v2550_v36 }
 0x13b   : > { %v664_v27 = vmul.f32 %v1963_v21, %v663_v25  ;;  %1966 = vrsqrt.f32 %v558_v26  ;;  %vm565_vm8 = vweird.f32 %v558_v26 }
 0x13d   : > { %v665_v29 = vmul.f32 0.5, %v664_v27  ;;  %v633_v32 = vpop.xlane.xlu1 %632 }
 0x13e   : > { %v649_v33 = vmul.f32 %v633_v32, %v2477_v24  ;;  %v630_v34 = vpop.xlane.xlu0 %629 }
 0x13f   : > { %v666_v35 = vsub.f32 1.5, %v665_v29  ;;  %v648_v37 = vmul.f32 %v630_v34, %v2477_v24 }
 0x140   : > { %v2553_v38 = vadd.f32 1e-05, %v649_v33  ;;  %v1965_v39 = vpop.eup %1964 }
 0x141   : > { %v667_v40 = vmul.f32 %v1963_v21, %v666_v35  ;;  %v2555_v41 = vadd.f32 1e-05, %v648_v37  ;;  %v1967_v45 = vpop.eup %1966  ;;  %v673_v46 = vmul.f32 %v1965_v39, %v655_v23  ;;  %vm679_vm6 = vweird.f32 %v1965_v39 }
 0x142   : > { %1968 = vrsqrt.f32 %v2553_v38  ;;  %v560_v50 = vmul.f32 %v1967_v45, %v558_v26  ;;  %vm566_vm7 = vweird.f32 %v1967_v45  ;;  %vm680_vm9 = vmor %vm678_vm5, %vm679_vm6  ;;  %vm698_vm13 = vweird.f32 %v2553_v38 }
 0x143   : > { %v671_v49 = vsel %vm670_vm4, %v1963_v21, %v667_v40  ;;  %1970 = vrsqrt.f32 %v2550_v36  ;;  %v674_v51 = vmul.f32 %v1965_v39, %v673_v46  ;;  %vm567_vm10 = vmor %vm565_vm8, %vm566_vm7  ;;  %vm688_vm11 = vweird.f32 %v2555_v41 }
 0x144   : > { %1972 = vrsqrt.f32 %v2555_v41  ;;  %v742_v53 = vmul.f32 %v671_v49, %v2481_v30  ;;  %v561_v54 = vmul.f32 %v1967_v45, %v560_v50 }
 0x145   : > { %v675_v55 = vmul.f32 0.5, %v674_v51  ;;  %v642_v63 = vpop.xlane.xlu1 %641  ;;  %v645_v25 = vpop.xlane.xlu2 %644 }
 0x146   : > { %v639_v56 = vpop.xlane.xlu0 %638  ;;  %v750_v58 = vmul.f32 %v2558_v47, %v742_v53  ;;  %v562_v59 = vmul.f32 0.5, %v561_v54  ;;  %v652_v10 = vmul.f32 %v642_v63, %v2477_v24  ;;  %v653_v29 = vmul.f32 %v645_v25, %v2477_v24 }
 0x147   : > { %v676_v62 = vsub.f32 1.5, %v675_v55  ;;  %v651_v0 = vmul.f32 %v639_v56, %v2477_v24 }
 0x148   : > { %v2566_v61 = vpop.eup %1968  ;;  %v758_v2 = vadd.f32 %v2562_v52, %v750_v58  ;;  %v563_v4 = vsub.f32 1.5, %v562_v59  ;;  %v2586_v20 = vadd.f32 1e-05, %v652_v10 }
 0x149   : > { %v2570_v3 = vpop.eup %1970  ;;  %v693_v30 = vmul.f32 %v2566_v61, %v2553_v38  ;;  %v677_v6 = vmul.f32 %v1965_v39, %v676_v62  ;;  %v2581_v13 = vadd.f32 1e-05, %v651_v0  ;;  %vm699_vm14 = vweird.f32 %v2566_v61 }
 0x14a   : > { %v1973_v5 = vpop.eup %1972  ;;  %1814 = vmatmul.msk.f32.vlgmr.msra.gmra.mxu2 %vm540_vm0, %v758_v2  ;;  %v564_v7 = vmul.f32 %v1967_v45, %v563_v4  ;;  %v703_v11 = vmul.f32 %v2570_v3, %v2550_v36  ;;  %vm700_vm1 = vmor %vm698_vm13, %vm699_vm14  ;;  %vm709_vm3 = vweird.f32 %v2570_v3  ;;  %vm728_vm8 = vweird.f32 %v2586_v20 }
 0x14b   : > { %v694_v8 = vmul.f32 %v2566_v61, %v693_v30  ;;  %v683_v9 = vmul.f32 %v1973_v5, %v2555_v41  ;;  %v681_v12 = vsel %vm680_vm9, %v1965_v39, %v677_v6  ;;  %1974 = vrsqrt.f32 %v2581_v13  ;;  %vm710_vm4 = vmor %vm708_vm2, %vm709_vm3 }
 0x14c   : > { %v568_v14 = vsel %vm567_vm10, %v1967_v45, %v564_v7  ;;  %v743_v17 = vmul.f32 %v681_v12, %v2483_v31  ;;  %v704_v22 = vmul.f32 %v2570_v3, %v703_v11  ;;  %vm689_vm12 = vweird.f32 %v1973_v5 }
 0x14d   : > { %v695_v15 = vmul.f32 0.5, %v694_v8  ;;  %v684_v16 = vmul.f32 %v1973_v5, %v683_v9  ;;  %v569_v18 = vmul.f32 %v568_v14, %v2496_v43  ;;  %1976 = vrsqrt.f32 %v2586_v20  ;;  %vm690_vm15 = vmor %vm688_vm11, %vm689_vm12 }
 0x14e   : > { %v751_v21 = vmul.f32 %v2558_v47, %v743_v17  ;;  %v705_v33 = vmul.f32 0.5, %v704_v22  ;;  %v661_v39 = vadd.f32 1e-05, %v653_v29  ;;  %vm718_vm5 = vweird.f32 %v2581_v13 }
 0x14f   : > { %v685_v19 = vmul.f32 0.5, %v684_v16  ;;  %v696_v23 = vsub.f32 1.5, %v695_v15  ;;  %v571_v26 = vmul.f32 %v2558_v47, %v569_v18  ;;  %vm1008_vm14 = vcmask 31744  }
 0x150   : > { %v759_v43 = vadd.f32 %v2562_v52, %v751_v21  ;;  %v706_v40 = vsub.f32 1.5, %v705_v33  ;;  %1978 = vrsqrt.f32 %v661_v39  ;;  %vm738_vm11 = vweird.f32 %v661_v39 }
 0x151   : > { %v686_v27 = vsub.f32 1.5, %v685_v19  ;;  %v573_v31 = vadd.f32 %v2562_v52, %v571_v26  ;;  %v1975_v32 = vpop.eup %1974  ;;  %v697_v34 = vmul.f32 %v2566_v61, %v696_v23  ;;  %v886_v19 = vld [vmem:[%s2900_s9 + $0x10] sm:$0xff]  ;;  %vm1077_vm2 = vcmask 1043459  }
 0x152   : > { %v713_v37 = vmul.f32 %v1975_v32, %v2581_v13  ;;  %1815 = vmatmul.msk.f32.gmra.mxu2 %vm540_vm0, %v759_v43  ;;  %v707_v53 = vmul.f32 %v2570_v3, %v706_v40  ;;  %vm719_vm6 = vweird.f32 %v1975_v32  ;;  %vm1079_vm3 = vcmask 1044484  }
 0x153   : > { %v687_v28 = vmul.f32 %v1973_v5, %v686_v27  ;;  %1812 = vmatmul.msk.f32.vlgmr.msra.gmra.mxu0 %vm540_vm0, %v573_v31  ;;  %1813 = vmatmul.msk.f32.vlgmr.msra.gmra.mxu1 %vm540_vm0, %v573_v31  ;;  %v701_v41 = vsel %vm700_vm1, %v2566_v61, %v697_v34  ;;  %v1977_v49 = vpop.eup %1976  ;;  %vm720_vm7 = vmor %vm718_vm5, %vm719_vm6  ;;  %vm1075_vm1 = vcmask 1042434   ;;  %vm1083_vm5 = vcmask 1046534  }
 0x154   : > { %v714_v45 = vmul.f32 %v1975_v32, %v713_v37  ;;  %v745_v51 = vmul.f32 %v701_v41, %v2498_v44  ;;  %v711_v56 = vsel %vm710_vm4, %v2570_v3, %v707_v53  ;;  %vm729_vm9 = vweird.f32 %v1977_v49 }
 0x155   : > { %v691_v35 = vsel %vm690_vm15, %v1973_v5, %v687_v28  ;;  %v746_v61 = vmul.f32 %v711_v56, %v2494_v42  ;;  %vm730_vm10 = vmor %vm728_vm8, %vm729_vm9  ;;  %vm1073_vm15 = vcmask 1041409   ;;  %vm1081_vm4 = vcmask 1045509  }
 0x156   : > { %v744_v38 = vmul.f32 %v691_v35, %v2505_v48  ;;  %v723_v48 = vmul.f32 %v1977_v49, %v2586_v20  ;;  %v715_v54 = vmul.f32 0.5, %v714_v45  ;;  %v753_v55 = vmul.f32 %v2558_v47, %v745_v51  ;;  %v1979_v59 = vpop.eup %1978 }
 0x157   : > { %v733_v62 = vmul.f32 %v1979_v59, %v661_v39  ;;  %v754_v2 = vmul.f32 %v2558_v47, %v746_v61  ;;  %vm739_vm12 = vweird.f32 %v1979_v59  ;;  %vm1085_vm6 = vcmask 1047559  }
 0x158   : > { %v752_v46 = vmul.f32 %v2558_v47, %v744_v38  ;;  %v724_v36 = vmul.f32 %v1977_v49, %v723_v48  ;;  %v716_v58 = vsub.f32 1.5, %v715_v54  ;;  %v761_v44 = vadd.f32 %v2562_v52, %v753_v55  ;;  %vm740_vm13 = vmor %vm738_vm11, %vm739_vm12 }
 0x159   : > { %v734_v4 = vmul.f32 %v1979_v59, %v733_v62  ;;  %v762_v5 = vadd.f32 %v2562_v52, %v754_v2 }
 0x15a   : > { %v760_v50 = vadd.f32 %v2562_v52, %v752_v46  ;;  %v725_v63 = vmul.f32 0.5, %v724_v36  ;;  %v717_v0 = vmul.f32 %v1975_v32, %v716_v58 }
 0x15b   : > { %v735_v7 = vmul.f32 0.5, %v734_v4 }
 0x15c   : > { %1816 = vmatmul.msk.f32.gmra.mxu2 %vm540_vm0, %v760_v50  ;;  %v726_v3 = vsub.f32 1.5, %v725_v63  ;;  %v721_v30 = vsel %vm720_vm7, %v1975_v32, %v717_v0  ;;  %vm1273_vm7 = vcmask 1043456  }
 0x15d   : > { %v747_v6 = vmul.f32 %v721_v30, %v2519_v60  ;;  %v736_v9 = vsub.f32 1.5, %v735_v7 }
 0x15e   : > { %v727_v42 = vmul.f32 %v1977_v49, %v726_v3 }
 0x15f   : > { %v755_v8 = vmul.f32 %v2558_v47, %v747_v6  ;;  %v737_v13 = vmul.f32 %v1979_v59, %v736_v9 }
 0x160   : > { %v731_v10 = vsel %vm730_vm10, %v1977_v49, %v727_v42 }
 0x161   : > { %v763_v11 = vadd.f32 %v2562_v52, %v755_v8  ;;  %v748_v12 = vmul.f32 %v731_v10, %v2515_v57  ;;  %v741_v14 = vsel %vm740_vm13, %v1979_v59, %v737_v13  ;;  %v887_v57 = vld [vmem:[%s2900_s9 + $0x18] sm:$0xff] }
 0x162   : > { %v749_v16 = vmul.f32 %v741_v14, %v2526_v1  ;;  %903 = vmatpush.msra.mxu3 %v887_v57  ;;  %979 = vmatpush.msrb.mxu0 %v887_v57  ;;  %v885_v1 = vld [vmem:[%s2900_s9 + $0x8] sm:$0xff] }
 0x163   : > { %v756_v60 = vmul.f32 %v2558_v47, %v748_v12 }
 0x164   : > { %1817 = vmatmul.msk.f32.gmra.mxu2 %vm540_vm0, %v761_v44  ;;  %v757_v17 = vmul.f32 %v2558_v47, %v749_v16  ;;  %904 = vmatpush.msra.mxu3 %v886_v19  ;;  %v884_v47 = vld [vmem:[%s2900_s9] sm:$0xff] }
 0x165   : > { %v764_v15 = vadd.f32 %v2562_v52, %v756_v60  ;;  %980 = vmatpush.msrb.mxu0 %v886_v19 }
 0x166   : > { %v765_v18 = vadd.f32 %v2562_v52, %v757_v17  ;;  %905 = vmatpush.msra.mxu3 %v885_v1 }
 0x167   : > { %981 = vmatpush.msrb.mxu0 %v885_v1 }
 0x168   : > { %906 = vmatpush.msra.mxu3 %v884_v47 }
 0x169   : > { %982 = vmatpush.msrb.mxu0 %v884_v47 }
 0x16c   : > { %1818 = vmatmul.msk.f32.gmra.mxu2 %vm540_vm0, %v762_v5 }
 0x174   : > { %1819 = vmatmul.msk.f32.gmra.mxu2 %vm540_vm0, %v763_v11 }
 0x17c   : > { %1820 = vmatmul.msk.f32.gmra.mxu2 %vm540_vm0, %v764_v15 }
 0x184   : > { %1821 = vmatmul.msk.f32.gmra.mxu2 %vm540_vm0, %v765_v18 }
 0x1cd   : > { %v859_v52 = vpop.f32.mrf.mxu2 }
 0x1ce   : > { %1375 = vrot.lane.b32.xlu0 %v859_v52, %s2276_s25 }
 0x1d0   : > { %v790_v20 = vpop.f32.mrf.mxu0  ;;  %v815_v22 = vpop.f32.mrf.mxu1 }
 0x1d1   : > { %v793_v21 = vmul.f32 0.35355338, %v790_v20 }
 0x1d3   : > { %v883_v23 = vmul.f32 %v815_v22, %v793_v21  ;;  %v919_v25 = vperm.slane %v793_v21, 0  ;;  %v912_v26 = vrot.slane %v793_v21, 1  ;;  %v913_v32 = vrot.slane %v793_v21, 2 }
 0x1d4   : > { %v914_v37 = vrot.slane %v793_v21, 3  ;;  %v915_v41 = vrot.slane %v793_v21, 4  ;;  %v916_v50 = vrot.slane %v793_v21, 5  ;;  %v917_v54 = vrot.slane %v793_v21, 6 }
 0x1d5   : > { %1822 = vmatmul.msk.f32.vlgmr.msra.gmra.mxu3 %vm540_vm0, %v883_v23  ;;  %v935_v27 = vmul.f32 %v919_v25, %v859_v52  ;;  %v862_v31 = vpop.f32.mrf.mxu2  ;;  %v920_v43 = vperm.slane %v912_v26, 0  ;;  %v921_v33 = vperm.slane %v913_v32, 0  ;;  %v918_v58 = vrot.slane %v793_v21, 7 }
 0x1d6   : > { %1377 = vrot.lane.b32.xlu1 %v862_v31, %s2276_s25  ;;  %v922_v38 = vperm.slane %v914_v37, 0  ;;  %v923_v45 = vperm.slane %v915_v41, 0  ;;  %v924_v51 = vperm.slane %v916_v50, 0  ;;  %v925_v55 = vperm.slane %v917_v54, 0 }
 0x1d7   : > { %1823 = vmatmul.msk.f32.vlgmr.msrb.gmra.mxu0 %vm540_vm0, %v935_v27  ;;  %v936_v28 = vmul.f32 %v920_v43, %v862_v31  ;;  %v926_v59 = vperm.slane %v918_v58, 0 }
 0x1df   : > { %v865_v29 = vpop.f32.mrf.mxu2  ;;  %1824 = vmatmul.msk.f32.gmra.mxu0 %vm540_vm0, %v936_v28 }
 0x1e0   : > { %1379 = vrot.lane.b32.xlu2 %v865_v29, %s2276_s25  ;;  %v937_v34 = vmul.f32 %v921_v33, %v865_v29 }
 0x1e7   : > { %v868_v35 = vpop.f32.mrf.mxu2  ;;  %1825 = vmatmul.msk.f32.gmra.mxu0 %vm540_vm0, %v937_v34 }
 0x1e8   : > { %1381 = vrot.lane.b32.xlu0 %v868_v35, %s2276_s25  ;;  %v938_v39 = vmul.f32 %v922_v38, %v868_v35 }
 0x1ef   : > { %v871_v40 = vpop.f32.mrf.mxu2  ;;  %1826 = vmatmul.msk.f32.gmra.mxu0 %vm540_vm0, %v938_v39 }
 0x1f0   : > { %1383 = vrot.lane.b32.xlu2 %v871_v40, %s2276_s25  ;;  %v939_v46 = vmul.f32 %v923_v45, %v871_v40 }
 0x1f7   : > { %v874_v49 = vpop.f32.mrf.mxu2  ;;  %1827 = vmatmul.msk.f32.gmra.mxu0 %vm540_vm0, %v939_v46 }
 0x1f8   : > { %1385 = vrot.lane.b32.xlu1 %v874_v49, %s2276_s25  ;;  %v940_v53 = vmul.f32 %v924_v51, %v874_v49 }
 0x1ff   : > { %v877_v48 = vpop.f32.mrf.mxu2  ;;  %1828 = vmatmul.msk.f32.gmra.mxu0 %vm540_vm0, %v940_v53 }
 0x200   : > { %1298 = vrot.lane.b32.xlu1 %v815_v22, %s2276_s25  ;;  %1387 = vrot.lane.b32.xlu0 %v877_v48, %s2276_s25  ;;  %v941_v56 = vmul.f32 %v925_v55, %v877_v48 }
 0x207   : > { %v880_v36 = vpop.f32.mrf.mxu2  ;;  %1829 = vmatmul.msk.f32.gmra.mxu0 %vm540_vm0, %v941_v56 }
 0x208   : > { %1389 = vrot.lane.b32.xlu2 %v880_v36, %s2276_s25  ;;  %v942_v44 = vmul.f32 %v926_v59, %v880_v36 }
 0x20f   : > { %1830 = vmatmul.msk.f32.gmra.mxu0 %vm540_vm0, %v942_v44 }
 0x254   : > { %v2665_v61 = vpop.f32.mrf.mxu0 }
 0x255   : > { %v1009_v30 = vsel %vm1008_vm14, %v2665_v61, -inf }
 0x256   : > { %v1010_v10 = vrot.slane %v1009_v30, 4 }
 0x258   : > { %v1011_v15 = vmax.f32 %v1009_v30, %v1010_v10 }
 0x25a   : > { %v1012_v52 = vrot.slane %v1011_v15, 2 }
 0x25c   : > { %v2667_v62 = vpop.f32.mrf.mxu0  ;;  %v1013_v31 = vmax.f32 %v1011_v15, %v1012_v52 }
 0x25d   : > { %v1016_v4 = vsel %vm1008_vm14, %v2667_v62, -inf }
 0x25e   : > { %v1017_v6 = vrot.slane %v1016_v4, 4  ;;  %v1014_v39 = vrot.slane %v1013_v31, 1 }
 0x260   : > { %v1018_v13 = vmax.f32 %v1016_v4, %v1017_v6  ;;  %v1015_v48 = vmax.f32 %v1013_v31, %v1014_v39 }
 0x262   : > { %v1019_v18 = vrot.slane %v1018_v13, 2 }
 0x264   : > { %v2669_v63 = vpop.f32.mrf.mxu0  ;;  %v1020_v23 = vmax.f32 %v1018_v13, %v1019_v18 }
 0x265   : > { %v1023_v3 = vsel %vm1008_vm14, %v2669_v63, -inf }
 0x266   : > { %v1024_v8 = vrot.slane %v1023_v3, 4  ;;  %v1021_v32 = vrot.slane %v1020_v23, 1 }
 0x268   : > { %v1025_v14 = vmax.f32 %v1023_v3, %v1024_v8  ;;  %v1022_v46 = vmax.f32 %v1020_v23, %v1021_v32 }
 0x26a   : > { %v1026_v1 = vrot.slane %v1025_v14, 2  ;;  %v1074_v36 = vsel %vm1073_vm15, %v1022_v46, %v1015_v48 }
 0x26c   : > { %v2671_v0 = vpop.f32.mrf.mxu0  ;;  %v1027_v27 = vmax.f32 %v1025_v14, %v1026_v1 }
 0x26d   : > { %v1030_v5 = vsel %vm1008_vm14, %v2671_v0, -inf }
 0x26e   : > { %v1031_v11 = vrot.slane %v1030_v5, 4  ;;  %v1028_v35 = vrot.slane %v1027_v27, 1 }
 0x270   : > { %v1032_v16 = vmax.f32 %v1030_v5, %v1031_v11  ;;  %v1029_v51 = vmax.f32 %v1027_v27, %v1028_v35 }
 0x272   : > { %v1033_v20 = vrot.slane %v1032_v16, 2  ;;  %v1076_v44 = vsel %vm1075_vm1, %v1029_v51, %v1074_v36 }
 0x274   : > { %v2673_v2 = vpop.f32.mrf.mxu0  ;;  %v1034_v43 = vmax.f32 %v1032_v16, %v1033_v20 }
 0x275   : > { %v1037_v7 = vsel %vm1008_vm14, %v2673_v2, -inf }
 0x276   : > { %v1038_v12 = vrot.slane %v1037_v7, 4  ;;  %v1035_v40 = vrot.slane %v1034_v43, 1 }
 0x278   : > { %v1039_v17 = vmax.f32 %v1037_v7, %v1038_v12  ;;  %v1036_v54 = vmax.f32 %v1034_v43, %v1035_v40 }
 0x27a   : > { %v1040_v22 = vrot.slane %v1039_v17, 2  ;;  %v1078_v3 = vsel %vm1077_vm2, %v1036_v54, %v1076_v44 }
 0x27c   : > { %v2685_v42 = vpop.f32.mrf.mxu0  ;;  %v1041_v29 = vmax.f32 %v1039_v17, %v1040_v22 }
 0x27d   : > { %v1044_v9 = vsel %vm1008_vm14, %v2685_v42, -inf }
 0x27e   : > { %v1045_v60 = vrot.slane %v1044_v9, 4  ;;  %v1042_v45 = vrot.slane %v1041_v29, 1 }
 0x280   : > { %v1046_v57 = vmax.f32 %v1044_v9, %v1045_v60  ;;  %v1043_v56 = vmax.f32 %v1041_v29, %v1042_v45  ;;  %v2703_v9 = vpop.f32.mrf.mxu3 }
 0x282   : > { %v1047_v25 = vrot.slane %v1046_v57, 2  ;;  %v1080_v5 = vsel %vm1079_vm3, %v1043_v56, %v1078_v3 }
 0x284   : > { %v2689_v19 = vpop.f32.mrf.mxu0  ;;  %v1048_v33 = vmax.f32 %v1046_v57, %v1047_v25 }
 0x285   : > { %v1051_v47 = vsel %vm1008_vm14, %v2689_v19, -inf }
 0x286   : > { %v1052_v21 = vrot.slane %v1051_v47, 4  ;;  %v1049_v49 = vrot.slane %v1048_v33, 1 }
 0x288   : > { %v1053_v26 = vmax.f32 %v1051_v47, %v1052_v21  ;;  %v1050_v58 = vmax.f32 %v1048_v33, %v1049_v49 }
 0x28a   : > { %v1054_v28 = vrot.slane %v1053_v26, 2  ;;  %v1082_v6 = vsel %vm1081_vm4, %v1050_v58, %v1080_v5 }
 0x28c   : > { %v2693_v34 = vpop.f32.mrf.mxu0  ;;  %v1055_v37 = vmax.f32 %v1053_v26, %v1054_v28 }
 0x28d   : > { %v1058_v38 = vsel %vm1008_vm14, %v2693_v34, -inf }
 0x28e   : > { %v1059_v41 = vrot.slane %v1058_v38, 4  ;;  %v1056_v53 = vrot.slane %v1055_v37, 1 }
 0x290   : > { %v1060_v50 = vmax.f32 %v1058_v38, %v1059_v41  ;;  %v1057_v4 = vmax.f32 %v1055_v37, %v1056_v53  ;;  %v1269_v38 = vld [vmem:[#allocation11] sm:$0xf] }
 0x291   : > { %1833 = vmatpush.msk.msrb.mxu3 %vm1273_vm7, %v1269_v38  ;;  %1831 = vmatpush.msk.msrb.mxu1 %vm1273_vm7, %v1269_v38 }
 0x292   : > { %v1061_v55 = vrot.slane %v1060_v50, 2  ;;  %v1084_v8 = vsel %vm1083_vm5, %v1057_v4, %v1082_v6 }
 0x294   : > { %v1062_v59 = vmax.f32 %v1060_v50, %v1061_v55 }
 0x296   : > { %v1063_v30 = vrot.slane %v1062_v59, 1 }
 0x298   : > { %v1064_v7 = vmax.f32 %v1062_v59, %v1063_v30 }
 0x29a   : > { %v1086_v10 = vsel %vm1085_vm6, %v1064_v7, %v1084_v8 }
 0x29b   : > { %v1088_v11 = vmax.f32 %v2703_v9, %v1086_v10 }
 0x29d   : > { %v1093_v12 = vrot.slane %v1088_v11, 1  ;;  %v1094_v13 = vrot.slane %v1088_v11, 2  ;;  %v1095_v60 = vrot.slane %v1088_v11, 3  ;;  %v1096_v14 = vrot.slane %v1088_v11, 4 }
 0x29e   : > { %v1097_v15 = vrot.slane %v1088_v11, 5  ;;  %v1098_v16 = vrot.slane %v1088_v11, 6  ;;  %v1099_v17 = vrot.slane %v1088_v11, 7  ;;  %v1100_v18 = vperm.slane %v1088_v11, 0 }
 0x29f   : > { %v1101_v57 = vperm.slane %v1093_v12, 0  ;;  %v1102_v1 = vperm.slane %v1094_v13, 0  ;;  %v1103_v47 = vperm.slane %v1095_v60, 0  ;;  %v1104_v52 = vperm.slane %v1096_v14, 0 }
 0x2a0   : > { %v1105_v20 = vperm.slane %v1097_v15, 0  ;;  %v1106_v21 = vperm.slane %v1098_v16, 0  ;;  %v1107_v22 = vperm.slane %v1099_v17, 0  ;;  %v1116_v23 = vsub.f32 %v2665_v61, %v1100_v18 }
 0x2a1   : > { %v1117_v25 = vsub.f32 %v2667_v62, %v1101_v57  ;;  %v1118_v26 = vsub.f32 %v2669_v63, %v1102_v1  ;;  %v1119_v27 = vsub.f32 %v2671_v0, %v1103_v47  ;;  %v1120_v31 = vsub.f32 %v2673_v2, %v1104_v52  ;;  %v1140_v2 = vld [vmem:[%s2902_s11] sm:$0xff] }
 0x2a2   : > { %v1121_v43 = vsub.f32 %v2685_v42, %v1105_v20  ;;  %v1122_v28 = vsub.f32 %v2689_v19, %v1106_v21  ;;  %v1124_v29 = vmul.f32 1.442695, %v1116_v23  ;;  %v1123_v32 = vsub.f32 %v2693_v34, %v1107_v22 }
 0x2a3   : > { %v1126_v33 = vmul.f32 1.442695, %v1117_v25  ;;  %v1128_v35 = vmul.f32 1.442695, %v1118_v26  ;;  %v1130_v37 = vmul.f32 1.442695, %v1119_v27  ;;  %v1089_v39 = vsub.f32 %v2703_v9, %v1088_v11 }
 0x2a4   : > { %1980 = vpow2.f32 %v1124_v29  ;;  %v1132_v61 = vmul.f32 1.442695, %v1120_v31  ;;  %v1134_v62 = vmul.f32 1.442695, %v1121_v43  ;;  %v1136_v63 = vmul.f32 1.442695, %v1122_v28 }
 0x2a5   : > { %1982 = vpow2.f32 %v1126_v33  ;;  %v1138_v0 = vmul.f32 1.442695, %v1123_v32  ;;  %v1090_v58 = vmul.f32 1.442695, %v1089_v39 }
 0x2a6   : > { %1984 = vpow2.f32 %v1128_v35 }
 0x2a7   : > { %1986 = vpow2.f32 %v1130_v37 }
 0x2a8   : > { %1988 = vpow2.f32 %v1132_v61 }
 0x2a9   : > { %1990 = vpow2.f32 %v1134_v62 }
 0x2aa   : > { %v1981_v42 = vpop.eup %1980  ;;  %1992 = vpow2.f32 %v1136_v63 }
 0x2ab   : > { %v1983_v19 = vpop.eup %1982  ;;  %1994 = vpow2.f32 %v1138_v0  ;;  %v2718_v34 = vmul.f32 %v1981_v42, %v1140_v2 }
 0x2ac   : > { %v1985_v40 = vpop.eup %1984  ;;  %v2721_v41 = vmul.f32 %v1983_v19, %v1140_v2  ;;  %1996 = vpow2.f32 %v1090_v58 }
 0x2ad   : > { %v1987_v45 = vpop.eup %1986  ;;  %v2723_v46 = vmul.f32 %v1985_v40, %v1140_v2  ;;  %v1149_v49 = vsel %vm1008_vm14, %v2718_v34, 0.0 }
 0x2ae   : > { %v1989_v50 = vpop.eup %1988  ;;  %v2727_v51 = vmul.f32 %v1987_v45, %v1140_v2  ;;  %v1150_v53 = vrot.slane %v1149_v49, 4  ;;  %v1156_v48 = vsel %vm1008_vm14, %v2721_v41, 0.0 }
 0x2af   : > { %v1991_v54 = vpop.eup %1990  ;;  %v2731_v55 = vmul.f32 %v1989_v50, %v1140_v2  ;;  %v1157_v56 = vrot.slane %v1156_v48, 4  ;;  %v1163_v36 = vsel %vm1008_vm14, %v2723_v46, 0.0 }
 0x2b0   : > { %v1993_v59 = vpop.eup %1992  ;;  %v2735_v44 = vmul.f32 %v1991_v54, %v1140_v2  ;;  %v1151_v4 = vadd.f32 %v1150_v53, %v1149_v49  ;;  %v1164_v3 = vrot.slane %v1163_v36, 4  ;;  %v1170_v30 = vsel %vm1008_vm14, %v2727_v51, 0.0 }
 0x2b1   : > { %v1995_v5 = vpop.eup %1994  ;;  %v2739_v6 = vmul.f32 %v1993_v59, %v1140_v2  ;;  %v1158_v7 = vadd.f32 %v1157_v56, %v1156_v48  ;;  %v1171_v8 = vrot.slane %v1170_v30, 4  ;;  %v1177_v9 = vsel %vm1008_vm14, %v2731_v55, 0.0 }
 0x2b2   : > { %v2743_v10 = vmul.f32 %v1995_v5, %v1140_v2  ;;  %v1152_v11 = vrot.slane %v1151_v4, 2  ;;  %v1165_v12 = vadd.f32 %v1164_v3, %v1163_v36  ;;  %v1178_v13 = vrot.slane %v1177_v9, 4 }
 0x2b3   : > { %v1159_v60 = vrot.slane %v1158_v7, 2  ;;  %v1172_v14 = vadd.f32 %v1171_v8, %v1170_v30  ;;  %v1184_v15 = vsel %vm1008_vm14, %v2735_v44, 0.0  ;;  %v1191_v16 = vsel %vm1008_vm14, %v2739_v6, 0.0 }
 0x2b4   : > { %v1153_v17 = vadd.f32 %v1152_v11, %v1151_v4  ;;  %v1166_v18 = vrot.slane %v1165_v12, 2  ;;  %v1179_v57 = vadd.f32 %v1178_v13, %v1177_v9  ;;  %v1185_v1 = vrot.slane %v1184_v15, 4 }
 0x2b5   : > { %v1160_v47 = vadd.f32 %v1159_v60, %v1158_v7  ;;  %v1173_v52 = vrot.slane %v1172_v14, 2  ;;  %v1192_v20 = vrot.slane %v1191_v16, 4  ;;  %v1198_v21 = vsel %vm1008_vm14, %v2743_v10, 0.0  ;;  %v1997_v7 = vpop.eup %1996 }
 0x2b6   : > { %v1154_v22 = vrot.slane %v1153_v17, 1  ;;  %v1167_v23 = vadd.f32 %v1166_v18, %v1165_v12  ;;  %v1180_v25 = vrot.slane %v1179_v57, 2  ;;  %v1186_v26 = vadd.f32 %v1185_v1, %v1184_v15 }
 0x2b7   : > { %v1161_v27 = vrot.slane %v1160_v47, 1  ;;  %v1174_v31 = vadd.f32 %v1173_v52, %v1172_v14  ;;  %v1193_v43 = vadd.f32 %v1192_v20, %v1191_v16  ;;  %v1199_v28 = vrot.slane %v1198_v21, 4 }
 0x2b8   : > { %v1155_v29 = vadd.f32 %v1154_v22, %v1153_v17  ;;  %v1168_v32 = vrot.slane %v1167_v23, 1  ;;  %v1181_v33 = vadd.f32 %v1180_v25, %v1179_v57  ;;  %v1187_v35 = vrot.slane %v1186_v26, 2 }
 0x2b9   : > { %v1162_v37 = vadd.f32 %v1161_v27, %v1160_v47  ;;  %v1175_v61 = vrot.slane %v1174_v31, 1  ;;  %v1194_v62 = vrot.slane %v1193_v43, 2  ;;  %v1200_v38 = vadd.f32 %v1199_v28, %v1198_v21 }
 0x2ba   : > { %v1169_v63 = vadd.f32 %v1168_v32, %v1167_v23  ;;  %v1182_v0 = vrot.slane %v1181_v33, 1  ;;  %v1188_v2 = vadd.f32 %v1187_v35, %v1186_v26 }
 0x2bb   : > { %v1176_v42 = vadd.f32 %v1175_v61, %v1174_v31  ;;  %v1195_v19 = vadd.f32 %v1194_v62, %v1193_v43  ;;  %v1201_v39 = vrot.slane %v1200_v38, 2  ;;  %v1213_v40 = vsel %vm1073_vm15, %v1162_v37, %v1155_v29 }
 0x2bc   : > { %v1183_v45 = vadd.f32 %v1182_v0, %v1181_v33  ;;  %v1189_v49 = vrot.slane %v1188_v2, 1  ;;  %v1214_v50 = vsel %vm1075_vm1, %v1169_v63, %v1213_v40  ;;  %v1378_v0 = vpop.permute.xlu1 %1377 }
 0x2bd   : > { %v1196_v53 = vrot.slane %v1195_v19, 1  ;;  %v1202_v48 = vadd.f32 %v1201_v39, %v1200_v38  ;;  %v1215_v54 = vsel %vm1077_vm2, %v1176_v42, %v1214_v50 }
 0x2be   : > { %v1190_v56 = vadd.f32 %v1189_v49, %v1188_v2  ;;  %v1216_v36 = vsel %vm1079_vm3, %v1183_v45, %v1215_v54 }
 0x2bf   : > { %v1197_v59 = vadd.f32 %v1196_v53, %v1195_v19  ;;  %v1203_v4 = vrot.slane %v1202_v48, 1 }
 0x2c0   : > { %v1217_v3 = vsel %vm1081_vm4, %v1190_v56, %v1216_v36  ;;  %v1483_v56 = vld [vmem:[#allocation8 + $0x18] sm:$0xff]  ;;  %v1482_v36 = vld [vmem:[#allocation8 + $0x10] sm:$0xff] }
 0x2c1   : > { %v1204_v30 = vadd.f32 %v1203_v4, %v1202_v48  ;;  %v1218_v5 = vsel %vm1083_vm5, %v1197_v59, %v1217_v3  ;;  %1500 = vmatpush.msra.mxu1 %v1483_v56 }
 0x2c3   : > { %v1219_v8 = vsel %vm1085_vm6, %v1204_v30, %v1218_v5  ;;  %1501 = vmatpush.msra.mxu1 %v1482_v36 }
 0x2c4   : > { %v1221_v9 = vadd.f32 %v1997_v7, %v1219_v8  ;;  %v1386_v53 = vpop.permute.xlu1 %1385 }
 0x2c6   : > { %1998 = vrcp.f32 %v1221_v9  ;;  %v1233_v60 = vand.u32 2147483648, %v1221_v9  ;;  %v1231_v14 = vand.u32 2147483647, %v1221_v9  ;;  %vm1227_vm9 = vweird.f32 %v1221_v9 }
 0x2c8   : > { %v1234_v16 = vor.u32 1.1754944e-38, %v1233_v60  ;;  %vm1232_vm11 = vcmp.eq.f32.partialorder %v1231_v14, 8.507059e+37 }
 0x2cc   : > { %v1999_v11 = vpop.eup %1998 }
 0x2cd   : > { %v1223_v12 = vmul.f32 %v1999_v11, %v1221_v9  ;;  %vm1228_vm8 = vweird.f32 %v1999_v11 }
 0x2ce   : > { %vm1229_vm10 = vmor %vm1227_vm9, %vm1228_vm8 }
 0x2cf   : > { %v1224_v13 = vsub.f32 1.0, %v1223_v12 }
 0x2d1   : > { %v1225_v58 = vmul.f32 %v1999_v11, %v1224_v13  ;;  %v1480_v13 = vld [vmem:[#allocation8] sm:$0xff] }
 0x2d3   : > { %v1226_v15 = vadd.f32 %v1999_v11, %v1225_v58 }
 0x2d5   : > { %v1230_v17 = vsel %vm1229_vm10, %v1999_v11, %v1226_v15 }
 0x2d6   : > { %v1235_v18 = vsel %vm1232_vm11, %v1234_v16, %v1230_v17 }
 0x2d7   : > { %v1236_v57 = vmul.f32 %v1997_v7, %v1235_v18  ;;  %v1245_v1 = vperm.slane %v1235_v18, 0  ;;  %v1240_v47 = vrot.slane %v1235_v18, 3  ;;  %v1241_v52 = vrot.slane %v1235_v18, 4  ;;  %v1481_v7 = vld [vmem:[#allocation8 + $0x8] sm:$0xff] }
 0x2d8   : > { %v1242_v20 = vrot.slane %v1235_v18, 5  ;;  %v1243_v21 = vrot.slane %v1235_v18, 6  ;;  %v1238_v23 = vrot.slane %v1235_v18, 1  ;;  %v1244_v25 = vrot.slane %v1235_v18, 7  ;;  %1502 = vmatpush.msra.mxu1 %v1481_v7 }
 0x2d9   : > { %1832 = vmatmul.msk.f32.vlgmr.msrb.gmra.mxu1 %vm1008_vm14, %v1236_v57  ;;  %v1261_v22 = vmul.f32 %v1245_v1, %v2718_v34  ;;  %v1248_v26 = vperm.slane %v1240_v47, 0  ;;  %v1249_v27 = vperm.slane %v1241_v52, 0  ;;  %v1239_v62 = vrot.slane %v1235_v18, 2 }
 0x2da   : > { %v1250_v31 = vperm.slane %v1242_v20, 0  ;;  %v1251_v43 = vperm.slane %v1243_v21, 0  ;;  %v1252_v28 = vperm.slane %v1244_v25, 0  ;;  %v1246_v37 = vperm.slane %v1238_v23, 0  ;;  %1503 = vmatpush.msra.mxu1 %v1480_v13 }
 0x2db   : > { %1834 = vmatmul.msk.f32.vlgmr.msrb.gmra.mxu3 %vm1008_vm14, %v1261_v22  ;;  %v1264_v29 = vmul.f32 %v1248_v26, %v2727_v51  ;;  %v1265_v32 = vmul.f32 %v1249_v27, %v2731_v55  ;;  %v1247_v38 = vperm.slane %v1239_v62, 0 }
 0x2dc   : > { %v1266_v33 = vmul.f32 %v1250_v31, %v2735_v44  ;;  %v1267_v35 = vmul.f32 %v1251_v43, %v2739_v6  ;;  %v1268_v34 = vmul.f32 %v1252_v28, %v2743_v10  ;;  %v1262_v61 = vmul.f32 %v1246_v37, %v2721_v41  ;;  %v1376_v6 = vpop.permute.xlu0 %1375  ;;  %v1380_v10 = vpop.permute.xlu2 %1379 }
 0x2dd   : > { %v1263_v63 = vmul.f32 %v1247_v38, %v2723_v46 }
 0x2e3   : > { %1835 = vmatmul.msk.f32.gmra.mxu3 %vm1008_vm14, %v1262_v61 }
 0x2e4   : > { %v1382_v42 = vpop.permute.xlu0 %1381  ;;  %v1384_v39 = vpop.permute.xlu2 %1383 }
 0x2eb   : > { %1836 = vmatmul.msk.f32.gmra.mxu3 %vm1008_vm14, %v1263_v63 }
 0x2ec   : > { %v1388_v16 = vpop.permute.xlu0 %1387 }
 0x2f3   : > { %1837 = vmatmul.msk.f32.gmra.mxu3 %vm1008_vm14, %v1264_v29 }
 0x2fb   : > { %1838 = vmatmul.msk.f32.gmra.mxu3 %vm1008_vm14, %v1265_v32  ;;  %v1390_v32 = vpop.permute.xlu2 %1389 }
 0x303   : > { %1839 = vmatmul.msk.f32.gmra.mxu3 %vm1008_vm14, %v1266_v33 }
 0x30b   : > { %1840 = vmatmul.msk.f32.gmra.mxu3 %vm1008_vm14, %v1267_v35 }
 0x313   : > { %1841 = vmatmul.msk.f32.gmra.mxu3 %vm1008_vm14, %v1268_v34 }
 0x35e   : > { %v1343_v51 = vpop.f32.mrf.mxu3 }
 0x35f   : > { %v1399_v40 = vmul.f32 %v1376_v6, %v1343_v51 }
 0x361   : > { %v1407_v59 = vsel %vm540_vm0, %v1399_v40, 0.0 }
 0x362   : > { %v1408_v11 = vrot.slane %v1407_v59, 4 }
 0x364   : > { %v1409_v17 = vadd.f32 %v1408_v11, %v1407_v59  ;;  %v1294_v59 = vpop.f32.mrf.mxu1 }
 0x366   : > { %v1346_v41 = vpop.f32.mrf.mxu3  ;;  %v1410_v23 = vrot.slane %v1409_v17, 2 }
 0x367   : > { %v1400_v2 = vmul.f32 %v1378_v0, %v1346_v41 }
 0x368   : > { %v1411_v33 = vadd.f32 %v1410_v23, %v1409_v17  ;;  %v1535_v23 = vld [vmem:[#allocation10] sm:$0xff] }
 0x369   : > { %v1414_v50 = vsel %vm540_vm0, %v1400_v2, 0.0 }
 0x36a   : > { %v1415_v30 = vrot.slane %v1414_v50, 4 }
 0x36c   : > { %v1416_v58 = vadd.f32 %v1415_v30, %v1414_v50 }
 0x36e   : > { %v1349_v55 = vpop.f32.mrf.mxu3  ;;  %v1417_v52 = vrot.slane %v1416_v58, 2 }
 0x36f   : > { %v1401_v19 = vmul.f32 %v1380_v10, %v1349_v55 }
 0x370   : > { %v1418_v31 = vadd.f32 %v1417_v52, %v1416_v58 }
 0x371   : > { %v1421_v48 = vsel %vm540_vm0, %v1401_v19, 0.0 }
 0x372   : > { %v1422_v8 = vrot.slane %v1421_v48, 4  ;;  %v1419_v38 = vrot.slane %v1418_v31, 1 }
 0x374   : > { %v1423_v15 = vadd.f32 %v1422_v8, %v1421_v48 }
 0x376   : > { %v1352_v44 = vpop.f32.mrf.mxu3  ;;  %v1424_v21 = vrot.slane %v1423_v15, 2 }
 0x377   : > { %v1402_v45 = vmul.f32 %v1382_v42, %v1352_v44  ;;  %v1412_v44 = vrot.slane %v1411_v33, 1 }
 0x378   : > { %v1425_v29 = vadd.f32 %v1424_v21, %v1423_v15  ;;  %v2006_v15 = vld [vmem:[%s2465_s19] sm:$0xff] }
 0x379   : > { %v1428_v4 = vsel %vm540_vm0, %v1402_v45, 0.0  ;;  %v1413_v40 = vadd.f32 %v1412_v44, %v1411_v33  ;;  %v1537_v21 = vld [vmem:[#allocation10 + $0x10] sm:$0xff]  ;;  %v1620_v44 = vld [vmem:[%s2899_s8 + $0x70] sm:$0xff] }
 0x37a   : > { %v1429_v12 = vrot.slane %v1428_v4, 4  ;;  %v1426_v51 = vrot.slane %v1425_v29, 1 }
 0x37c   : > { %v1430_v18 = vadd.f32 %v1429_v12, %v1428_v4  ;;  %v1427_v19 = vadd.f32 %v1426_v51, %v1425_v29 }
 0x37e   : > { %v1355_v46 = vpop.f32.mrf.mxu3  ;;  %v1431_v25 = vrot.slane %v1430_v18, 2 }
 0x37f   : > { %v1403_v49 = vmul.f32 %v1384_v39, %v1355_v46  ;;  %v1420_v46 = vadd.f32 %v1419_v38, %v1418_v31 }
 0x380   : > { %v1432_v35 = vadd.f32 %v1431_v25, %v1430_v18 }
 0x381   : > { %v1435_v5 = vsel %vm540_vm0, %v1403_v49, 0.0 }
 0x382   : > { %v1436_v60 = vrot.slane %v1435_v5, 4  ;;  %v1433_v6 = vrot.slane %v1432_v35, 1 }
 0x384   : > { %v1437_v1 = vadd.f32 %v1436_v60, %v1435_v5  ;;  %v1434_v45 = vadd.f32 %v1433_v6, %v1432_v35  ;;  %v1299_v5 = vpop.permute.xlu1 %1298  ;;  %v1955_v60 = vld [vmem:[#allocation2 + $0x2] ss:$0 sm:$0xff]  ;;  %v1956_v35 = vld [vmem:[#allocation2 + $0x3] ss:$0 sm:$0xff] }
 0x386   : > { %v1358_v54 = vpop.f32.mrf.mxu3  ;;  %v1438_v27 = vrot.slane %v1437_v1, 2 }
 0x387   : > { %v1404_v3 = vmul.f32 %v1386_v53, %v1358_v54  ;;  %v1471_v53 = vsel %vm1073_vm15, %v1420_v46, %v1413_v40  ;;  %v1618_v46 = vld [vmem:[%s2899_s8 + $0x60] sm:$0xff] }
 0x388   : > { %v1439_v61 = vadd.f32 %v1438_v27, %v1437_v1  ;;  %v1472_v56 = vsel %vm1075_vm1, %v1427_v19, %v1471_v53  ;;  %v1616_v19 = vld [vmem:[%s2899_s8 + $0x50] sm:$0xff]  ;;  %v1614_v40 = vld [vmem:[%s2899_s8 + $0x40] sm:$0xff] }
 0x389   : > { %v1442_v9 = vsel %vm540_vm0, %v1404_v3, 0.0  ;;  %v1473_v4 = vsel %vm1077_vm2, %v1434_v45, %v1472_v56  ;;  %v1612_v53 = vld [vmem:[%s2899_s8 + $0x30] sm:$0xff]  ;;  %v1611_v56 = vld [vmem:[%s2899_s8 + $0x28] sm:$0xff] }
 0x38a   : > { %v1443_v14 = vrot.slane %v1442_v9, 4  ;;  %v1440_v0 = vrot.slane %v1439_v61, 1 }
 0x38c   : > { %v1444_v20 = vadd.f32 %v1443_v14, %v1442_v9  ;;  %v1441_v50 = vadd.f32 %v1440_v0, %v1439_v61  ;;  %v1301_v9 = vmul.f32 %v1299_v5, %v1294_v59  ;;  %v1957_v61 = vld [vmem:[#allocation2 + $0x4] ss:$0 sm:$0xff] }
 0x38e   : > { %v1361_v57 = vpop.f32.mrf.mxu3  ;;  %v1445_v43 = vrot.slane %v1444_v20, 2  ;;  %v1474_v30 = vsel %vm1079_vm3, %v1441_v50, %v1473_v4  ;;  %v1610_v4 = vld [vmem:[%s2899_s8 + $0x20] sm:$0xff] }
 0x38f   : > { %v1405_v47 = vmul.f32 %v1388_v16, %v1361_v57 }
 0x390   : > { %v1446_v63 = vadd.f32 %v1445_v43, %v1444_v20  ;;  %v1538_v20 = vld [vmem:[#allocation10 + $0x18] sm:$0xff] }
 0x391   : > { %v1449_v22 = vsel %vm540_vm0, %v1405_v47, 0.0  ;;  %1558 = vmatpush.msrb.mxu1 %v1538_v20 }
 0x392   : > { %v1450_v26 = vrot.slane %v1449_v22, 4  ;;  %v1447_v2 = vrot.slane %v1446_v63, 1 }
 0x393   : > { %1559 = vmatpush.msrb.mxu1 %v1537_v21 }
 0x394   : > { %v1451_v28 = vadd.f32 %v1450_v26, %v1449_v22  ;;  %v1448_v48 = vadd.f32 %v1447_v2, %v1446_v63  ;;  %v1536_v22 = vld [vmem:[#allocation10 + $0x8] sm:$0xff] }
 0x395   : > { %1560 = vmatpush.msrb.mxu1 %v1536_v22 }
 0x396   : > { %v1452_v37 = vrot.slane %v1451_v28, 2  ;;  %v1364_v34 = vpop.f32.mrf.mxu3  ;;  %v1475_v7 = vsel %vm1081_vm4, %v1448_v48, %v1474_v30 }
 0x397   : > { %v1406_v62 = vmul.f32 %v1390_v32, %v1364_v34  ;;  %1561 = vmatpush.msrb.mxu1 %v1535_v23 }
 0x398   : > { %v1453_v41 = vadd.f32 %v1452_v37, %v1451_v28 }
 0x399   : > { %v1456_v55 = vsel %vm540_vm0, %v1406_v62, 0.0 }
 0x39a   : > { %v1457_v10 = vrot.slane %v1456_v55, 4  ;;  %v1454_v39 = vrot.slane %v1453_v41, 1 }
 0x39c   : > { %v1458_v42 = vadd.f32 %v1457_v10, %v1456_v55  ;;  %v1455_v36 = vadd.f32 %v1454_v39, %v1453_v41  ;;  %v1621_v41 = vld [vmem:[%s2899_s8 + $0x78] sm:$0xff]  ;;  %v1619_v10 = vld [vmem:[%s2899_s8 + $0x68] sm:$0xff] }
 0x39d   : > { %v1615_v39 = vld [vmem:[%s2899_s8 + $0x48] sm:$0xff] }
 0x39e   : > { %v1459_v49 = vrot.slane %v1458_v42, 2  ;;  %v1476_v11 = vsel %vm1083_vm5, %v1455_v36, %v1475_v7  ;;  %v1608_v7 = vld [vmem:[%s2899_s8 + $0x10] sm:$0xff] }
 0x3a0   : > { %v1460_v54 = vadd.f32 %v1459_v49, %v1458_v42  ;;  %v1617_v42 = vld [vmem:[%s2899_s8 + $0x58] sm:$0xff] }
 0x3a1   : > { %v1613_v49 = vld [vmem:[%s2899_s8 + $0x38] sm:$0xff] }
 0x3a2   : > { %v1461_v3 = vrot.slane %v1460_v54, 1 }
 0x3a4   : > { %v1462_v8 = vadd.f32 %v1461_v3, %v1460_v54  ;;  %v1609_v3 = vld [vmem:[%s2899_s8 + $0x18] sm:$0xff] }
 0x3a6   : > { %v1477_v12 = vsel %vm1085_vm6, %v1462_v8, %v1476_v11 }
 0x3a7   : > { %v1479_v13 = vadd.f32 %v1477_v12, %v1301_v9  ;;  %v1607_v12 = vld [vmem:[%s2899_s8 + $0x8] sm:$0xff] }
 0x3a9   : > { %1842 = vmatmul.msk.f32.vlgmr.msra.gmra.mxu1 %vm540_vm0, %v1479_v13 }
 0x3aa   : > { %1623 = vmatpush.msra.mxu1 %v1621_v41 }
 0x3ac   : > { %1624 = vmatpush.msra.mxu1 %v1620_v44 }
 0x3ae   : > { %1625 = vmatpush.msra.mxu1 %v1619_v10 }
 0x3b0   : > { %1626 = vmatpush.msra.mxu1 %v1618_v46 }
 0x3b2   : > { %1627 = vmatpush.msra.mxu1 %v1617_v42 }
 0x3b4   : > { %1628 = vmatpush.msra.mxu1 %v1616_v19 }
 0x3b6   : > { %1629 = vmatpush.msra.mxu1 %v1615_v39 }
 0x3b8   : > { %1630 = vmatpush.msra.mxu1 %v1614_v40 }
 0x3ba   : > { %1631 = vmatpush.msra.mxu1 %v1613_v49 }
 0x3bc   : > { %1632 = vmatpush.msra.mxu1 %v1612_v53 }
 0x3be   : > { %1633 = vmatpush.msra.mxu1 %v1611_v56 }
 0x3c0   : > { %1634 = vmatpush.msra.mxu1 %v1610_v4 }
 0x3c2   : > { %1635 = vmatpush.msra.mxu1 %v1609_v3 }
 0x3c4   : > { %1636 = vmatpush.msra.mxu1 %v1608_v7 }
 0x3c6   : > { %1637 = vmatpush.msra.mxu1 %v1607_v12 }
 0x426   : > { %v1505_v58 = vpop.f32.mrf.mxu1 }
 0x427   : > { %v1506_v14 = vadd.f32 %v1955_v60, %v1505_v58  ;;  %v1606_v60 = vld [vmem:[%s2899_s8] sm:$0xff] }
 0x428   : > { %1638 = vmatpush.msra.mxu1 %v1606_v60 }
 0x429   : > { %v2792_v16 = vadd.f32 %v2006_v15, %v1506_v14 }
 0x42b   : > { %v1509_v17 = vsel %vm540_vm0, %v2792_v16, 0.0 }
 0x42c   : > { %1510 = vadd.xlane.f32.xlu0 %v1509_v17 }
 0x49f   : > { %v1511_v18 = vpop.xlane.xlu0 %1510 }
 0x4a0   : > { %v1512_v57 = vmul.f32 %v1511_v18, %v2477_v24 }
 0x4a2   : > { %v1513_v1 = vsub.f32 %v2792_v16, %v1512_v57 }
 0x4a4   : > { %v1514_v47 = vmul.f32 %v1513_v1, %v1513_v1 }
 0x4a6   : > { %v1515_v52 = vsel %vm540_vm0, %v1514_v47, 0.0 }
 0x4a7   : > { %1516 = vadd.xlane.f32.xlu2 %v1515_v52 }
 0x51a   : > { %v1517_v25 = vpop.xlane.xlu2 %1516 }
 0x51b   : > { %v1518_v26 = vmul.f32 %v1517_v25, %v2477_v24  ;;  %v1958_v24 = vld [vmem:[#allocation5] ss:$0 sm:$0xff]  ;;  %v2277_v25 = vmov -1.0  }
 0x51d   : > { %v1519_v27 = vadd.f32 1e-05, %v1518_v26 }
 0x51f   : > { %2000 = vrsqrt.f32 %v1519_v27  ;;  %vm1526_vm13 = vweird.f32 %v1519_v27 }
 0x525   : > { %v2001_v31 = vpop.eup %2000 }
 0x526   : > { %v1521_v43 = vmul.f32 %v2001_v31, %v1519_v27  ;;  %vm1527_vm12 = vweird.f32 %v2001_v31 }
 0x527   : > { %vm1528_vm14 = vmor %vm1526_vm13, %vm1527_vm12 }
 0x528   : > { %v1522_v28 = vmul.f32 %v2001_v31, %v1521_v43 }
 0x52a   : > { %v1523_v29 = vmul.f32 0.5, %v1522_v28 }
 0x52c   : > { %v1524_v32 = vsub.f32 1.5, %v1523_v29  ;;  %v1959_v29 = vld [vmem:[#allocation2 + $0x5] ss:$0 sm:$0xff] }
 0x52e   : > { %v1525_v33 = vmul.f32 %v2001_v31, %v1524_v32 }
 0x530   : > { %v1529_v37 = vsel %vm1528_vm14, %v2001_v31, %v1525_v33 }
 0x531   : > { %v1530_v34 = vmul.f32 %v1529_v37, %v1513_v1 }
 0x533   : > { %v1532_v62 = vmul.f32 %v1956_v35, %v1530_v34 }
 0x535   : > { %v1534_v38 = vadd.f32 %v1957_v61, %v1532_v62 }
 0x537   : > { %1843 = vmatmul.msk.f32.vlgmr.msrb.gmra.mxu1 %vm540_vm0, %v1534_v38 }
 0x5b4   : > { %v1563_v63 = vpop.f32.mrf.mxu1 }
 0x5b5   : > { %v2801_v51 = vadd.f32 %v1958_v24, %v1563_v63 }
 0x5b7   : > { %v2807_v55 = vmul.f32 0.70710677, %v2801_v51  ;;  %v1566_v31 = vmul.f32 0.5, %v2801_v51 }
 0x5b9   : > { %v1570_v6 = vand.u32 2147483647, %v2807_v55  ;;  %vm1568_vm4 = vcmp.ge.f32.partialorder %v2807_v55, 0.0 }
 0x5ba   : > { %v1569_v26 = vsel %vm1568_vm4, 1.0, %v2277_v25 }
 0x5bb   : > { %v1571_v0 = vmul.f32 0.3275911, %v1570_v6  ;;  %v1597_v11 = vsub.f32 0.0, %v1570_v6 }
 0x5bd   : > { %v1572_v2 = vadd.f32 1.0, %v1571_v0  ;;  %v1598_v14 = vmul.f32 %v1597_v11, %v1570_v6 }
 0x5bf   : > { %2002 = vrcp.f32 %v1572_v2  ;;  %v1584_v54 = vand.u32 2147483648, %v1572_v2  ;;  %v1582_v59 = vand.u32 2147483647, %v1572_v2  ;;  %vm1578_vm1 = vweird.f32 %v1572_v2 }
 0x5c0   : > { %v1599_v18 = vmul.f32 1.442695, %v1598_v14 }
 0x5c1   : > { %v1585_v5 = vor.u32 1.1754944e-38, %v1584_v54  ;;  %vm1583_vm3 = vcmp.eq.f32.partialorder %v1582_v59, 8.507059e+37 }
 0x5c2   : > { %2004 = vpow2.f32 %v1599_v18 }
 0x5c5   : > { %v2003_v45 = vpop.eup %2002 }
 0x5c6   : > { %v1574_v50 = vmul.f32 %v2003_v45, %v1572_v2  ;;  %vm1579_vm15 = vweird.f32 %v2003_v45 }
 0x5c7   : > { %vm1580_vm2 = vmor %vm1578_vm1, %vm1579_vm15 }
 0x5c8   : > { %v1575_v48 = vsub.f32 1.0, %v1574_v50  ;;  %v2005_v21 = vpop.eup %2004 }
 0x5ca   : > { %v1576_v36 = vmul.f32 %v2003_v45, %v1575_v48 }
 0x5cc   : > { %v1577_v30 = vadd.f32 %v2003_v45, %v1576_v36 }
 0x5ce   : > { %v1581_v8 = vsel %vm1580_vm2, %v2003_v45, %v1577_v30 }
 0x5cf   : > { %v1586_v9 = vsel %vm1583_vm3, %v1585_v5, %v1581_v8 }
 0x5d0   : > { %v1588_v13 = vmul.f32 1.0614054, %v1586_v9 }
 0x5d2   : > { %v1589_v58 = vadd.f32 -1.4531521, %v1588_v13 }
 0x5d4   : > { %v1590_v15 = vmul.f32 %v1589_v58, %v1586_v9 }
 0x5d6   : > { %v1591_v17 = vadd.f32 1.4214138, %v1590_v15 }
 0x5d8   : > { %v1592_v57 = vmul.f32 %v1591_v17, %v1586_v9 }
 0x5da   : > { %v1593_v1 = vadd.f32 -0.28449672, %v1592_v57 }
 0x5dc   : > { %v1594_v47 = vmul.f32 %v1593_v1, %v1586_v9 }
 0x5de   : > { %v1595_v52 = vadd.f32 0.2548296, %v1594_v47 }
 0x5e0   : > { %v1596_v20 = vmul.f32 %v1595_v52, %v1586_v9 }
 0x5e2   : > { %v1601_v22 = vmul.f32 %v2005_v21, %v1596_v20 }
 0x5e4   : > { %v1602_v23 = vsub.f32 1.0, %v1601_v22 }
 0x5e6   : > { %v1603_v27 = vmul.f32 %v1602_v23, %v1569_v26 }
 0x5e8   : > { %v1604_v43 = vadd.f32 1.0, %v1603_v27 }
 0x5ea   : > { %v1605_v28 = vmul.f32 %v1604_v43, %v1566_v31 }
 0x5ec   : > { %1639 = vmatmul.f32.vlgmr.msra.gmra.mxu1 %v1605_v28 }
 0x669   : > { %v1640_v32 = vpop.f32.mrf.mxu1 }
 0x66a   : > { %v1641_v33 = vadd.f32 %v1959_v29, %v1640_v32 }
 0x66c   : > { %v1643_v35 = vadd.f32 %v1641_v33, %v2792_v16 }
 0x66e   : > { %1644 = vst.msk [vmem:[%s514_s29] sm:$0xff] %vm540_vm0, %v1643_v35 }
 0x66f   : > { %2214 = shalt.err (!%p2211_p9)
}
 0x670   : > { %1872 = dma.vmem_to_hbm [thread:$0]  (%p2381_p5), %s1659_s23, 128, %s1661_s18, %s1646_s6  }
 0x671 PF: > { %s2924_s16 = sld [smem:[#allocation19_spill]]  ;;  %p1909_p10 = scmp.ge.s32.totalorder %s2265_s24, 2 }
 0x673   : > { %p1894_p11 = pnand %p1909_p10, %p2385_p6 }
 0x675   : > { %p1895_p12 = pneg %p1894_p11 }
 0x677   : > { %s1672_s30 = sand.u32 1, %s2924_s16  }
 0x678   : > { %s1673_s17 = scalar_lea.sflag [#allocation4], %s1672_s30 }
 0x679   : > { %2248 = dma.done.wait (%p1895_p12), %s1673_s17, 128  }
 0x67a   : > { %2250 = vsyncadd (%p1895_p12), %s1673_s17, 4294967168  ;;  %s2926_s24 = sld [smem:[#allocation21_spill]]  ;;  %s2929_s21 = smov %s2257_s22 }
 0x67b   : > { %s2927_s19 = sld [smem:[#allocation20_spill]] }
 0x67c   : > { %s2928_s23 = sld [smem:[#allocation22_spill]] }
 0x680   : > { %p26_p13 = scmp.ge.s32.totalorder %s2926_s24, 4  }
 0x681   : > { %s2930_s22 = smov %s2927_s19 }
 0x682   :  { %28 = sbr.rel (!%p26_p13) target bundleno = 11 (0xb), region = 131 }
 0x687   :  { %1679 = vsyncpa [#allocation3], 1 }
 0x688   :  { %1681 = vsyncpa [#allocation3 + $0x1], 1 }
 0x689   :  { %1682 = vsyncpa [#allocation6], 1 }
 0x68a   :  { %1683 = vsyncpa [#allocation9], 1 }
 0x68b   :  { %1684 = vsyncpa [#allocation12], 1 }
 0x68c   :  { %1685 = vsyncpa [#allocation4], 1 }
 0x68d   :  { %1687 = vsyncpa [#allocation4 + $0x1], 1 }

</bundles_post_ra>
